<compile_context>
chip_gen: v5e
topology: v5e:2x2
jax: 0.10.0
libtpu: 0.0.40
codegen_flags: <defaults>
</compile_context>

<pallas_src>
import jax
import jax.numpy as jnp
from jax.experimental import pallas as pl
from jax.experimental.pallas import tpu as pltpu

EPS = 1e-5


def bn_add_relu_kernel(x_ref, res_ref, gamma_ref, beta_ref, o_ref):
    # x_ref/res_ref/o_ref: (C, L);  gamma_ref/beta_ref: (C, 1)
    x = x_ref[...].astype(jnp.float32)
    res = res_ref[...].astype(jnp.float32)

    l = x.shape[1]
    inv_l = jnp.float32(1.0 / l)

    # Training-mode (biased) batch statistics over N*H*W, per channel.
    mean = jnp.sum(x, axis=1, keepdims=True) * inv_l          # (C, 1)
    centered = x - mean
    var = jnp.sum(centered * centered, axis=1, keepdims=True) * inv_l
    inv_std = jax.lax.rsqrt(var + EPS)                        # (C, 1)

    # y = (x - mean) * inv_std * gamma + beta  ->  centered * scale + bias
    scale = gamma_ref[...].astype(jnp.float32) * inv_std      # (C, 1)
    bias = beta_ref[...].astype(jnp.float32)                  # (C, 1)

    o_ref[...] = jnp.maximum(res + centered * scale + bias, 0.0).astype(o_ref.dtype)


def batchnorm_add_relu(x105, x104, gamma, beta):
    """x105: BN input (N,C,H,W); x104: residual (N,C,H,W). Returns NCHW."""
    n, c, h, w = x105.shape
    l = n * h * w

    if n == 1:
        # Contiguous, free reshape NCHW -> (C, H*W).
        x_cl = x105.reshape(c, l)
        r_cl = x104.reshape(c, l)
    else:
        # General fallback (not hit by this module's N=1 shape).
        x_cl = jnp.transpose(x105, (1, 0, 2, 3)).reshape(c, l)
        r_cl = jnp.transpose(x104, (1, 0, 2, 3)).reshape(c, l)

    gamma2 = gamma.reshape(c, 1).astype(jnp.float32)
    beta2 = beta.reshape(c, 1).astype(jnp.float32)

    cost = pl.CostEstimate(
        flops=8 * c * l,
        transcendentals=c,
        bytes_accessed=3 * c * l * 4 + 2 * c * 4,
    )

    out_cl = pl.pallas_call(
        bn_add_relu_kernel,
        out_shape=jax.ShapeDtypeStruct((c, l), x105.dtype),
        in_specs=[
            pl.BlockSpec(memory_space=pltpu.MemorySpace.VMEM),  # x
            pl.BlockSpec(memory_space=pltpu.MemorySpace.VMEM),  # residual
            pl.BlockSpec(memory_space=pltpu.MemorySpace.VMEM),  # gamma
            pl.BlockSpec(memory_space=pltpu.MemorySpace.VMEM),  # beta
        ],
        out_specs=pl.BlockSpec(memory_space=pltpu.MemorySpace.VMEM),
        input_output_aliases={1: 0},   # residual buffer reused for the output
        cost_estimate=cost,
    )(x_cl, r_cl, gamma2, beta2)

    if n == 1:
        return out_cl.reshape(n, c, h, w)
    return jnp.transpose(out_cl.reshape(c, n, h, w), (1, 0, 2, 3))


def _reference(x105, x104, gamma, beta):
    # Pure-JAX training-mode BN + add + ReLU (NCHW), for sanity checking.
    mean = jnp.mean(x105, axis=(0, 2, 3), keepdims=True)
    var = jnp.mean((x105 - mean) ** 2, axis=(0, 2, 3), keepdims=True)
    y = (x105 - mean) * jax.lax.rsqrt(var + EPS)
    y = y * gamma.reshape(1, -1, 1, 1) + beta.reshape(1, -1, 1, 1)
    return jnp.maximum(x104 + y, 0.0)


# TODO(synk): training-mode BatchNorm2d also updates running_mean/running_var
# (momentum=0.1); those buffer updates are not part of the returned forward
# value and are not produced here.

if __name__ == "__main__":
    key = jax.random.PRNGKey(0)
    k1, k2, k3, k4 = jax.random.split(key, 4)

    N, C, H, W = 1, 512, 7, 7
    x105 = jax.random.normal(k1, (N, C, H, W), dtype=jnp.float32)  # BN input
    x104 = jax.random.normal(k2, (N, C, H, W), dtype=jnp.float32)  # residual

    gamma = 1.0 + 0.1 * jax.random.normal(k3, (C,), dtype=jnp.float32)
    beta = 0.1 * jax.random.normal(k4, (C,), dtype=jnp.float32)

    out = batchnorm_add_relu(x105, x104, gamma, beta)
    jax.block_until_ready(out)
    assert out.shape == (N, C, H, W)

    ref = _reference(x105, x104, gamma, beta)
    assert jnp.allclose(out, ref, atol=1e-3, rtol=1e-3)
    print("KERNEL_OK")
</pallas_src>

<mosaic_0001>
module attributes {stable_mosaic.version = 11 : i64} {
  func.func @bn_add_relu_kernel(%arg0: memref<512x49xf32, #tpu.memory_space<vmem>>, %arg1: memref<512x49xf32, #tpu.memory_space<vmem>>, %arg2: memref<512x1xf32, #tpu.memory_space<vmem>>, %arg3: memref<512x1xf32, #tpu.memory_space<vmem>>, %arg4: memref<512x49xf32, #tpu.memory_space<vmem>>) attributes {dimension_semantics = [], scalar_prefetch = 0 : i64, scratch_operands = 0 : i64, tpu.core_type = #tpu.core_type<tc>} {
    %c0 = arith.constant 0 : index
    %c0_0 = arith.constant 0 : index
    %0 = vector.load %arg0[%c0, %c0_0] : memref<512x49xf32, #tpu.memory_space<vmem>>, vector<512x49xf32>
    %c0_1 = arith.constant 0 : index
    %c0_2 = arith.constant 0 : index
    %1 = vector.load %arg1[%c0_1, %c0_2] : memref<512x49xf32, #tpu.memory_space<vmem>>, vector<512x49xf32>
    %cst = arith.constant dense<0.000000e+00> : vector<512xf32>
    %2 = vector.multi_reduction <add>, %0, %cst [1] : vector<512x49xf32> to vector<512xf32>
    %3 = vector.shape_cast %2 : vector<512xf32> to vector<512x1xf32>
    %cst_3 = arith.constant 0.0204081628 : f32
    %4 = vector.broadcast %cst_3 : f32 to vector<512x1xf32>
    %5 = arith.mulf %3, %4 : vector<512x1xf32>
    %6 = vector.broadcast %5 : vector<512x1xf32> to vector<512x49xf32>
    %7 = arith.subf %0, %6 : vector<512x49xf32>
    %8 = arith.mulf %7, %7 : vector<512x49xf32>
    %cst_4 = arith.constant dense<0.000000e+00> : vector<512xf32>
    %9 = vector.multi_reduction <add>, %8, %cst_4 [1] : vector<512x49xf32> to vector<512xf32>
    %10 = vector.shape_cast %9 : vector<512xf32> to vector<512x1xf32>
    %cst_5 = arith.constant 0.0204081628 : f32
    %11 = vector.broadcast %cst_5 : f32 to vector<512x1xf32>
    %12 = arith.mulf %10, %11 : vector<512x1xf32>
    %cst_6 = arith.constant 9.99999974E-6 : f32
    %13 = vector.broadcast %cst_6 : f32 to vector<512x1xf32>
    %14 = arith.addf %12, %13 : vector<512x1xf32>
    %15 = math.rsqrt %14 : vector<512x1xf32>
    %c0_7 = arith.constant 0 : index
    %c0_8 = arith.constant 0 : index
    %16 = vector.load %arg2[%c0_7, %c0_8] : memref<512x1xf32, #tpu.memory_space<vmem>>, vector<512x1xf32>
    %17 = arith.mulf %16, %15 : vector<512x1xf32>
    %c0_9 = arith.constant 0 : index
    %c0_10 = arith.constant 0 : index
    %18 = vector.load %arg3[%c0_9, %c0_10] : memref<512x1xf32, #tpu.memory_space<vmem>>, vector<512x1xf32>
    %19 = vector.broadcast %17 : vector<512x1xf32> to vector<512x49xf32>
    %20 = arith.mulf %7, %19 : vector<512x49xf32>
    %21 = arith.addf %1, %20 : vector<512x49xf32>
    %22 = vector.broadcast %18 : vector<512x1xf32> to vector<512x49xf32>
    %23 = arith.addf %21, %22 : vector<512x49xf32>
    %cst_11 = arith.constant 0.000000e+00 : f32
    %24 = vector.broadcast %cst_11 : f32 to vector<512x49xf32>
    %25 = arith.maximumf %23, %24 : vector<512x49xf32>
    %c0_12 = arith.constant 0 : index
    %c0_13 = arith.constant 0 : index
    %26 = vector.load %arg4[%c0_12, %c0_13] : memref<512x49xf32, #tpu.memory_space<vmem>>, vector<512x49xf32>
    tpu.vector_store %arg4[%c0_12, %c0_13], %25 {strides = array<i32>} : memref<512x49xf32, #tpu.memory_space<vmem>>, vector<512x49xf32>,
    return
  }
}

</mosaic_0001>

<bundles_post_ra>
// kernel: tpu_custom_call.1
= control target key start
LH: loop header
LB: loop body
LE: loop exit
PB: predicated region body
PF: predicated region fallthrough
CT: control target
= control target key end

     0   :  { %vm145_vm0 = vcmask 400384   ;;  %s6339_s0 = inlined_call_operand.vmem [shape: f32[512,49], index: 0, kind: input, shape index: {}]   ;;  %s6340_s2 = inlined_call_operand.vmem [shape: f32[512,1], index: 2, kind: input, shape index: {}]   ;;  %s6341_s3 = inlined_call_operand.vmem [shape: f32[512,1], index: 3, kind: input, shape index: {}]   ;;  %s6342_s1 = inlined_call_operand.vmem [shape: f32[512,49], index: 1, kind: input, shape index: {}, may-alias: {1,4}]   ;;  %s6343_s4 = inlined_call_operand.vmem [shape: f32[512,49], index: 4, kind: output, shape index: {}, may-alias: {1,4}]  }
   0x1   :  { %v2807_v0 = vld [vmem:[%s6339_s0 + $0x20] sm:$0xff]  ;;  %v2812_v1 = vld [vmem:[%s6339_s0 + $0x10] sm:$0xff]  ;;  %v2828_v6 = vld [vmem:[%s6339_s0 + $0x28] sm:$0xff] }
   0x2   :  { %v2817_v2 = vld [vmem:[%s6339_s0] sm:$0xff]  ;;  %v158_v3 = vsel %vm145_vm0, %v2807_v0, 0.0  ;;  %v152_v4 = vsel %vm145_vm0, %v2812_v1, 0.0  ;;  %v2833_v7 = vld [vmem:[%s6339_s0 + $0x18] sm:$0xff]  ;;  %v2838_v8 = vld [vmem:[%s6339_s0 + $0x8] sm:$0xff]  ;;  %v161_v9 = vsel %vm145_vm0, %v2828_v6, 0.0 }
   0x3   :  { %v146_v5 = vsel %vm145_vm0, %v2817_v2, 0.0  ;;  %159 = vadd.xlane.f32.xlu2 %v158_v3  ;;  %153 = vadd.xlane.f32.xlu1 %v152_v4  ;;  %v155_v10 = vsel %vm145_vm0, %v2833_v7, 0.0  ;;  %v149_v11 = vsel %vm145_vm0, %v2838_v8, 0.0  ;;  %v2849_v12 = vld [vmem:[%s6339_s0 + $0x40] sm:$0xff]  ;;  %v2854_v13 = vld [vmem:[%s6339_s0 + $0x38] sm:$0xff]  ;;  %v2859_v14 = vld [vmem:[%s6339_s0 + $0x30] sm:$0xff] }
   0x4   :  { %147 = vadd.xlane.f32.xlu0 %v146_v5  ;;  %v170_v15 = vsel %vm145_vm0, %v2849_v12, 0.0  ;;  %v167_v16 = vsel %vm145_vm0, %v2854_v13, 0.0  ;;  %v164_v17 = vsel %vm145_vm0, %v2859_v14, 0.0  ;;  %v2870_v18 = vld [vmem:[%s6339_s0 + $0x58] sm:$0xff]  ;;  %v2875_v19 = vld [vmem:[%s6339_s0 + $0x50] sm:$0xff]  ;;  %v2880_v20 = vld [vmem:[%s6339_s0 + $0x48] sm:$0xff] }
   0x5   :  { %v179_v21 = vsel %vm145_vm0, %v2870_v18, 0.0  ;;  %v176_v22 = vsel %vm145_vm0, %v2875_v19, 0.0  ;;  %v173_v23 = vsel %vm145_vm0, %v2880_v20, 0.0  ;;  %v2891_v24 = vld [vmem:[%s6339_s0 + $0x70] sm:$0xff]  ;;  %v2896_v25 = vld [vmem:[%s6339_s0 + $0x68] sm:$0xff]  ;;  %v2901_v26 = vld [vmem:[%s6339_s0 + $0x60] sm:$0xff] }
   0x6   :  { %v188_v27 = vsel %vm145_vm0, %v2891_v24, 0.0  ;;  %v185_v28 = vsel %vm145_vm0, %v2896_v25, 0.0  ;;  %v182_v29 = vsel %vm145_vm0, %v2901_v26, 0.0  ;;  %v2912_v30 = vld [vmem:[%s6339_s0 + $0x88] sm:$0xff]  ;;  %v2917_v31 = vld [vmem:[%s6339_s0 + $0x80] sm:$0xff]  ;;  %v2922_v32 = vld [vmem:[%s6339_s0 + $0x78] sm:$0xff] }
   0x7   :  { %v197_v33 = vsel %vm145_vm0, %v2912_v30, 0.0  ;;  %v194_v34 = vsel %vm145_vm0, %v2917_v31, 0.0  ;;  %v191_v35 = vsel %vm145_vm0, %v2922_v32, 0.0  ;;  %v2933_v36 = vld [vmem:[%s6339_s0 + $0xa0] sm:$0xff]  ;;  %v2938_v37 = vld [vmem:[%s6339_s0 + $0x98] sm:$0xff]  ;;  %v2943_v38 = vld [vmem:[%s6339_s0 + $0x90] sm:$0xff] }
   0x8   :  { %v206_v39 = vsel %vm145_vm0, %v2933_v36, 0.0  ;;  %v203_v40 = vsel %vm145_vm0, %v2938_v37, 0.0  ;;  %v200_v41 = vsel %vm145_vm0, %v2943_v38, 0.0  ;;  %v2954_v42 = vld [vmem:[%s6339_s0 + $0xb8] sm:$0xff]  ;;  %v2959_v43 = vld [vmem:[%s6339_s0 + $0xb0] sm:$0xff]  ;;  %v2964_v44 = vld [vmem:[%s6339_s0 + $0xa8] sm:$0xff] }
   0x9   :  { %v215_v45 = vsel %vm145_vm0, %v2954_v42, 0.0  ;;  %v212_v46 = vsel %vm145_vm0, %v2959_v43, 0.0  ;;  %v209_v47 = vsel %vm145_vm0, %v2964_v44, 0.0  ;;  %v2975_v48 = vld [vmem:[%s6339_s0 + $0xd0] sm:$0xff]  ;;  %v2980_v49 = vld [vmem:[%s6339_s0 + $0xc8] sm:$0xff]  ;;  %v2985_v50 = vld [vmem:[%s6339_s0 + $0xc0] sm:$0xff] }
   0xa   :  { %v224_v51 = vsel %vm145_vm0, %v2975_v48, 0.0  ;;  %v221_v52 = vsel %vm145_vm0, %v2980_v49, 0.0  ;;  %v218_v53 = vsel %vm145_vm0, %v2985_v50, 0.0  ;;  %v2996_v54 = vld [vmem:[%s6339_s0 + $0xe8] sm:$0xff]  ;;  %v3001_v55 = vld [vmem:[%s6339_s0 + $0xe0] sm:$0xff]  ;;  %v3006_v56 = vld [vmem:[%s6339_s0 + $0xd8] sm:$0xff] }
   0xb   :  { %162 = vadd.xlane.f32.xlu2 %v161_v9  ;;  %156 = vadd.xlane.f32.xlu1 %v155_v10  ;;  %v233_v57 = vsel %vm145_vm0, %v2996_v54, 0.0  ;;  %v230_v58 = vsel %vm145_vm0, %v3001_v55, 0.0  ;;  %v227_v59 = vsel %vm145_vm0, %v3006_v56, 0.0  ;;  %v3017_v60 = vld [vmem:[%s6339_s0 + $0x100] sm:$0xff]  ;;  %v3022_v61 = vld [vmem:[%s6339_s0 + $0xf8] sm:$0xff]  ;;  %v3027_v62 = vld [vmem:[%s6339_s0 + $0xf0] sm:$0xff] }
   0xc   :  { %150 = vadd.xlane.f32.xlu0 %v149_v11  ;;  %v242_v63 = vsel %vm145_vm0, %v3017_v60, 0.0  ;;  %v239_v3 = vsel %vm145_vm0, %v3022_v61, 0.0  ;;  %v236_v4 = vsel %vm145_vm0, %v3027_v62, 0.0  ;;  %v3038_v5 = vld [vmem:[%s6339_s0 + $0x118] sm:$0xff]  ;;  %v3043_v9 = vld [vmem:[%s6339_s0 + $0x110] sm:$0xff]  ;;  %v3048_v10 = vld [vmem:[%s6339_s0 + $0x108] sm:$0xff] }
   0xd   :  { %6435 = vst [vmem:[#allocation2_spill] sm:$0xff] %v3038_v5  ;;  %v251_v11 = vsel %vm145_vm0, %v3038_v5, 0.0 }
  0x13   :  { %171 = vadd.xlane.f32.xlu2 %v170_v15  ;;  %168 = vadd.xlane.f32.xlu1 %v167_v16  ;;  %v248_v15 = vsel %vm145_vm0, %v3043_v9, 0.0  ;;  %v245_v16 = vsel %vm145_vm0, %v3048_v10, 0.0 }
  0x14   :  { %165 = vadd.xlane.f32.xlu0 %v164_v17  ;;  %v3059_v17 = vld [vmem:[%s6339_s0 + $0x130] sm:$0xff] }
  0x15   :  { %6436 = vst [vmem:[#allocation3_spill] sm:$0xff] %v3059_v17 }
  0x1b   :  { %180 = vadd.xlane.f32.xlu2 %v179_v21  ;;  %177 = vadd.xlane.f32.xlu1 %v176_v22  ;;  %v3064_v21 = vld [vmem:[%s6339_s0 + $0x128] sm:$0xff]  ;;  %v3069_v22 = vld [vmem:[%s6339_s0 + $0x120] sm:$0xff] }
  0x1c   :  { %174 = vadd.xlane.f32.xlu0 %v173_v23  ;;  %6437 = vst [vmem:[#allocation4_spill] sm:$0xff] %v3064_v21  ;;  %v260_v23 = vsel %vm145_vm0, %v3059_v17, 0.0 }
  0x1d   :  { %6438 = vst [vmem:[#allocation5_spill] sm:$0xff] %v3069_v22 }
  0x23   :  { %189 = vadd.xlane.f32.xlu2 %v188_v27  ;;  %186 = vadd.xlane.f32.xlu1 %v185_v28  ;;  %v257_v27 = vsel %vm145_vm0, %v3064_v21, 0.0  ;;  %v254_v28 = vsel %vm145_vm0, %v3069_v22, 0.0 }
  0x24   :  { %183 = vadd.xlane.f32.xlu0 %v182_v29  ;;  %v3080_v29 = vld [vmem:[%s6339_s0 + $0x148] sm:$0xff] }
  0x25   :  { %6439 = vst [vmem:[#allocation6_spill] sm:$0xff] %v3080_v29 }
  0x2b   :  { %198 = vadd.xlane.f32.xlu2 %v197_v33  ;;  %195 = vadd.xlane.f32.xlu1 %v194_v34  ;;  %v3085_v33 = vld [vmem:[%s6339_s0 + $0x140] sm:$0xff]  ;;  %v3090_v34 = vld [vmem:[%s6339_s0 + $0x138] sm:$0xff] }
  0x2c   :  { %192 = vadd.xlane.f32.xlu0 %v191_v35  ;;  %6440 = vst [vmem:[#allocation7_spill] sm:$0xff] %v3085_v33  ;;  %v269_v35 = vsel %vm145_vm0, %v3080_v29, 0.0 }
  0x2d   :  { %6441 = vst [vmem:[#allocation8_spill] sm:$0xff] %v3090_v34 }
  0x33   :  { %207 = vadd.xlane.f32.xlu2 %v206_v39  ;;  %204 = vadd.xlane.f32.xlu1 %v203_v40  ;;  %v266_v39 = vsel %vm145_vm0, %v3085_v33, 0.0  ;;  %v263_v40 = vsel %vm145_vm0, %v3090_v34, 0.0 }
  0x34   :  { %201 = vadd.xlane.f32.xlu0 %v200_v41  ;;  %v3101_v41 = vld [vmem:[%s6339_s0 + $0x160] sm:$0xff] }
  0x35   :  { %6442 = vst [vmem:[#allocation9_spill] sm:$0xff] %v3101_v41 }
  0x3b   :  { %216 = vadd.xlane.f32.xlu2 %v215_v45  ;;  %213 = vadd.xlane.f32.xlu1 %v212_v46  ;;  %v3106_v45 = vld [vmem:[%s6339_s0 + $0x158] sm:$0xff]  ;;  %v3111_v46 = vld [vmem:[%s6339_s0 + $0x150] sm:$0xff] }
  0x3c   :  { %210 = vadd.xlane.f32.xlu0 %v209_v47  ;;  %6443 = vst [vmem:[#allocation10_spill] sm:$0xff] %v3106_v45  ;;  %v278_v47 = vsel %vm145_vm0, %v3101_v41, 0.0 }
  0x3d   :  { %6444 = vst [vmem:[#allocation11_spill] sm:$0xff] %v3111_v46 }
  0x43   :  { %225 = vadd.xlane.f32.xlu2 %v224_v51  ;;  %222 = vadd.xlane.f32.xlu1 %v221_v52  ;;  %v275_v51 = vsel %vm145_vm0, %v3106_v45, 0.0  ;;  %v272_v52 = vsel %vm145_vm0, %v3111_v46, 0.0  ;;  %v3251_v46 = vld [vmem:[%s6339_s0 + $0x1f0] sm:$0xff]  ;;  %v3256_v45 = vld [vmem:[%s6339_s0 + $0x1e8] sm:$0xff] }
  0x44   :  { %219 = vadd.xlane.f32.xlu0 %v218_v53  ;;  %v3122_v53 = vld [vmem:[%s6339_s0 + $0x178] sm:$0xff]  ;;  %6460 = vst [vmem:[#allocation27_spill] sm:$0xff] %v3251_v46 }
  0x45   :  { %6445 = vst [vmem:[#allocation12_spill] sm:$0xff] %v3122_v53 }
  0x4b   :  { %234 = vadd.xlane.f32.xlu2 %v233_v57  ;;  %231 = vadd.xlane.f32.xlu1 %v230_v58  ;;  %v3127_v57 = vld [vmem:[%s6339_s0 + $0x170] sm:$0xff] }
  0x4c   :  { %228 = vadd.xlane.f32.xlu0 %v227_v59  ;;  %6446 = vst [vmem:[#allocation13_spill] sm:$0xff] %v3127_v57 }
  0x53   :  { %243 = vadd.xlane.f32.xlu2 %v242_v63  ;;  %240 = vadd.xlane.f32.xlu1 %v239_v3  ;;  %v3136_v63 = vld [vmem:[%s6339_s0 + $0x168] sm:$0xff] }
  0x54   :  { %237 = vadd.xlane.f32.xlu0 %v236_v4  ;;  %6447 = vst [vmem:[#allocation14_spill] sm:$0xff] %v3136_v63  ;;  %v287_v4 = vsel %vm145_vm0, %v3122_v53, 0.0 }
  0x5b   :  { %252 = vadd.xlane.f32.xlu2 %v251_v11  ;;  %249 = vadd.xlane.f32.xlu1 %v248_v15  ;;  %v284_v11 = vsel %vm145_vm0, %v3127_v57, 0.0  ;;  %v281_v15 = vsel %vm145_vm0, %v3136_v63, 0.0  ;;  %v3224_v63 = vld [vmem:[%s6339_s0 + $0x1d8] sm:$0xff]  ;;  %v3229_v57 = vld [vmem:[%s6339_s0 + $0x1d0] sm:$0xff] }
  0x5c   :  { %246 = vadd.xlane.f32.xlu0 %v245_v16  ;;  %v3147_v16 = vld [vmem:[%s6339_s0 + $0x190] sm:$0xff]  ;;  %6457 = vst [vmem:[#allocation24_spill] sm:$0xff] %v3224_v63 }
  0x5d   :  { %6448 = vst [vmem:[#allocation15_spill] sm:$0xff] %v3147_v16 }
  0x5e   :  { %6458 = vst [vmem:[#allocation25_spill] sm:$0xff] %v3229_v57 }
  0x63   :  { %261 = vadd.xlane.f32.xlu2 %v260_v23  ;;  %258 = vadd.xlane.f32.xlu1 %v257_v27  ;;  %v3152_v23 = vld [vmem:[%s6339_s0 + $0x188] sm:$0xff] }
  0x64   :  { %255 = vadd.xlane.f32.xlu0 %v254_v28  ;;  %6449 = vst [vmem:[#allocation16_spill] sm:$0xff] %v3152_v23 }
  0x6b   :  { %270 = vadd.xlane.f32.xlu2 %v269_v35  ;;  %267 = vadd.xlane.f32.xlu1 %v266_v39  ;;  %v3159_v35 = vld [vmem:[%s6339_s0 + $0x180] sm:$0xff] }
  0x6c   :  { %264 = vadd.xlane.f32.xlu0 %v263_v40  ;;  %6450 = vst [vmem:[#allocation17_spill] sm:$0xff] %v3159_v35  ;;  %v296_v40 = vsel %vm145_vm0, %v3147_v16, 0.0 }
  0x73   :  { %279 = vadd.xlane.f32.xlu2 %v278_v47  ;;  %276 = vadd.xlane.f32.xlu1 %v275_v51  ;;  %v293_v47 = vsel %vm145_vm0, %v3152_v23, 0.0  ;;  %v290_v51 = vsel %vm145_vm0, %v3159_v35, 0.0  ;;  %v3197_v35 = vld [vmem:[%s6339_s0 + $0x1c0] sm:$0xff]  ;;  %v3202_v23 = vld [vmem:[%s6339_s0 + $0x1b8] sm:$0xff] }
  0x74   :  { %273 = vadd.xlane.f32.xlu0 %v272_v52  ;;  %v3170_v52 = vld [vmem:[%s6339_s0 + $0x1a8] sm:$0xff]  ;;  %6454 = vst [vmem:[#allocation21_spill] sm:$0xff] %v3197_v35 }
  0x75   :  { %6451 = vst [vmem:[#allocation18_spill] sm:$0xff] %v3170_v52 }
  0x76   :  { %v3129_v58 = vpop.xlane.xlu2 %159  ;;  %v3131_v59 = vpop.xlane.xlu1 %153  ;;  %6455 = vst [vmem:[#allocation22_spill] sm:$0xff] %v3202_v23 }
  0x77   :  { %v148_v3 = vpop.xlane.xlu0 %147  ;;  %v342_v5 = vmul.f32 0.020408163, %v3129_v58 }
  0x7b   :  { %288 = vadd.xlane.f32.xlu2 %v287_v4  ;;  %285 = vadd.xlane.f32.xlu1 %v284_v11  ;;  %v3175_v4 = vld [vmem:[%s6339_s0 + $0x1a0] sm:$0xff] }
  0x7c   :  { %282 = vadd.xlane.f32.xlu0 %v281_v15  ;;  %6452 = vst [vmem:[#allocation19_spill] sm:$0xff] %v3175_v4  ;;  %v302_v16 = vsel %vm145_vm0, %v3175_v4, 0.0 }
  0x7e   :  { %v3154_v27 = vpop.xlane.xlu2 %162  ;;  %v157_v28 = vpop.xlane.xlu1 %156 }
  0x7f   :  { %v151_v39 = vpop.xlane.xlu0 %150  ;;  %v341_v22 = vmul.f32 0.020408163, %v157_v28  ;;  %v3301_v28 = vsub.f32 %v2807_v0, %v342_v5 }
  0x80   :  { %v339_v17 = vmul.f32 0.020408163, %v151_v39 }
  0x81   :  { %6465 = vst [vmem:[#allocation32_spill] sm:$0xff] %v3301_v28  ;;  %v470_v5 = vmul.f32 %v3301_v28, %v3301_v28 }
  0x82   :  { %v3279_v33 = vsub.f32 %v2838_v8, %v339_v17  ;;  %v340_v17 = vmul.f32 0.020408163, %v3131_v59 }
  0x83   :  { %297 = vadd.xlane.f32.xlu2 %v296_v40  ;;  %294 = vadd.xlane.f32.xlu1 %v293_v47  ;;  %v3184_v40 = vld [vmem:[%s6339_s0 + $0x198] sm:$0xff] }
  0x84   :  { %291 = vadd.xlane.f32.xlu0 %v290_v51  ;;  %6453 = vst [vmem:[#allocation20_spill] sm:$0xff] %v3184_v40  ;;  %v305_v51 = vsel %vm145_vm0, %v3170_v52, 0.0  ;;  %v299_v53 = vsel %vm145_vm0, %v3184_v40, 0.0  ;;  %v311_v40 = vsel %vm145_vm0, %v3202_v23, 0.0  ;;  %v467_v8 = vmul.f32 %v3279_v33, %v3279_v33 }
  0x85   :  { %6463 = vst [vmem:[#allocation30_spill] sm:$0xff] %v3279_v33 }
  0x86   :  { %v3177_v11 = vpop.xlane.xlu2 %171  ;;  %v3179_v15 = vpop.xlane.xlu1 %168 }
  0x87   :  { %v3186_v47 = vpop.xlane.xlu0 %165  ;;  %v345_v59 = vmul.f32 0.020408163, %v3179_v15 }
  0x88   :  { %v344_v33 = vmul.f32 0.020408163, %v3186_v47 }
  0x89   :  { %v3327_v15 = vsub.f32 %v2854_v13, %v345_v59  ;;  %v346_v59 = vmul.f32 0.020408163, %v3177_v11 }
  0x8a   :  { %v3330_v47 = vsub.f32 %v2859_v14, %v344_v33 }
  0x8b   :  { %306 = vadd.xlane.f32.xlu2 %v305_v51  ;;  %303 = vadd.xlane.f32.xlu1 %v302_v16  ;;  %v3211_v51 = vld [vmem:[%s6339_s0 + $0x1b0] sm:$0xff]  ;;  %v314_v16 = vsel %vm145_vm0, %v3197_v35, 0.0  ;;  %6467 = vst [vmem:[#allocation34_spill] sm:$0xff] %v3327_v15  ;;  %v473_v33 = vmul.f32 %v3327_v15, %v3327_v15 }
  0x8c   :  { %300 = vadd.xlane.f32.xlu0 %v299_v53  ;;  %6456 = vst [vmem:[#allocation23_spill] sm:$0xff] %v3211_v51  ;;  %v308_v4 = vsel %vm145_vm0, %v3211_v51, 0.0  ;;  %v320_v51 = vsel %vm145_vm0, %v3229_v57, 0.0 }
  0x8d   :  { %6468 = vst [vmem:[#allocation35_spill] sm:$0xff] %v3330_v47 }
  0x8e   :  { %v3204_v52 = vpop.xlane.xlu2 %180  ;;  %v3206_v41 = vpop.xlane.xlu1 %177 }
  0x8f   :  { %v3213_v53 = vpop.xlane.xlu0 %174 }
  0x90   :  { %v347_v13 = vmul.f32 0.020408163, %v3213_v53 }
  0x92   :  { %v3357_v53 = vsub.f32 %v2880_v20, %v347_v13  ;;  %v349_v13 = vmul.f32 0.020408163, %v3204_v52 }
  0x93   :  { %315 = vadd.xlane.f32.xlu2 %v314_v16  ;;  %312 = vadd.xlane.f32.xlu1 %v311_v40  ;;  %v3238_v16 = vld [vmem:[%s6339_s0 + $0x1c8] sm:$0xff]  ;;  %v323_v40 = vsel %vm145_vm0, %v3224_v63, 0.0  ;;  %v338_v63 = vmul.f32 0.020408163, %v148_v3 }
  0x94   :  { %309 = vadd.xlane.f32.xlu0 %v308_v4  ;;  %6459 = vst [vmem:[#allocation26_spill] sm:$0xff] %v3238_v16  ;;  %v317_v23 = vsel %vm145_vm0, %v3238_v16, 0.0  ;;  %v329_v16 = vsel %vm145_vm0, %v3256_v45, 0.0 }
  0x95   :  { %v3276_v39 = vsub.f32 %v2817_v2, %v338_v63  ;;  %6471 = vst [vmem:[#allocation38_spill] sm:$0xff] %v3357_v53 }
  0x96   :  { %v3231_v35 = vpop.xlane.xlu2 %189  ;;  %v3233_v29 = vpop.xlane.xlu1 %186 }
  0x97   :  { %v3240_v4 = vpop.xlane.xlu0 %183  ;;  %6462 = vst [vmem:[#allocation29_spill] sm:$0xff] %v3276_v39  ;;  %v466_v2 = vmul.f32 %v3276_v39, %v3276_v39  ;;  %v3309_v39 = vsub.f32 %v2812_v1, %v340_v17  ;;  %v343_v1 = vmul.f32 0.020408163, %v3154_v27  ;;  %v542_v17 = vsel %vm145_vm0, %v470_v5, 0.0 }
  0x9b   :  { %324 = vadd.xlane.f32.xlu2 %v323_v40  ;;  %321 = vadd.xlane.f32.xlu1 %v320_v51  ;;  %v332_v40 = vsel %vm145_vm0, %v3251_v46, 0.0 }
  0x9c   :  { %318 = vadd.xlane.f32.xlu0 %v317_v23  ;;  %v3265_v23 = vld [vmem:[%s6339_s0 + $0x1e0] sm:$0xff] }
  0x9d   :  { %6461 = vst [vmem:[#allocation28_spill] sm:$0xff] %v3265_v23  ;;  %v326_v3 = vsel %vm145_vm0, %v3265_v23, 0.0  ;;  %v3289_v23 = vld [vmem:[%s6339_s0 + $0x1f8] sm:$0xff] }
  0x9e   :  { %v3258_v34 = vpop.xlane.xlu2 %198  ;;  %v3260_v57 = vpop.xlane.xlu1 %195  ;;  %6464 = vst [vmem:[#allocation31_spill] sm:$0xff] %v3289_v23  ;;  %v335_v58 = vsel %vm145_vm0, %v3289_v23, 0.0 }
  0x9f   :  { %v3267_v51 = vpop.xlane.xlu0 %192 }
  0xa3   :  { %333 = vadd.xlane.f32.xlu2 %v332_v40  ;;  %330 = vadd.xlane.f32.xlu1 %v329_v16  ;;  %v3304_v16 = vsub.f32 %v2833_v7, %v341_v22  ;;  %v530_v40 = vsel %vm145_vm0, %v466_v2, 0.0  ;;  %v468_v2 = vmul.f32 %v3309_v39, %v3309_v39 }
  0xa4   :  { %327 = vadd.xlane.f32.xlu0 %v326_v3  ;;  %v533_v3 = vsel %vm145_vm0, %v467_v8, 0.0 }
  0xa5   :  { %6466 = vst [vmem:[#allocation33_spill] sm:$0xff] %v3304_v16  ;;  %v469_v7 = vmul.f32 %v3304_v16, %v3304_v16  ;;  %v536_v27 = vsel %vm145_vm0, %v468_v2, 0.0 }
  0xa6   :  { %v3282_v21 = vpop.xlane.xlu2 %207  ;;  %v3284_v46 = vpop.xlane.xlu1 %204 }
  0xa7   :  { %v3296_v63 = vpop.xlane.xlu0 %201  ;;  %v539_v8 = vsel %vm145_vm0, %v469_v7, 0.0 }
  0xab   :  { %531 = vadd.xlane.f32.xlu1 %v530_v40  ;;  %534 = vadd.xlane.f32.xlu2 %v533_v3  ;;  %v348_v40 = vmul.f32 0.020408163, %v3206_v41 }
  0xac   :  { %336 = vadd.xlane.f32.xlu0 %v335_v58  ;;  %v3335_v58 = vsub.f32 %v2828_v6, %v343_v1  ;;  %v472_v6 = vmul.f32 %v3330_v47, %v3330_v47  ;;  %v551_v1 = vsel %vm145_vm0, %v473_v33, 0.0 }
  0xad   :  { %v3354_v41 = vsub.f32 %v2875_v19, %v348_v40  ;;  %v350_v19 = vmul.f32 0.020408163, %v3240_v4 }
  0xae   :  { %v3313_v23 = vpop.xlane.xlu2 %216  ;;  %v3315_v0 = vpop.xlane.xlu1 %213  ;;  %6469 = vst [vmem:[#allocation36_spill] sm:$0xff] %v3335_v58  ;;  %v471_v5 = vmul.f32 %v3335_v58, %v3335_v58  ;;  %v548_v2 = vsel %vm145_vm0, %v472_v6, 0.0 }
  0xaf   :  { %v3322_v22 = vpop.xlane.xlu0 %210  ;;  %6470 = vst [vmem:[#allocation37_spill] sm:$0xff] %v3354_v41  ;;  %v476_v40 = vmul.f32 %v3354_v41, %v3354_v41  ;;  %v3384_v4 = vsub.f32 %v2901_v26, %v350_v19  ;;  %v352_v19 = vmul.f32 0.020408163, %v3231_v35 }
  0xb0   :  { %v545_v11 = vsel %vm145_vm0, %v471_v5, 0.0 }
  0xb1   :  { %6474 = vst [vmem:[#allocation41_spill] sm:$0xff] %v3384_v4 }
  0xb3   :  { %540 = vadd.xlane.f32.xlu1 %v539_v8  ;;  %543 = vadd.xlane.f32.xlu2 %v542_v17  ;;  %v3362_v8 = vsub.f32 %v2849_v12, %v346_v59  ;;  %v351_v17 = vmul.f32 0.020408163, %v3233_v29  ;;  %v475_v12 = vmul.f32 %v3357_v53, %v3357_v53  ;;  %v560_v59 = vsel %vm145_vm0, %v476_v40, 0.0 }
  0xb4   :  { %537 = vadd.xlane.f32.xlu0 %v536_v27 }
  0xb5   :  { %6472 = vst [vmem:[#allocation39_spill] sm:$0xff] %v3362_v8  ;;  %v474_v6 = vmul.f32 %v3362_v8, %v3362_v8  ;;  %v3381_v29 = vsub.f32 %v2896_v25, %v351_v17  ;;  %v557_v5 = vsel %vm145_vm0, %v475_v12, 0.0  ;;  %v353_v25 = vmul.f32 0.020408163, %v3267_v51 }
  0xb6   :  { %v3340_v3 = vpop.xlane.xlu2 %225  ;;  %v3342_v14 = vpop.xlane.xlu1 %222 }
  0xb7   :  { %v3349_v7 = vpop.xlane.xlu0 %219  ;;  %6473 = vst [vmem:[#allocation40_spill] sm:$0xff] %v3381_v29  ;;  %v554_v52 = vsel %vm145_vm0, %v474_v6, 0.0  ;;  %v479_v17 = vmul.f32 %v3381_v29, %v3381_v29  ;;  %v3411_v51 = vsub.f32 %v2922_v32, %v353_v25  ;;  %v355_v25 = vmul.f32 0.020408163, %v3258_v34 }
  0xb9   :  { %6477 = vst [vmem:[#allocation44_spill] sm:$0xff] %v3411_v51 }
  0xbb   :  { %552 = vadd.xlane.f32.xlu2 %v551_v1  ;;  %549 = vadd.xlane.f32.xlu1 %v548_v2  ;;  %v3389_v1 = vsub.f32 %v2870_v18, %v349_v13  ;;  %v354_v2 = vmul.f32 0.020408163, %v3260_v57  ;;  %v478_v18 = vmul.f32 %v3384_v4, %v3384_v4  ;;  %v569_v13 = vsel %vm145_vm0, %v479_v17, 0.0  ;;  %v1491_v4 = vld [vmem:[%s6340_s2 + $0x8] sm:$0xff] }
  0xbc   :  { %546 = vadd.xlane.f32.xlu0 %v545_v11 }
  0xbd   :  { %6475 = vst [vmem:[#allocation42_spill] sm:$0xff] %v3389_v1  ;;  %v477_v12 = vmul.f32 %v3389_v1, %v3389_v1  ;;  %v3408_v57 = vsub.f32 %v2917_v31, %v354_v2  ;;  %v566_v6 = vsel %vm145_vm0, %v478_v18, 0.0  ;;  %v356_v31 = vmul.f32 0.020408163, %v3296_v63 }
  0xbe   :  { %v3367_v27 = vpop.xlane.xlu2 %234  ;;  %v3369_v20 = vpop.xlane.xlu1 %231 }
  0xbf   :  { %v3376_v33 = vpop.xlane.xlu0 %228  ;;  %6476 = vst [vmem:[#allocation43_spill] sm:$0xff] %v3408_v57  ;;  %v563_v35 = vsel %vm145_vm0, %v477_v12, 0.0  ;;  %v482_v2 = vmul.f32 %v3408_v57, %v3408_v57  ;;  %v3438_v63 = vsub.f32 %v2943_v38, %v356_v31  ;;  %v358_v31 = vmul.f32 0.020408163, %v3282_v21 }
  0xc1   :  { %6480 = vst [vmem:[#allocation47_spill] sm:$0xff] %v3438_v63 }
  0xc3   :  { %561 = vadd.xlane.f32.xlu2 %v560_v59  ;;  %558 = vadd.xlane.f32.xlu1 %v557_v5  ;;  %v3416_v59 = vsub.f32 %v2891_v24, %v352_v19  ;;  %v357_v5 = vmul.f32 0.020408163, %v3284_v46  ;;  %v481_v24 = vmul.f32 %v3411_v51, %v3411_v51  ;;  %v578_v19 = vsel %vm145_vm0, %v482_v2, 0.0 }
  0xc4   :  { %555 = vadd.xlane.f32.xlu0 %v554_v52 }
  0xc5   :  { %6478 = vst [vmem:[#allocation45_spill] sm:$0xff] %v3416_v59  ;;  %v480_v18 = vmul.f32 %v3416_v59, %v3416_v59  ;;  %v3435_v46 = vsub.f32 %v2938_v37, %v357_v5  ;;  %v575_v12 = vsel %vm145_vm0, %v481_v24, 0.0  ;;  %v359_v37 = vmul.f32 0.020408163, %v3322_v22 }
  0xc6   :  { %v3394_v11 = vpop.xlane.xlu2 %243  ;;  %v3396_v26 = vpop.xlane.xlu1 %240 }
  0xc7   :  { %v3403_v40 = vpop.xlane.xlu0 %237  ;;  %6479 = vst [vmem:[#allocation46_spill] sm:$0xff] %v3435_v46  ;;  %v572_v34 = vsel %vm145_vm0, %v480_v18, 0.0  ;;  %v485_v5 = vmul.f32 %v3435_v46, %v3435_v46  ;;  %v3465_v22 = vsub.f32 %v2964_v44, %v359_v37  ;;  %v361_v37 = vmul.f32 0.020408163, %v3313_v23 }
  0xc9   :  { %6483 = vst [vmem:[#allocation50_spill] sm:$0xff] %v3465_v22 }
  0xcb   :  { %570 = vadd.xlane.f32.xlu2 %v569_v13  ;;  %567 = vadd.xlane.f32.xlu1 %v566_v6  ;;  %v3443_v13 = vsub.f32 %v2912_v30, %v355_v25  ;;  %v360_v6 = vmul.f32 0.020408163, %v3315_v0  ;;  %v484_v30 = vmul.f32 %v3438_v63, %v3438_v63  ;;  %v587_v25 = vsel %vm145_vm0, %v485_v5, 0.0 }
  0xcc   :  { %564 = vadd.xlane.f32.xlu0 %v563_v35 }
  0xcd   :  { %6481 = vst [vmem:[#allocation48_spill] sm:$0xff] %v3443_v13  ;;  %v483_v24 = vmul.f32 %v3443_v13, %v3443_v13  ;;  %v3462_v0 = vsub.f32 %v2959_v43, %v360_v6  ;;  %v584_v18 = vsel %vm145_vm0, %v484_v30, 0.0  ;;  %v362_v43 = vmul.f32 0.020408163, %v3349_v7 }
  0xce   :  { %v3421_v52 = vpop.xlane.xlu2 %252  ;;  %v3423_v32 = vpop.xlane.xlu1 %249 }
  0xcf   :  { %v3430_v17 = vpop.xlane.xlu0 %246  ;;  %6482 = vst [vmem:[#allocation49_spill] sm:$0xff] %v3462_v0  ;;  %v581_v21 = vsel %vm145_vm0, %v483_v24, 0.0  ;;  %v488_v6 = vmul.f32 %v3462_v0, %v3462_v0  ;;  %v3492_v7 = vsub.f32 %v2985_v50, %v362_v43  ;;  %v364_v43 = vmul.f32 0.020408163, %v3340_v3 }
  0xd1   :  { %6486 = vst [vmem:[#allocation53_spill] sm:$0xff] %v3492_v7 }
  0xd3   :  { %579 = vadd.xlane.f32.xlu2 %v578_v19  ;;  %576 = vadd.xlane.f32.xlu1 %v575_v12  ;;  %v3470_v19 = vsub.f32 %v2933_v36, %v358_v31  ;;  %v363_v12 = vmul.f32 0.020408163, %v3342_v14  ;;  %v487_v36 = vmul.f32 %v3465_v22, %v3465_v22  ;;  %v596_v31 = vsel %vm145_vm0, %v488_v6, 0.0 }
  0xd4   :  { %573 = vadd.xlane.f32.xlu0 %v572_v34 }
  0xd5   :  { %6484 = vst [vmem:[#allocation51_spill] sm:$0xff] %v3470_v19  ;;  %v486_v30 = vmul.f32 %v3470_v19, %v3470_v19  ;;  %v3489_v14 = vsub.f32 %v2980_v49, %v363_v12  ;;  %v593_v24 = vsel %vm145_vm0, %v487_v36, 0.0  ;;  %v365_v49 = vmul.f32 0.020408163, %v3376_v33 }
  0xd6   :  { %v3448_v35 = vpop.xlane.xlu2 %261  ;;  %v3450_v38 = vpop.xlane.xlu1 %258 }
  0xd7   :  { %v3457_v2 = vpop.xlane.xlu0 %255  ;;  %6485 = vst [vmem:[#allocation52_spill] sm:$0xff] %v3489_v14  ;;  %v590_v23 = vsel %vm145_vm0, %v486_v30, 0.0  ;;  %v491_v12 = vmul.f32 %v3489_v14, %v3489_v14  ;;  %v3519_v33 = vsub.f32 %v3006_v56, %v365_v49  ;;  %v367_v49 = vmul.f32 0.020408163, %v3367_v27 }
  0xd9   :  { %6489 = vst [vmem:[#allocation56_spill] sm:$0xff] %v3519_v33 }
  0xdb   :  { %588 = vadd.xlane.f32.xlu2 %v587_v25  ;;  %585 = vadd.xlane.f32.xlu1 %v584_v18  ;;  %v3497_v25 = vsub.f32 %v2954_v42, %v361_v37  ;;  %v366_v18 = vmul.f32 0.020408163, %v3369_v20  ;;  %v490_v42 = vmul.f32 %v3492_v7, %v3492_v7  ;;  %v605_v37 = vsel %vm145_vm0, %v491_v12, 0.0 }
  0xdc   :  { %582 = vadd.xlane.f32.xlu0 %v581_v21 }
  0xdd   :  { %6487 = vst [vmem:[#allocation54_spill] sm:$0xff] %v3497_v25  ;;  %v489_v36 = vmul.f32 %v3497_v25, %v3497_v25  ;;  %v3516_v20 = vsub.f32 %v3001_v55, %v366_v18  ;;  %v602_v30 = vsel %vm145_vm0, %v490_v42, 0.0  ;;  %v368_v55 = vmul.f32 0.020408163, %v3403_v40 }
  0xde   :  { %v3475_v34 = vpop.xlane.xlu2 %270  ;;  %v3477_v44 = vpop.xlane.xlu1 %267 }
  0xdf   :  { %v3484_v5 = vpop.xlane.xlu0 %264  ;;  %6488 = vst [vmem:[#allocation55_spill] sm:$0xff] %v3516_v20  ;;  %v599_v3 = vsel %vm145_vm0, %v489_v36, 0.0  ;;  %v494_v18 = vmul.f32 %v3516_v20, %v3516_v20  ;;  %v3546_v40 = vsub.f32 %v3027_v62, %v368_v55  ;;  %v370_v55 = vmul.f32 0.020408163, %v3394_v11 }
  0xe1   :  { %6492 = vst [vmem:[#allocation59_spill] sm:$0xff] %v3546_v40 }
  0xe3   :  { %597 = vadd.xlane.f32.xlu2 %v596_v31  ;;  %594 = vadd.xlane.f32.xlu1 %v593_v24  ;;  %v3524_v31 = vsub.f32 %v2975_v48, %v364_v43  ;;  %v369_v24 = vmul.f32 0.020408163, %v3396_v26  ;;  %v493_v48 = vmul.f32 %v3519_v33, %v3519_v33  ;;  %v614_v43 = vsel %vm145_vm0, %v494_v18, 0.0 }
  0xe4   :  { %591 = vadd.xlane.f32.xlu0 %v590_v23 }
  0xe5   :  { %6490 = vst [vmem:[#allocation57_spill] sm:$0xff] %v3524_v31  ;;  %v492_v42 = vmul.f32 %v3524_v31, %v3524_v31  ;;  %v3543_v26 = vsub.f32 %v3022_v61, %v369_v24  ;;  %v611_v36 = vsel %vm145_vm0, %v493_v48, 0.0  ;;  %v371_v61 = vmul.f32 0.020408163, %v3430_v17 }
  0xe6   :  { %v3502_v21 = vpop.xlane.xlu2 %279  ;;  %v3504_v50 = vpop.xlane.xlu1 %276 }
  0xe7   :  { %v3511_v6 = vpop.xlane.xlu0 %273  ;;  %6491 = vst [vmem:[#allocation58_spill] sm:$0xff] %v3543_v26  ;;  %v608_v27 = vsel %vm145_vm0, %v492_v42, 0.0  ;;  %v497_v24 = vmul.f32 %v3543_v26, %v3543_v26  ;;  %v3573_v17 = vsub.f32 %v3048_v10, %v371_v61  ;;  %v373_v61 = vmul.f32 0.020408163, %v3421_v52 }
  0xe9   :  { %6495 = vst [vmem:[#allocation62_spill] sm:$0xff] %v3573_v17 }
  0xeb   :  { %606 = vadd.xlane.f32.xlu2 %v605_v37  ;;  %603 = vadd.xlane.f32.xlu1 %v602_v30  ;;  %v3551_v37 = vsub.f32 %v2996_v54, %v367_v49  ;;  %v372_v30 = vmul.f32 0.020408163, %v3423_v32  ;;  %v496_v54 = vmul.f32 %v3546_v40, %v3546_v40  ;;  %v623_v49 = vsel %vm145_vm0, %v497_v24, 0.0 }
  0xec   :  { %600 = vadd.xlane.f32.xlu0 %v599_v3 }
  0xed   :  { %6493 = vst [vmem:[#allocation60_spill] sm:$0xff] %v3551_v37  ;;  %v495_v48 = vmul.f32 %v3551_v37, %v3551_v37  ;;  %v3570_v32 = vsub.f32 %v3043_v9, %v372_v30  ;;  %v620_v42 = vsel %vm145_vm0, %v496_v54, 0.0  ;;  %v374_v9 = vmul.f32 0.020408163, %v3457_v2  ;;  %v6499_v2 = vld [vmem:[#allocation5_spill] sm:$0xff] }
  0xee   :  { %v3529_v23 = vpop.xlane.xlu2 %288  ;;  %v3531_v56 = vpop.xlane.xlu1 %285 }
  0xef   :  { %v3538_v12 = vpop.xlane.xlu0 %282  ;;  %6494 = vst [vmem:[#allocation61_spill] sm:$0xff] %v3570_v32  ;;  %v617_v11 = vsel %vm145_vm0, %v495_v48, 0.0  ;;  %v500_v30 = vmul.f32 %v3570_v32, %v3570_v32  ;;  %v3600_v48 = vsub.f32 %v6499_v2, %v374_v9 }
  0xf1   :  { %6500 = vst [vmem:[#allocation5_spill] sm:$0xff] %v3600_v48 }
  0xf3   :  { %615 = vadd.xlane.f32.xlu2 %v614_v43  ;;  %612 = vadd.xlane.f32.xlu1 %v611_v36  ;;  %v3578_v43 = vsub.f32 %v3017_v60, %v370_v55  ;;  %v375_v36 = vmul.f32 0.020408163, %v3450_v38  ;;  %v499_v60 = vmul.f32 %v3573_v17, %v3573_v17  ;;  %v6497_v38 = vld [vmem:[#allocation4_spill] sm:$0xff]  ;;  %v378_v17 = vmul.f32 0.020408163, %v3477_v44  ;;  %v6503_v44 = vld [vmem:[#allocation7_spill] sm:$0xff] }
  0xf4   :  { %609 = vadd.xlane.f32.xlu0 %v608_v27 }
  0xf5   :  { %6496 = vst [vmem:[#allocation63_spill] sm:$0xff] %v3578_v43  ;;  %v498_v54 = vmul.f32 %v3578_v43, %v3578_v43  ;;  %v3597_v55 = vsub.f32 %v6497_v38, %v375_v36  ;;  %v377_v36 = vmul.f32 0.020408163, %v3484_v5  ;;  %v6505_v5 = vld [vmem:[#allocation8_spill] sm:$0xff] }
  0xf6   :  { %v3556_v3 = vpop.xlane.xlu2 %297  ;;  %v3558_v62 = vpop.xlane.xlu1 %294 }
  0xf7   :  { %v3565_v18 = vpop.xlane.xlu0 %291  ;;  %6498 = vst [vmem:[#allocation4_spill] sm:$0xff] %v3597_v55  ;;  %v626_v52 = vsel %vm145_vm0, %v498_v54, 0.0 }
  0xfb   :  { %624 = vadd.xlane.f32.xlu2 %v623_v49  ;;  %621 = vadd.xlane.f32.xlu1 %v620_v42  ;;  %v632_v49 = vsel %vm145_vm0, %v500_v30, 0.0  ;;  %v629_v42 = vsel %vm145_vm0, %v499_v60, 0.0  ;;  %v503_v30 = vmul.f32 %v3597_v55, %v3597_v55  ;;  %v502_v60 = vmul.f32 %v3600_v48, %v3600_v48  ;;  %v6507_v55 = vld [vmem:[#allocation3_spill] sm:$0xff] }
  0xfc   :  { %618 = vadd.xlane.f32.xlu0 %v617_v11  ;;  %v6501_v11 = vld [vmem:[#allocation2_spill] sm:$0xff]  ;;  %v381_v48 = vmul.f32 0.020408163, %v3504_v50 }
  0xfd   :  { %v3605_v40 = vsub.f32 %v6501_v11, %v373_v61  ;;  %v376_v61 = vmul.f32 0.020408163, %v3448_v35  ;;  %v641_v11 = vsel %vm145_vm0, %v503_v30, 0.0  ;;  %v6509_v50 = vld [vmem:[#allocation10_spill] sm:$0xff] }
  0xfe   :  { %v3583_v27 = vpop.xlane.xlu2 %306  ;;  %v3585_v10 = vpop.xlane.xlu1 %303 }
  0xff   :  { %v3592_v24 = vpop.xlane.xlu0 %300  ;;  %6502 = vst [vmem:[#allocation2_spill] sm:$0xff] %v3605_v40  ;;  %v501_v2 = vmul.f32 %v3605_v40, %v3605_v40  ;;  %v3632_v32 = vsub.f32 %v6507_v55, %v376_v61 }
 0x101   :  { %6508 = vst [vmem:[#allocation3_spill] sm:$0xff] %v3632_v32  ;;  %v635_v35 = vsel %vm145_vm0, %v501_v2, 0.0  ;;  %v504_v2 = vmul.f32 %v3632_v32, %v3632_v32 }
 0x103   :  { %633 = vadd.xlane.f32.xlu2 %v632_v49  ;;  %630 = vadd.xlane.f32.xlu1 %v629_v42  ;;  %v3624_v49 = vsub.f32 %v6503_v44, %v378_v17  ;;  %v3627_v42 = vsub.f32 %v6505_v5, %v377_v36  ;;  %v380_v17 = vmul.f32 0.020408163, %v3511_v6  ;;  %v3651_v5 = vsub.f32 %v6509_v50, %v381_v48  ;;  %v6511_v6 = vld [vmem:[#allocation11_spill] sm:$0xff] }
 0x104   :  { %627 = vadd.xlane.f32.xlu0 %v626_v52  ;;  %v638_v52 = vsel %vm145_vm0, %v502_v60, 0.0  ;;  %v379_v60 = vmul.f32 0.020408163, %v3475_v34  ;;  %v644_v34 = vsel %vm145_vm0, %v504_v2, 0.0  ;;  %v383_v48 = vmul.f32 0.020408163, %v3538_v12 }
 0x105   :  { %6504 = vst [vmem:[#allocation7_spill] sm:$0xff] %v3624_v49  ;;  %v506_v30 = vmul.f32 %v3624_v49, %v3624_v49  ;;  %v505_v55 = vmul.f32 %v3627_v42, %v3627_v42  ;;  %v6513_v49 = vld [vmem:[#allocation6_spill] sm:$0xff] }
 0x106   :  { %v3610_v38 = vpop.xlane.xlu2 %315  ;;  %v3612_v9 = vpop.xlane.xlu1 %312  ;;  %6506 = vst [vmem:[#allocation8_spill] sm:$0xff] %v3627_v42  ;;  %v3659_v33 = vsub.f32 %v6513_v49, %v379_v60  ;;  %v384_v42 = vmul.f32 0.020408163, %v3531_v56  ;;  %v6515_v56 = vld [vmem:[#allocation13_spill] sm:$0xff]  ;;  %v6517_v12 = vld [vmem:[#allocation14_spill] sm:$0xff] }
 0x107   :  { %v3619_v54 = vpop.xlane.xlu0 %309  ;;  %6510 = vst [vmem:[#allocation10_spill] sm:$0xff] %v3651_v5 }
 0x108   :  { %6514 = vst [vmem:[#allocation6_spill] sm:$0xff] %v3659_v33  ;;  %v507_v2 = vmul.f32 %v3659_v33, %v3659_v33 }
 0x10b   :  { %642 = vadd.xlane.f32.xlu2 %v641_v11  ;;  %639 = vadd.xlane.f32.xlu1 %v638_v52  ;;  %v3654_v11 = vsub.f32 %v6511_v6, %v380_v17  ;;  %v650_v52 = vsel %vm145_vm0, %v506_v30, 0.0  ;;  %v509_v30 = vmul.f32 %v3651_v5, %v3651_v5  ;;  %v3678_v6 = vsub.f32 %v6515_v56, %v384_v42  ;;  %v6519_v5 = vld [vmem:[#allocation9_spill] sm:$0xff] }
 0x10c   :  { %636 = vadd.xlane.f32.xlu0 %v635_v35  ;;  %v647_v35 = vsel %vm145_vm0, %v505_v55, 0.0  ;;  %v382_v55 = vmul.f32 0.020408163, %v3502_v21  ;;  %v653_v21 = vsel %vm145_vm0, %v507_v2, 0.0  ;;  %v386_v42 = vmul.f32 0.020408163, %v3565_v18 }
 0x10d   :  { %6512 = vst [vmem:[#allocation11_spill] sm:$0xff] %v3654_v11  ;;  %v508_v49 = vmul.f32 %v3654_v11, %v3654_v11  ;;  %v387_v11 = vmul.f32 0.020408163, %v3558_v62  ;;  %v6521_v2 = vld [vmem:[#allocation16_spill] sm:$0xff]  ;;  %v6523_v18 = vld [vmem:[#allocation17_spill] sm:$0xff] }
 0x10e   :  { %v3637_v44 = vpop.xlane.xlu2 %324  ;;  %v3639_v36 = vpop.xlane.xlu1 %321  ;;  %6516 = vst [vmem:[#allocation13_spill] sm:$0xff] %v3678_v6  ;;  %v3686_v32 = vsub.f32 %v6519_v5, %v382_v55  ;;  %v385_v5 = vmul.f32 0.020408163, %v3529_v23 }
 0x10f   :  { %v3646_v61 = vpop.xlane.xlu0 %318  ;;  %v3703_v62 = vsub.f32 %v6521_v2, %v387_v11  ;;  %v389_v11 = vmul.f32 0.020408163, %v3592_v24  ;;  %v6529_v24 = vld [vmem:[#allocation20_spill] sm:$0xff] }
 0x110   :  { %6520 = vst [vmem:[#allocation9_spill] sm:$0xff] %v3686_v32  ;;  %v510_v55 = vmul.f32 %v3686_v32, %v3686_v32 }
 0x111   :  { %6522 = vst [vmem:[#allocation16_spill] sm:$0xff] %v3703_v62 }
 0x112   :  { %v662_v23 = vsel %vm145_vm0, %v510_v55, 0.0 }
 0x113   :  { %651 = vadd.xlane.f32.xlu2 %v650_v52  ;;  %648 = vadd.xlane.f32.xlu1 %v647_v35  ;;  %v3681_v52 = vsub.f32 %v6517_v12, %v383_v48  ;;  %v659_v35 = vsel %vm145_vm0, %v509_v30, 0.0  ;;  %v512_v48 = vmul.f32 %v3678_v6, %v3678_v6  ;;  %v3706_v12 = vsub.f32 %v6523_v18, %v386_v42 }
 0x114   :  { %645 = vadd.xlane.f32.xlu0 %v644_v34  ;;  %v656_v34 = vsel %vm145_vm0, %v508_v49, 0.0 }
 0x115   :  { %6518 = vst [vmem:[#allocation14_spill] sm:$0xff] %v3681_v52  ;;  %v511_v30 = vmul.f32 %v3681_v52, %v3681_v52  ;;  %v390_v52 = vmul.f32 0.020408163, %v3585_v10 }
 0x116   :  { %v3664_v50 = vpop.xlane.xlu2 %333  ;;  %v3666_v17 = vpop.xlane.xlu1 %330  ;;  %6524 = vst [vmem:[#allocation17_spill] sm:$0xff] %v3706_v12 }
 0x117   :  { %v3673_v60 = vpop.xlane.xlu0 %327 }
 0x11b   :  { %660 = vadd.xlane.f32.xlu2 %v659_v35  ;;  %657 = vadd.xlane.f32.xlu1 %v656_v34  ;;  %v668_v35 = vsel %vm145_vm0, %v512_v48, 0.0  ;;  %v665_v34 = vsel %vm145_vm0, %v511_v30, 0.0  ;;  %v515_v48 = vmul.f32 %v3703_v62, %v3703_v62  ;;  %v514_v30 = vmul.f32 %v3706_v12, %v3706_v12  ;;  %v6531_v62 = vld [vmem:[#allocation15_spill] sm:$0xff] }
 0x11c   :  { %654 = vadd.xlane.f32.xlu0 %v653_v21  ;;  %v6525_v21 = vld [vmem:[#allocation12_spill] sm:$0xff] }
 0x11d   :  { %v3711_v6 = vsub.f32 %v6525_v21, %v385_v5  ;;  %v388_v5 = vmul.f32 0.020408163, %v3556_v3  ;;  %v677_v21 = vsel %vm145_vm0, %v515_v48, 0.0  ;;  %v393_v3 = vmul.f32 0.020408163, %v3612_v9  ;;  %v6533_v9 = vld [vmem:[#allocation22_spill] sm:$0xff] }
 0x11e   :  { %v532_v56 = vpop.xlane.xlu1 %531  ;;  %v3691_v33 = vpop.xlane.xlu2 %534 }
 0x11f   :  { %v3698_v49 = vpop.xlane.xlu0 %336  ;;  %6526 = vst [vmem:[#allocation12_spill] sm:$0xff] %v3711_v6  ;;  %v513_v18 = vmul.f32 %v3711_v6, %v3711_v6  ;;  %v3736_v32 = vsub.f32 %v6531_v62, %v388_v5 }
 0x121   :  { %6532 = vst [vmem:[#allocation15_spill] sm:$0xff] %v3736_v32  ;;  %v671_v12 = vsel %vm145_vm0, %v513_v18, 0.0  ;;  %v3755_v18 = vsub.f32 %v6533_v9, %v393_v3  ;;  %v395_v3 = vmul.f32 0.020408163, %v3646_v61  ;;  %v6541_v61 = vld [vmem:[#allocation26_spill] sm:$0xff] }
 0x123   :  { %669 = vadd.xlane.f32.xlu2 %v668_v35  ;;  %666 = vadd.xlane.f32.xlu1 %v665_v34  ;;  %v6527_v35 = vld [vmem:[#allocation19_spill] sm:$0xff]  ;;  %v3731_v34 = vsub.f32 %v6529_v24, %v389_v11  ;;  %6534 = vst [vmem:[#allocation22_spill] sm:$0xff] %v3755_v18 }
 0x124   :  { %663 = vadd.xlane.f32.xlu0 %v662_v23  ;;  %v3728_v10 = vsub.f32 %v6527_v35, %v390_v52  ;;  %v674_v23 = vsel %vm145_vm0, %v514_v30, 0.0  ;;  %v392_v52 = vmul.f32 0.020408163, %v3619_v54  ;;  %v391_v30 = vmul.f32 0.020408163, %v3583_v27  ;;  %v6535_v54 = vld [vmem:[#allocation23_spill] sm:$0xff] }
 0x125   :  { %6530 = vst [vmem:[#allocation20_spill] sm:$0xff] %v3731_v34  ;;  %v517_v62 = vmul.f32 %v3731_v34, %v3731_v34  ;;  %v396_v34 = vmul.f32 0.020408163, %v3639_v36  ;;  %v6539_v36 = vld [vmem:[#allocation25_spill] sm:$0xff] }
 0x126   :  { %v3716_v2 = vpop.xlane.xlu1 %540  ;;  %v3718_v42 = vpop.xlane.xlu2 %543  ;;  %6528 = vst [vmem:[#allocation19_spill] sm:$0xff] %v3728_v10  ;;  %v518_v48 = vmul.f32 %v3728_v10, %v3728_v10  ;;  %v3758_v24 = vsub.f32 %v6535_v54, %v392_v52  ;;  %v6537_v10 = vld [vmem:[#allocation18_spill] sm:$0xff] }
 0x127   :  { %v538_v55 = vpop.xlane.xlu0 %537  ;;  %v3763_v6 = vsub.f32 %v6537_v10, %v391_v30  ;;  %v722_v30 = vmul.f32 0.020408163, %v532_v56 }
 0x128   :  { %6536 = vst [vmem:[#allocation23_spill] sm:$0xff] %v3758_v24  ;;  %v520_v10 = vmul.f32 %v3758_v24, %v3758_v24 }
 0x129   :  { %6538 = vst [vmem:[#allocation18_spill] sm:$0xff] %v3763_v6  ;;  %v519_v54 = vmul.f32 %v3763_v6, %v3763_v6  ;;  %v3790_v24 = vadd.f32 1e-05, %v722_v30  ;;  %v724_v30 = vmul.f32 0.020408163, %v538_v55 }
 0x12b   :  { %678 = vadd.xlane.f32.xlu2 %v677_v21  ;;  %675 = vadd.xlane.f32.xlu1 %v674_v23  ;;  %v686_v21 = vsel %vm145_vm0, %v518_v48, 0.0  ;;  %v683_v23 = vsel %vm145_vm0, %v517_v62, 0.0  ;;  %v521_v48 = vmul.f32 %v3755_v18, %v3755_v18  ;;  %v394_v62 = vmul.f32 0.020408163, %v3610_v38 }
 0x12c   :  { %672 = vadd.xlane.f32.xlu0 %v671_v12  ;;  %v516_v12 = vmul.f32 %v3736_v32, %v3736_v32  ;;  %v692_v18 = vsel %vm145_vm0, %v520_v10, 0.0  ;;  %v6543_v32 = vld [vmem:[#allocation21_spill] sm:$0xff]  ;;  %v723_v38 = vmul.f32 0.020408163, %v3691_v33  ;;  %v689_v56 = vsel %vm145_vm0, %v519_v54, 0.0 }
 0x12d   :  { %v3788_v40 = vsub.f32 %v6543_v32, %v394_v62  ;;  %v397_v33 = vmul.f32 0.020408163, %v3637_v44  ;;  %2650 = vrsqrt.f32 %v3790_v24  ;;  %vm856_vm2 = vweird.f32 %v3790_v24 }
 0x12e   :  { %v3741_v35 = vpop.xlane.xlu2 %552  ;;  %v3743_v11 = vpop.xlane.xlu1 %549  ;;  %v680_v27 = vsel %vm145_vm0, %v516_v12, 0.0 }
 0x12f   :  { %v3750_v5 = vpop.xlane.xlu0 %546  ;;  %6544 = vst [vmem:[#allocation21_spill] sm:$0xff] %v3788_v40 }
 0x133   :  { %687 = vadd.xlane.f32.xlu2 %v686_v21  ;;  %684 = vadd.xlane.f32.xlu1 %v683_v23  ;;  %v3780_v21 = vsub.f32 %v6539_v36, %v396_v34  ;;  %v3783_v23 = vsub.f32 %v6541_v61, %v395_v3  ;;  %v399_v34 = vmul.f32 0.020408163, %v3666_v17  ;;  %v398_v3 = vmul.f32 0.020408163, %v3673_v60  ;;  %v6546_v61 = vld [vmem:[#allocation28_spill] sm:$0xff]  ;;  %v3827_v55 = vpop.eup %2650 }
 0x134   :  { %681 = vadd.xlane.f32.xlu0 %v680_v27  ;;  %v695_v27 = vsel %vm145_vm0, %v521_v48, 0.0  ;;  %v522_v17 = vmul.f32 %v3788_v40, %v3788_v40  ;;  %v725_v60 = vmul.f32 0.020408163, %v3716_v2  ;;  %vm857_vm1 = vweird.f32 %v3827_v55 }
 0x135   :  { %6540 = vst [vmem:[#allocation25_spill] sm:$0xff] %v3780_v21  ;;  %v524_v32 = vmul.f32 %v3780_v21, %v3780_v21  ;;  %v523_v10 = vmul.f32 %v3783_v23, %v3783_v23  ;;  %v3812_v54 = vsub.f32 %v3256_v45, %v399_v34  ;;  %v726_v45 = vmul.f32 0.020408163, %v3718_v42  ;;  %vm3935_vm4 = vmor %vm856_vm2, %vm857_vm1 }
 0x136   :  { %v3768_v9 = vpop.xlane.xlu2 %561  ;;  %v3770_v52 = vpop.xlane.xlu1 %558  ;;  %6542 = vst [vmem:[#allocation26_spill] sm:$0xff] %v3783_v23  ;;  %v6548_v23 = vld [vmem:[#allocation24_spill] sm:$0xff]  ;;  %v698_v21 = vsel %vm145_vm0, %v522_v17, 0.0  ;;  %v3824_v2 = vadd.f32 1e-05, %v725_v60  ;;  %v2778_v60 = vmov 0  }
 0x137   :  { %v556_v12 = vpop.xlane.xlu0 %555  ;;  %6545 = vst [vmem:[#allocation64_spill] sm:$0xff] %v3812_v54  ;;  %v701_v44 = vsel %vm145_vm0, %v523_v10, 0.0  ;;  %v3829_v34 = vadd.f32 1e-05, %v724_v30  ;;  %2647 = vset.pattern.permute.xlu2 %v2778_v60  ;;  %2648 = vset.pattern.permute.xlu0 %v2778_v60  ;;  %v400_v42 = vmul.f32 0.020408163, %v3664_v50 }
 0x138   :  { %2649 = vset.pattern.permute.xlu1 %v2778_v60  ;;  %v3846_v30 = vadd.f32 1e-05, %v726_v45  ;;  %vm886_vm9 = vweird.f32 %v3824_v2 }
 0x139   :  { %vm876_vm10 = vweird.f32 %v3829_v34 }
 0x13a   :  { %vm896_vm15 = vweird.f32 %v3846_v30 }
 0x13b   :  { %696 = vadd.xlane.f32.xlu2 %v695_v27  ;;  %693 = vadd.xlane.f32.xlu1 %v692_v18  ;;  %v3806_v18 = vadd.f32 1e-05, %v723_v38  ;;  %v3815_v27 = vsub.f32 %v6546_v61, %v398_v3  ;;  %v3820_v38 = vsub.f32 %v6548_v23, %v397_v33  ;;  %v401_v3 = vmul.f32 0.020408163, %v3698_v49 }
 0x13c   :  { %690 = vadd.xlane.f32.xlu0 %v689_v56  ;;  %v704_v56 = vsel %vm145_vm0, %v524_v32, 0.0  ;;  %v730_v32 = vmul.f32 0.020408163, %v556_v12  ;;  %v527_v33 = vmul.f32 %v3812_v54, %v3812_v54  ;;  %v851_v12 = vmul.f32 %v3827_v55, %v3790_v24 }
 0x13d   :  { %6547 = vst [vmem:[#allocation28_spill] sm:$0xff] %v3815_v27  ;;  %2652 = vrsqrt.f32 %v3806_v18  ;;  %v526_v17 = vmul.f32 %v3815_v27, %v3815_v27  ;;  %v525_v49 = vmul.f32 %v3820_v38, %v3820_v38  ;;  %vm866_vm3 = vweird.f32 %v3806_v18 }
 0x13e   :  { %v3796_v36 = vpop.xlane.xlu2 %570  ;;  %v3798_v48 = vpop.xlane.xlu1 %567  ;;  %6549 = vst [vmem:[#allocation24_spill] sm:$0xff] %v3820_v38  ;;  %2654 = vrsqrt.f32 %v3824_v2  ;;  %v3855_v27 = vadd.f32 1e-05, %v730_v32  ;;  %v713_v60 = vsel %vm145_vm0, %v527_v33, 0.0  ;;  %v6552_v38 = vld [vmem:[#allocation27_spill] sm:$0xff]  ;;  %v852_v6 = vmul.f32 %v3827_v55, %v851_v12 }
 0x13f   :  { %v565_v62 = vpop.xlane.xlu0 %564  ;;  %2656 = vrsqrt.f32 %v3829_v34  ;;  %v710_v54 = vsel %vm145_vm0, %v526_v17, 0.0  ;;  %v3860_v40 = vsub.f32 %v6552_v38, %v400_v42  ;;  %v707_v45 = vsel %vm145_vm0, %v525_v49, 0.0 }
 0x140   :  { %2658 = vrsqrt.f32 %v3846_v30  ;;  %v733_v38 = vmul.f32 0.020408163, %v565_v62  ;;  %v729_v49 = vmul.f32 0.020408163, %v3741_v35  ;;  %v728_v62 = vmul.f32 0.020408163, %v3743_v11 }
 0x141   :  { %6553 = vst [vmem:[#allocation27_spill] sm:$0xff] %v3860_v40  ;;  %2660 = vrsqrt.f32 %v3855_v27  ;;  %v735_v51 = vmul.f32 0.020408163, %v3796_v36  ;;  %vm936_vm1 = vweird.f32 %v3855_v27 }
 0x142   :  { %v3892_v35 = vadd.f32 1e-05, %v733_v38  ;;  %v3900_v20 = vadd.f32 1e-05, %v728_v62 }
 0x143   :  { %705 = vadd.xlane.f32.xlu2 %v704_v56  ;;  %702 = vadd.xlane.f32.xlu1 %v701_v44  ;;  %v3848_v61 = vpop.eup %2652  ;;  %v727_v56 = vmul.f32 0.020408163, %v3750_v5  ;;  %v6550_v44 = vld [vmem:[#allocation31_spill] sm:$0xff] }
 0x144   :  { %699 = vadd.xlane.f32.xlu0 %v698_v21  ;;  %v3853_v50 = vsub.f32 %v6550_v44, %v401_v3  ;;  %v861_v5 = vmul.f32 %v3848_v61, %v3806_v18  ;;  %v3869_v32 = vpop.eup %2654  ;;  %v853_v44 = vmul.f32 0.5, %v852_v6  ;;  %vm867_vm5 = vweird.f32 %v3848_v61 }
 0x145   :  { %v3867_v3 = vadd.f32 1e-05, %v727_v56  ;;  %v3878_v42 = vpop.eup %2656  ;;  %v528_v56 = vmul.f32 %v3860_v40, %v3860_v40  ;;  %v3895_v40 = vadd.f32 1e-05, %v729_v49  ;;  %vm887_vm6 = vweird.f32 %v3869_v32  ;;  %vm3972_vm7 = vmor %vm866_vm3, %vm867_vm5 }
 0x146   :  { %v3832_v23 = vpop.xlane.xlu2 %579  ;;  %v3834_v10 = vpop.xlane.xlu1 %576  ;;  %6551 = vst [vmem:[#allocation31_spill] sm:$0xff] %v3853_v50  ;;  %v3985_v18 = vadd.f32 1e-05, %v735_v51  ;;  %vm877_vm8 = vweird.f32 %v3878_v42  ;;  %vm4005_vm11 = vmor %vm886_vm9, %vm887_vm6 }
 0x147   :  { %v574_v21 = vpop.xlane.xlu0 %573  ;;  %2662 = vrsqrt.f32 %v3867_v3  ;;  %v3888_v26 = vpop.eup %2658  ;;  %v716_v6 = vsel %vm145_vm0, %v528_v56, 0.0  ;;  %vm4019_vm13 = vmor %vm876_vm10, %vm877_vm8  ;;  %vm906_vm5 = vweird.f32 %v3867_v3  ;;  %vm966_vm8 = vweird.f32 %v3892_v35 }
 0x148   :  { %v3898_v11 = vpop.eup %2660  ;;  %v891_v38 = vmul.f32 %v3888_v26, %v3846_v30  ;;  %2664 = vrsqrt.f32 %v3892_v35  ;;  %vm897_vm12 = vweird.f32 %v3888_v26 }
 0x149   :  { %2666 = vrsqrt.f32 %v3895_v40  ;;  %vm937_vm14 = vweird.f32 %v3898_v11  ;;  %vm4056_vm2 = vmor %vm896_vm15, %vm897_vm12  ;;  %vm916_vm12 = vweird.f32 %v3900_v20 }
 0x14a   :  { %2668 = vrsqrt.f32 %v3900_v20  ;;  %v892_v14 = vmul.f32 %v3888_v26, %v891_v38  ;;  %vm4062_vm3 = vmor %vm936_vm1, %vm937_vm14 }
 0x14b   :  { %714 = vadd.xlane.f32.xlu2 %v713_v60  ;;  %711 = vadd.xlane.f32.xlu1 %v710_v54  ;;  %v529_v54 = vmul.f32 %v3853_v50, %v3853_v50  ;;  %v862_v60 = vmul.f32 %v3848_v61, %v861_v5  ;;  %v871_v50 = vmul.f32 %v3878_v42, %v3829_v34  ;;  %v854_v5 = vsub.f32 1.5, %v853_v44 }
 0x14c   :  { %708 = vadd.xlane.f32.xlu0 %v707_v45  ;;  %v881_v45 = vmul.f32 %v3869_v32, %v3824_v2  ;;  %v732_v44 = vmul.f32 0.020408163, %v3768_v9 }
 0x14d   :  { %v719_v7 = vsel %vm145_vm0, %v529_v54, 0.0  ;;  %v863_v43 = vmul.f32 0.5, %v862_v60  ;;  %v872_v37 = vmul.f32 %v3878_v42, %v871_v50  ;;  %v736_v54 = vmul.f32 0.020408163, %v574_v21  ;;  %v3911_v56 = vpop.eup %2662 }
 0x14e   :  { %v3872_v33 = vpop.xlane.xlu2 %588  ;;  %v3874_v17 = vpop.xlane.xlu1 %585  ;;  %v882_v22 = vmul.f32 %v3869_v32, %v881_v45  ;;  %v931_v60 = vmul.f32 %v3898_v11, %v3855_v27  ;;  %v731_v21 = vmul.f32 0.020408163, %v3770_v52  ;;  %v855_v45 = vmul.f32 %v3827_v55, %v854_v5  ;;  %v1490_v5 = vld [vmem:[%s6340_s2] sm:$0xff]  ;;  %v1495_v27 = vld [vmem:[%s6340_s2 + $0x28] sm:$0xff] }
 0x14f   :  { %v583_v12 = vpop.xlane.xlu0 %582  ;;  %v864_v50 = vsub.f32 1.5, %v863_v43  ;;  %v873_v9 = vmul.f32 0.5, %v872_v37  ;;  %v901_v63 = vmul.f32 %v3911_v56, %v3867_v3  ;;  %v3927_v31 = vadd.f32 1e-05, %v736_v54  ;;  %v3939_v52 = vpop.eup %2664 }
 0x150   :  { %v3930_v43 = vadd.f32 1e-05, %v732_v44  ;;  %v932_v0 = vmul.f32 %v3898_v11, %v931_v60  ;;  %v3941_v37 = vadd.f32 1e-05, %v731_v21  ;;  %v859_v24 = vsel %vm3935_vm4, %v3827_v55, %v855_v45  ;;  %v3951_v54 = vpop.eup %2666 }
 0x151   :  { %v865_v38 = vmul.f32 %v3848_v61, %v864_v50  ;;  %v893_v60 = vmul.f32 0.5, %v892_v14  ;;  %v3955_v21 = vpop.eup %2668  ;;  %v902_v55 = vmul.f32 %v3911_v56, %v901_v63  ;;  %2670 = vrsqrt.f32 %v3927_v31 }
 0x152   :  { %v739_v45 = vmul.f32 0.020408163, %v583_v12  ;;  %2672 = vrsqrt.f32 %v3930_v43  ;;  %v961_v14 = vmul.f32 %v3939_v52, %v3892_v35  ;;  %v1554_v46 = vmul.f32 %v1490_v5, %v859_v24 }
 0x153   :  { %720 = vadd.xlane.f32.xlu1 %v719_v7  ;;  %v921_v12 = vmul.f32 %v3951_v54, %v3895_v40  ;;  %2674 = vrsqrt.f32 %v3941_v37  ;;  %v894_v24 = vsub.f32 1.5, %v893_v60  ;;  %v911_v5 = vmul.f32 %v3955_v21, %v3900_v20 }
 0x154   :  { %717 = vadd.xlane.f32.xlu0 %v716_v6  ;;  %v883_v6 = vmul.f32 0.5, %v882_v22  ;;  %v874_v22 = vsub.f32 1.5, %v873_v9  ;;  %v869_v9 = vsel %vm3972_vm7, %v3848_v61, %v865_v38  ;;  %v903_v57 = vmul.f32 0.5, %v902_v55 }
 0x155   :  { %v3991_v53 = vadd.f32 1e-05, %v739_v45  ;;  %v962_v51 = vmul.f32 %v3939_v52, %v961_v14  ;;  %v922_v60 = vmul.f32 %v3951_v54, %v921_v12  ;;  %v1555_v55 = vmul.f32 %v1491_v4, %v869_v9 }
 0x156   :  { %v3907_v49 = vpop.xlane.xlu2 %597  ;;  %v3909_v7 = vpop.xlane.xlu1 %594  ;;  %v884_v44 = vsub.f32 1.5, %v883_v6  ;;  %v933_v6 = vmul.f32 0.5, %v932_v0  ;;  %v734_v0 = vmul.f32 0.020408163, %v3798_v48  ;;  %v875_v48 = vmul.f32 %v3878_v42, %v874_v22 }
 0x157   :  { %v3917_v62 = vpop.xlane.xlu0 %591  ;;  %v3998_v38 = vpop.eup %2670  ;;  %v912_v34 = vmul.f32 %v3955_v21, %v911_v5  ;;  %2676 = vrsqrt.f32 %v3985_v18  ;;  %v895_v45 = vmul.f32 %v3888_v26, %v894_v24  ;;  %v904_v14 = vsub.f32 1.5, %v903_v57 }
 0x158   :  { %v885_v19 = vmul.f32 %v3869_v32, %v884_v44  ;;  %v934_v61 = vsub.f32 1.5, %v933_v6  ;;  %v4001_v44 = vadd.f32 1e-05, %v734_v0  ;;  %v4010_v2 = vpop.eup %2672  ;;  %2678 = vrsqrt.f32 %v3991_v53 }
 0x159   :  { %v4024_v6 = vpop.eup %2674  ;;  %v742_v63 = vmul.f32 0.020408163, %v3917_v62  ;;  %v963_v9 = vmul.f32 0.5, %v962_v51  ;;  %v991_v57 = vmul.f32 %v3998_v38, %v3927_v31  ;;  %v1492_v62 = vld [vmem:[%s6340_s2 + $0x10] sm:$0xff]  ;;  %v951_v22 = vmul.f32 %v4010_v2, %v3930_v43 }
 0x15a   :  { %v935_v5 = vmul.f32 %v3898_v11, %v934_v61  ;;  %2680 = vrsqrt.f32 %v4001_v44  ;;  %v941_v51 = vmul.f32 %v4024_v6, %v3941_v37  ;;  %vm907_vm4 = vweird.f32 %v3911_v56 }
 0x15b   :  { %v4060_v30 = vadd.f32 1e-05, %v742_v63  ;;  %vm4090_vm6 = vmor %vm906_vm5, %vm907_vm4  ;;  %vm967_vm7 = vweird.f32 %v3939_v52  ;;  %vm917_vm9 = vweird.f32 %v3955_v21  ;;  %vm997_vm1 = vweird.f32 %v3998_v38 }
 0x15c   :  { %v939_v63 = vsel %vm4062_vm3, %v3898_v11, %v935_v5  ;;  %v942_v5 = vmul.f32 %v4024_v6, %v941_v51  ;;  %vm4121_vm10 = vmor %vm966_vm8, %vm967_vm7  ;;  %vm947_vm4 = vweird.f32 %v4024_v6  ;;  %vm957_vm5 = vweird.f32 %v4010_v2 }
 0x15d   :  { %2682 = vrsqrt.f32 %v4060_v30  ;;  %vm4144_vm14 = vmor %vm916_vm12, %vm917_vm9  ;;  %vm956_vm7 = vweird.f32 %v3930_v43 }
 0x15e   :  { %v3959_v25 = vpop.xlane.xlu2 %606  ;;  %v3961_v50 = vpop.xlane.xlu1 %603  ;;  %vm958_vm9 = vmor %vm956_vm7, %vm957_vm5  ;;  %vm1056_vm5 = vweird.f32 %v4060_v30 }
 0x15f   :  { %v3966_v36 = vpop.xlane.xlu0 %600 }
 0x163   :  { %1684 = vperm.xlu2 %2647, %v1554_v46   ;;  %v889_v46 = vsel %vm4005_vm11, %v3869_v32, %v885_v19  ;;  %v1493_v19 = vld [vmem:[%s6340_s2 + $0x18] sm:$0xff]  ;;  %v879_v32 = vsel %vm4019_vm13, %v3878_v42, %v875_v48  ;;  %v923_v42 = vmul.f32 0.5, %v922_v60  ;;  %v913_v48 = vmul.f32 0.5, %v912_v34 }
 0x164   :  { %v1557_v4 = vmul.f32 %v1493_v19, %v889_v46  ;;  %v1556_v13 = vmul.f32 %v1492_v62, %v879_v32  ;;  %v905_v60 = vmul.f32 %v3911_v56, %v904_v14  ;;  %v964_v34 = vsub.f32 1.5, %v963_v9  ;;  %v1498_v19 = vld [vmem:[%s6340_s2 + $0x40] sm:$0xff] }
 0x165   :  { %v992_v46 = vmul.f32 %v3998_v38, %v991_v57  ;;  %v899_v14 = vsel %vm4056_vm2, %v3888_v26, %v895_v45  ;;  %v1494_v32 = vld [vmem:[%s6340_s2 + $0x20] sm:$0xff]  ;;  %v952_v57 = vmul.f32 %v4010_v2, %v951_v22  ;;  %v924_v11 = vsub.f32 1.5, %v923_v42 }
 0x166   :  { %v4028_v12 = vpop.xlane.xlu2 %615  ;;  %v4030_v0 = vpop.xlane.xlu1 %612  ;;  %v914_v62 = vsub.f32 1.5, %v913_v48  ;;  %v1562_v22 = vmul.f32 %v1498_v19, %v939_v63  ;;  %v909_v42 = vsel %vm4090_vm6, %v3911_v56, %v905_v60  ;;  %v965_v29 = vmul.f32 %v3939_v52, %v964_v34 }
 0x167   :  { %v4040_v24 = vpop.xlane.xlu0 %609  ;;  %v993_v48 = vmul.f32 0.5, %v992_v46  ;;  %v953_v63 = vmul.f32 0.5, %v952_v57  ;;  %v737_v56 = vmul.f32 0.020408163, %v3834_v10  ;;  %v943_v60 = vmul.f32 0.5, %v942_v5 }
 0x168   :  { %1689 = vperm.xlu0 %2648, %v1555_v55   ;;  %v4068_v55 = vpop.eup %2676  ;;  %v1559_v34 = vmul.f32 %v1495_v27, %v909_v42  ;;  %v915_v57 = vmul.f32 %v3955_v21, %v914_v62  ;;  %v925_v35 = vmul.f32 %v3951_v54, %v924_v11  ;;  %vm927_vm11 = vweird.f32 %v3951_v54 }
 0x169   :  { %v4083_v9 = vpop.eup %2678  ;;  %v981_v19 = vmul.f32 %v4068_v55, %v3985_v18  ;;  %v994_v10 = vsub.f32 1.5, %v993_v48  ;;  %vm926_vm13 = vweird.f32 %v3895_v40  ;;  %v4140_v62 = vadd.f32 1e-05, %v737_v56 }
 0x16a   :  { %v4094_v26 = vpop.eup %2680  ;;  %v1021_v51 = vmul.f32 %v4083_v9, %v3991_v53  ;;  %v741_v42 = vmul.f32 0.020408163, %v3872_v33  ;;  %vm4152_vm15 = vmor %vm926_vm13, %vm927_vm11  ;;  %v1496_v33 = vld [vmem:[%s6340_s2 + $0x30] sm:$0xff]  ;;  %vm996_vm2 = vweird.f32 %v3927_v31  ;;  %vm946_vm6 = vweird.f32 %v3941_v37 }
 0x16b   :  { %1699 = vperm.xlu2 %2647, %v1557_v4   ;;  %v971_v46 = vmul.f32 %v4094_v26, %v4001_v44  ;;  %v1501_v4 = vld [vmem:[%s6340_s2 + $0x58] sm:$0xff]  ;;  %v982_v11 = vmul.f32 %v4068_v55, %v981_v19  ;;  %v929_v56 = vsel %vm4152_vm15, %v3951_v54, %v925_v35  ;;  %2684 = vrsqrt.f32 %v4140_v62  ;;  %vm4186_vm3 = vmor %vm996_vm2, %vm997_vm1 }
 0x16c   :  { %1694 = vperm.xlu1 %2649, %v1556_v13   ;;  %v1558_v13 = vmul.f32 %v1494_v32, %v899_v14  ;;  %v738_v14 = vmul.f32 0.020408163, %v3832_v23  ;;  %v1022_v5 = vmul.f32 %v4083_v9, %v1021_v51  ;;  %v969_v23 = vsel %vm4121_vm10, %v3939_v52, %v965_v29  ;;  %vm4208_vm8 = vmor %vm946_vm6, %vm947_vm4 }
 0x16d   :  { %v954_v29 = vsub.f32 1.5, %v953_v63  ;;  %v944_v52 = vsub.f32 1.5, %v943_v60  ;;  %v1565_v19 = vmul.f32 %v1501_v4, %v969_v23  ;;  %v919_v63 = vsel %vm4144_vm14, %v3955_v21, %v915_v57  ;;  %v1497_v60 = vld [vmem:[%s6340_s2 + $0x38] sm:$0xff] }
 0x16e   :  { %v4097_v45 = vpop.xlane.xlu2 %624  ;;  %v4099_v3 = vpop.xlane.xlu1 %621  ;;  %v4156_v48 = vadd.f32 1e-05, %v738_v14  ;;  %v995_v21 = vmul.f32 %v3998_v38, %v994_v10  ;;  %v983_v32 = vmul.f32 0.5, %v982_v11  ;;  %v740_v54 = vmul.f32 0.020408163, %v3874_v17 }
 0x16f   :  { %v4106_v61 = vpop.xlane.xlu0 %618  ;;  %v4183_v35 = vadd.f32 1e-05, %v741_v42  ;;  %v1561_v23 = vmul.f32 %v1497_v60, %v929_v56  ;;  %v745_v4 = vmul.f32 0.020408163, %v3966_v36  ;;  %v945_v10 = vmul.f32 %v4024_v6, %v944_v52  ;;  %v1504_v36 = vld [vmem:[%s6340_s2 + $0x70] sm:$0xff]  ;;  %v1499_v56 = vld [vmem:[%s6340_s2 + $0x48] sm:$0xff] }
 0x170   :  { %1724 = vperm.xlu0 %2648, %v1562_v22   ;;  %v4136_v22 = vpop.eup %2682  ;;  %v955_v31 = vmul.f32 %v4010_v2, %v954_v29  ;;  %v4202_v52 = vadd.f32 1e-05, %v740_v54  ;;  %v984_v29 = vsub.f32 1.5, %v983_v32  ;;  %2686 = vrsqrt.f32 %v4156_v48 }
 0x171   :  { %v1051_v14 = vmul.f32 %v4136_v22, %v4060_v30  ;;  %v4212_v40 = vpop.eup %2684  ;;  %2688 = vrsqrt.f32 %v4183_v35  ;;  %v4215_v37 = vadd.f32 1e-05, %v745_v4  ;;  %vm1027_vm10 = vweird.f32 %v4083_v9  ;;  %v1510_v30 = vld [vmem:[%s6340_s2 + $0xa0] sm:$0xff] }
 0x172   :  { %2690 = vrsqrt.f32 %v4202_v52  ;;  %vm1026_vm11 = vweird.f32 %v3991_v53  ;;  %v748_v54 = vmul.f32 0.020408163, %v4040_v24  ;;  %vm977_vm13 = vweird.f32 %v4094_v26 }
 0x173   :  { %1704 = vperm.xlu2 %2647, %v1558_v13   ;;  %v972_v13 = vmul.f32 %v4094_v26, %v971_v46  ;;  %v1023_v46 = vmul.f32 0.5, %v1022_v5  ;;  %v1560_v5 = vmul.f32 %v1496_v33, %v919_v63  ;;  %v1052_v17 = vmul.f32 %v4136_v22, %v1051_v14  ;;  %vm4242_vm12 = vmor %vm1026_vm11, %vm1027_vm10 }
 0x174   :  { %1709 = vperm.xlu1 %2649, %v1559_v34   ;;  %v949_v33 = vsel %vm4208_vm8, %v4024_v6, %v945_v10  ;;  %v959_v14 = vsel %vm958_vm9, %v4010_v2, %v955_v31  ;;  %v744_v6 = vmul.f32 0.020408163, %v3907_v49  ;;  %2692 = vrsqrt.f32 %v4215_v37  ;;  %v1507_v49 = vld [vmem:[%s6340_s2 + $0x88] sm:$0xff] }
 0x175   :  { %v973_v57 = vmul.f32 0.5, %v972_v13  ;;  %v1024_v11 = vsub.f32 1.5, %v1023_v46  ;;  %v999_v13 = vsel %vm4186_vm3, %v3998_v38, %v995_v21  ;;  %v1053_v60 = vmul.f32 0.5, %v1052_v17  ;;  %v1500_v21 = vld [vmem:[%s6340_s2 + $0x50] sm:$0xff] }
 0x176   :  { %v4158_v51 = vpop.xlane.xlu2 %633  ;;  %v4160_v27 = vpop.xlane.xlu1 %630  ;;  %v1568_v43 = vmul.f32 %v1504_v36, %v999_v13  ;;  %v1564_v2 = vmul.f32 %v1500_v21, %v959_v14  ;;  %v985_v24 = vmul.f32 %v4068_v55, %v984_v29  ;;  %vm987_vm14 = vweird.f32 %v4068_v55 }
 0x177   :  { %v4176_v34 = vpop.xlane.xlu0 %627  ;;  %v974_v42 = vsub.f32 1.5, %v973_v57  ;;  %v1025_v32 = vmul.f32 %v4083_v9, %v1024_v11  ;;  %v1563_v57 = vmul.f32 %v1499_v56, %v949_v33  ;;  %v4248_v4 = vpop.eup %2686  ;;  %v1054_v20 = vsub.f32 1.5, %v1053_v60  ;;  %v1503_v56 = vld [vmem:[%s6340_s2 + $0x68] sm:$0xff] }
 0x178   :  { %1739 = vperm.xlu0 %2648, %v1565_v19   ;;  %v4258_v10 = vpop.eup %2688  ;;  %vm976_vm15 = vweird.f32 %v4001_v44  ;;  %v1001_v31 = vmul.f32 %v4212_v40, %v4140_v62  ;;  %v743_v11 = vmul.f32 0.020408163, %v3909_v7  ;;  %vm986_vm1 = vweird.f32 %v3985_v18  ;;  %v1502_v18 = vld [vmem:[%s6340_s2 + $0x60] sm:$0xff] }
 0x179   :  { %v1029_v53 = vsel %vm4242_vm12, %v4083_v9, %v1025_v32  ;;  %v4265_v9 = vadd.f32 1e-05, %v748_v54  ;;  %vm4269_vm2 = vmor %vm976_vm15, %vm977_vm13  ;;  %v4273_v13 = vpop.eup %2690  ;;  %v1011_v44 = vmul.f32 %v4248_v4, %v4156_v48  ;;  %v4291_v38 = vadd.f32 1e-05, %v744_v6 }
 0x17a   :  { %v1571_v29 = vmul.f32 %v1507_v49, %v1029_v53  ;;  %vm4287_vm3 = vmor %vm986_vm1, %vm987_vm14  ;;  %v1055_v60 = vmul.f32 %v4136_v22, %v1054_v20  ;;  %vm1057_vm4 = vweird.f32 %v4136_v22  ;;  %v4305_v14 = vpop.eup %2692  ;;  %v1002_v21 = vmul.f32 %v4212_v40, %v1001_v31 }
 0x17b   :  { %1714 = vperm.xlu2 %2647, %v1560_v5   ;;  %v4308_v32 = vadd.f32 1e-05, %v743_v11  ;;  %v747_v6 = vmul.f32 0.020408163, %v3959_v25  ;;  %2694 = vrsqrt.f32 %v4265_v9  ;;  %v1012_v54 = vmul.f32 %v4248_v4, %v1011_v44  ;;  %vm1058_vm6 = vmor %vm1056_vm5, %vm1057_vm4 }
 0x17c   :  { %1719 = vperm.xlu1 %2649, %v1561_v23   ;;  %v975_v23 = vmul.f32 %v4094_v26, %v974_v42  ;;  %v1041_v5 = vmul.f32 %v4258_v10, %v4183_v35  ;;  %2696 = vrsqrt.f32 %v4291_v38  ;;  %v1059_v25 = vsel %vm1058_vm6, %v4136_v22, %v1055_v60 }
 0x17d   :  { %v1003_v20 = vmul.f32 0.5, %v1002_v21  ;;  %2698 = vrsqrt.f32 %v4308_v32  ;;  %v4327_v53 = vadd.f32 1e-05, %v747_v6  ;;  %v746_v49 = vmul.f32 0.020408163, %v3961_v50 }
 0x17e   :  { %v4217_v19 = vpop.xlane.xlu2 %642  ;;  %v4219_v63 = vpop.xlane.xlu1 %639  ;;  %v979_v7 = vsel %vm4269_vm2, %v4094_v26, %v975_v23  ;;  %v989_v26 = vsel %vm4287_vm3, %v4068_v55, %v985_v24  ;;  %v1031_v23 = vmul.f32 %v4273_v13, %v4202_v52  ;;  %v1574_v22 = vmul.f32 %v1510_v30, %v1059_v25 }
 0x17f   :  { %v4229_v46 = vpop.xlane.xlu0 %636  ;;  %v1566_v55 = vmul.f32 %v1502_v18, %v979_v7  ;;  %v1013_v17 = vmul.f32 0.5, %v1012_v54  ;;  %v1042_v44 = vmul.f32 %v4258_v10, %v1041_v5  ;;  %v1004_v50 = vsub.f32 1.5, %v1003_v20 }
 0x180   :  { %1754 = vperm.xlu0 %2648, %v1568_v43   ;;  %2700 = vrsqrt.f32 %v4327_v53  ;;  %vm1016_vm7 = vweird.f32 %v4156_v48  ;;  %v754_v25 = vmul.f32 0.020408163, %v4176_v34  ;;  %vm1007_vm8 = vweird.f32 %v4212_v40 }
 0x181   :  { %v4334_v11 = vpop.eup %2694  ;;  %v1014_v6 = vsub.f32 1.5, %v1013_v17  ;;  %v1005_v30 = vmul.f32 %v4212_v40, %v1004_v50  ;;  %vm1006_vm9 = vweird.f32 %v4140_v62  ;;  %vm1047_vm10 = vweird.f32 %v4258_v10  ;;  %v1505_v17 = vld [vmem:[%s6340_s2 + $0x78] sm:$0xff] }
 0x182   :  { %v4341_v42 = vpop.eup %2696  ;;  %v1111_v60 = vmul.f32 %v4334_v11, %v4265_v9  ;;  %vm1037_vm11 = vweird.f32 %v4273_v13  ;;  %vm1046_vm12 = vweird.f32 %v4183_v35  ;;  %vm1008_vm13 = vmor %vm1006_vm9, %vm1007_vm8  ;;  %vm1036_vm14 = vweird.f32 %v4202_v52  ;;  %v1509_v52 = vld [vmem:[%s6340_s2 + $0x98] sm:$0xff] }
 0x183   :  { %1729 = vperm.xlu2 %2647, %v1563_v57   ;;  %v751_v57 = vmul.f32 0.020408163, %v4106_v61  ;;  %v1081_v61 = vmul.f32 %v4305_v14, %v4215_v37  ;;  %v4351_v21 = vpop.eup %2698  ;;  %v1009_v47 = vsel %vm1008_vm13, %v4212_v40, %v1005_v30  ;;  %vm1017_vm15 = vweird.f32 %v4248_v4  ;;  %vm4468_vm6 = vmor %vm1046_vm12, %vm1047_vm10 }
 0x184   :  { %1734 = vperm.xlu1 %2649, %v1564_v2   ;;  %v1567_v2 = vmul.f32 %v1503_v56, %v989_v26  ;;  %v4344_v26 = vadd.f32 1e-05, %v746_v49  ;;  %vm4408_vm1 = vmor %vm1016_vm7, %vm1017_vm15  ;;  %v757_v30 = vmul.f32 0.020408163, %v4229_v46  ;;  %vm1087_vm2 = vweird.f32 %v4305_v14 }
 0x185   :  { %v4330_v24 = vadd.f32 1e-05, %v751_v57  ;;  %v1082_v18 = vmul.f32 %v4305_v14, %v1081_v61  ;;  %v750_v57 = vmul.f32 0.020408163, %v4028_v12  ;;  %v1061_v12 = vmul.f32 %v4351_v21, %v4308_v32  ;;  %vm4481_vm8 = vmor %vm1036_vm14, %vm1037_vm11 }
 0x186   :  { %v4277_v36 = vpop.xlane.xlu2 %651  ;;  %v4293_v43 = vpop.xlane.xlu1 %648  ;;  %v1112_v61 = vmul.f32 %v4334_v11, %v1111_v60  ;;  %vm1086_vm3 = vweird.f32 %v4215_v37  ;;  %v4451_v37 = vadd.f32 1e-05, %v757_v30  ;;  %vm1077_vm5 = vweird.f32 %v4341_v42 }
 0x187   :  { %v4295_v33 = vpop.xlane.xlu0 %645  ;;  %2702 = vrsqrt.f32 %v4330_v24  ;;  %v1083_v5 = vmul.f32 0.5, %v1082_v18  ;;  %vm4446_vm4 = vmor %vm1086_vm3, %vm1087_vm2  ;;  %vm1066_vm7 = vweird.f32 %v4308_v32  ;;  %vm1076_vm9 = vweird.f32 %v4291_v38  ;;  %v1512_v32 = vld [vmem:[%s6340_s2 + $0xb0] sm:$0xff] }
 0x188   :  { %1769 = vperm.xlu0 %2648, %v1571_v29   ;;  %v1032_v29 = vmul.f32 %v4273_v13, %v1031_v23  ;;  %v749_v23 = vmul.f32 0.020408163, %v4030_v0  ;;  %2704 = vrsqrt.f32 %v4344_v26  ;;  %v4373_v0 = vpop.eup %2700  ;;  %vm1117_vm10 = vweird.f32 %v4334_v11  ;;  %vm1078_vm3 = vmor %vm1076_vm9, %vm1077_vm5 }
 0x189   :  { %v1084_v60 = vsub.f32 1.5, %v1083_v5  ;;  %v1113_v5 = vmul.f32 0.5, %v1112_v61  ;;  %vm1116_vm11 = vweird.f32 %v4265_v9  ;;  %vm1067_vm12 = vweird.f32 %v4351_v21 }
 0x18a   :  { %v4355_v54 = vmul.f32 0.5, %v1032_v29  ;;  %vm4523_vm13 = vmor %vm1116_vm11, %vm1117_vm10  ;;  %vm1107_vm15 = vweird.f32 %v4373_v0  ;;  %vm1096_vm2 = vweird.f32 %v4344_v26  ;;  %vm1146_vm5 = vweird.f32 %v4330_v24 }
 0x18b   :  { %1744 = vperm.xlu2 %2647, %v1566_v55   ;;  %v4353_v55 = vmul.f32 0.5, %v1042_v44  ;;  %v1015_v44 = vmul.f32 %v4248_v4, %v1014_v6  ;;  %v752_v6 = vmul.f32 0.020408163, %v4099_v3  ;;  %v1506_v3 = vld [vmem:[%s6340_s2 + $0x80] sm:$0xff] }
 0x18c   :  { %1749 = vperm.xlu1 %2649, %v1567_v2   ;;  %v1071_v2 = vmul.f32 %v4341_v42, %v4291_v38  ;;  %v1034_v34 = vsub.f32 1.5, %v4355_v54  ;;  %v753_v54 = vmul.f32 0.020408163, %v4097_v45  ;;  %v1101_v45 = vmul.f32 %v4373_v0, %v4327_v53 }
 0x18d   :  { %v1044_v49 = vsub.f32 1.5, %v4353_v55  ;;  %v4386_v18 = vpop.eup %2702  ;;  %v4390_v55 = vadd.f32 1e-05, %v749_v23  ;;  %v1569_v23 = vmul.f32 %v1505_v17, %v1009_v47  ;;  %v1019_v47 = vsel %vm4408_vm1, %v4248_v4, %v1015_v44  ;;  %vm4557_vm1 = vmor %vm1066_vm7, %vm1067_vm12 }
 0x18e   :  { %v4332_v31 = vpop.xlane.xlu2 %660  ;;  %v4346_v56 = vpop.xlane.xlu1 %657  ;;  %v1072_v50 = vmul.f32 %v4341_v42, %v1071_v2  ;;  %v1062_v2 = vmul.f32 %v4351_v21, %v1061_v12  ;;  %v1085_v12 = vmul.f32 %v4305_v14, %v1084_v60  ;;  %v4429_v61 = vadd.f32 1e-05, %v753_v54  ;;  %v1513_v60 = vld [vmem:[%s6340_s2 + $0xb8] sm:$0xff] }
 0x18f   :  { %v4338_v7 = vpop.xlane.xlu0 %654  ;;  %v4415_v40 = vpop.eup %2704  ;;  %v4431_v59 = vadd.f32 1e-05, %v752_v6  ;;  %v1570_v46 = vmul.f32 %v1506_v3, %v1019_v47  ;;  %v1114_v44 = vsub.f32 1.5, %v1113_v5  ;;  %v1035_v6 = vmul.f32 %v4273_v13, %v1034_v34 }
 0x190   :  { %1784 = vperm.xlu0 %2648, %v1574_v22   ;;  %v4378_v22 = vadd.f32 1e-05, %v750_v57  ;;  %v4399_v57 = vadd.f32 1e-05, %v754_v25  ;;  %v1141_v25 = vmul.f32 %v4386_v18, %v4330_v24  ;;  %v1073_v17 = vmul.f32 0.5, %v1072_v50 }
 0x191   :  { %v1063_v41 = vmul.f32 0.5, %v1062_v2  ;;  %v1091_v4 = vmul.f32 %v4415_v40, %v4344_v26  ;;  %v1045_v50 = vmul.f32 %v4258_v10, %v1044_v49  ;;  %v1102_v5 = vmul.f32 %v4373_v0, %v1101_v45 }
 0x192   :  { %2706 = vrsqrt.f32 %v4378_v22  ;;  %v756_v49 = vmul.f32 0.020408163, %v4158_v51  ;;  %v1089_v34 = vsel %vm4446_vm4, %v4305_v14, %v1085_v12  ;;  %v1074_v45 = vsub.f32 1.5, %v1073_v17 }
 0x193   :  { %2708 = vrsqrt.f32 %v4390_v55  ;;  %1759 = vperm.xlu2 %2647, %v1569_v23   ;;  %v1142_v23 = vmul.f32 %v4386_v18, %v1141_v25  ;;  %v755_v51 = vmul.f32 0.020408163, %v4160_v27  ;;  %v1577_v14 = vmul.f32 %v1513_v60, %v1089_v34  ;;  %v1508_v27 = vld [vmem:[%s6340_s2 + $0x90] sm:$0xff] }
 0x194   :  { %2710 = vrsqrt.f32 %v4399_v57  ;;  %1764 = vperm.xlu1 %2649, %v1570_v46   ;;  %v1064_v47 = vsub.f32 1.5, %v1063_v41  ;;  %v1092_v12 = vmul.f32 %v4415_v40, %v1091_v4  ;;  %v1115_v17 = vmul.f32 %v4334_v11, %v1114_v44 }
 0x195   :  { %2712 = vrsqrt.f32 %v4429_v61  ;;  %v1143_v60 = vmul.f32 0.5, %v1142_v23  ;;  %v1039_v41 = vsel %vm4481_vm8, %v4273_v13, %v1035_v6  ;;  %v1049_v4 = vsel %vm4468_vm6, %v4258_v10, %v1045_v50 }
 0x196   :  { %v4371_v20 = vpop.xlane.xlu2 %669  ;;  %v4424_v48 = vpop.xlane.xlu1 %666  ;;  %2714 = vrsqrt.f32 %v4431_v59  ;;  %v4504_v44 = vmul.f32 0.5, %v1102_v5  ;;  %v4509_v34 = vadd.f32 1e-05, %v756_v49  ;;  %v1572_v35 = vmul.f32 %v1508_v27, %v1039_v41  ;;  %v1516_v49 = vld [vmem:[%s6340_s2 + $0xd0] sm:$0xff] }
 0x197   :  { %v4384_v29 = vpop.xlane.xlu0 %663  ;;  %2716 = vrsqrt.f32 %v4451_v37  ;;  %v1573_v13 = vmul.f32 %v1509_v52, %v1049_v4  ;;  %v1075_v10 = vmul.f32 %v4341_v42, %v1074_v45  ;;  %v759_v5 = vmul.f32 0.020408163, %v4217_v19 }
 0x198   :  { %v4462_v3 = vpop.eup %2706  ;;  %1799 = vperm.xlu0 %2648, %v1577_v14   ;;  %v4513_v14 = vadd.f32 1e-05, %v755_v51  ;;  %v1065_v27 = vmul.f32 %v4351_v21, %v1064_v47  ;;  %v1144_v52 = vsub.f32 1.5, %v1143_v60  ;;  %v760_v41 = vmul.f32 0.020408163, %v4295_v33 }
 0x199   :  { %v4475_v30 = vpop.eup %2708  ;;  %v1131_v2 = vmul.f32 %v4462_v3, %v4378_v22  ;;  %v1119_v4 = vsel %vm4523_vm13, %v4334_v11, %v1115_v17  ;;  %v1104_v19 = vsub.f32 1.5, %v4504_v44  ;;  %v1093_v16 = vmul.f32 0.5, %v1092_v12 }
 0x19a   :  { %v4495_v46 = vpop.eup %2710  ;;  %v1121_v23 = vmul.f32 %v4475_v30, %v4390_v55  ;;  %vm1097_vm14 = vweird.f32 %v4415_v40  ;;  %2718 = vrsqrt.f32 %v4509_v34  ;;  %v1580_v11 = vmul.f32 %v1516_v49, %v1119_v4 }
 0x19b   :  { %v4517_v25 = vpop.eup %2712  ;;  %v1171_v50 = vmul.f32 %v4495_v46, %v4399_v57  ;;  %1774 = vperm.xlu2 %2647, %v1572_v35   ;;  %v1132_v1 = vmul.f32 %v4462_v3, %v1131_v2  ;;  %2720 = vrsqrt.f32 %v4513_v14  ;;  %v4565_v44 = vadd.f32 1e-05, %v759_v5  ;;  %vm4635_vm11 = vmor %vm1096_vm2, %vm1097_vm14 }
 0x19c   :  { %v4535_v45 = vpop.eup %2714  ;;  %1779 = vperm.xlu1 %2649, %v1573_v13   ;;  %v1122_v33 = vmul.f32 %v4475_v30, %v1121_v23  ;;  %v1161_v47 = vmul.f32 %v4517_v25, %v4429_v61  ;;  %v758_v2 = vmul.f32 0.020408163, %v4219_v63  ;;  %v1511_v23 = vld [vmem:[%s6340_s2 + $0xa8] sm:$0xff]  ;;  %vm1106_vm4 = vweird.f32 %v4327_v53 }
 0x19d   :  { %v4546_v15 = vpop.eup %2716  ;;  %v1151_v17 = vmul.f32 %v4535_v45, %v4431_v59  ;;  %v1172_v60 = vmul.f32 %v4495_v46, %v1171_v50  ;;  %v1145_v13 = vmul.f32 %v4386_v18, %v1144_v52  ;;  %vm1147_vm6 = vweird.f32 %v4386_v18  ;;  %vm1108_vm13 = vmor %vm1106_vm4, %vm1107_vm15 }
 0x19e   :  { %v4440_v54 = vpop.xlane.xlu2 %678  ;;  %v4515_v6 = vpop.xlane.xlu1 %675  ;;  %v4583_v63 = vadd.f32 1e-05, %v760_v41  ;;  %v1069_v9 = vsel %vm4557_vm1, %v4351_v21, %v1065_v27  ;;  %v1094_v50 = vsub.f32 1.5, %v1093_v16  ;;  %v1201_v5 = vmul.f32 %v4546_v15, %v4451_v37  ;;  %vm4595_vm7 = vmor %vm1146_vm5, %vm1147_vm6 }
 0x19f   :  { %v4460_v62 = vpop.xlane.xlu0 %672  ;;  %v763_v38 = vmul.f32 0.020408163, %v4338_v7  ;;  %v1079_v49 = vsel %vm1078_vm3, %v4341_v42, %v1075_v10  ;;  %v1133_v4 = vmul.f32 0.5, %v1132_v1  ;;  %v1575_v52 = vmul.f32 %v1511_v23, %v1069_v9  ;;  %v1519_v1 = vld [vmem:[%s6340_s2 + $0xe8] sm:$0xff] }
 0x1a0   :  { %1814 = vperm.xlu0 %2648, %v1580_v11   ;;  %v1576_v8 = vmul.f32 %v1512_v32, %v1079_v49  ;;  %v4593_v41 = vpop.eup %2718  ;;  %v1123_v11 = vmul.f32 0.5, %v1122_v33  ;;  %v1173_v16 = vmul.f32 0.5, %v1172_v60  ;;  %2722 = vrsqrt.f32 %v4565_v44 }
 0x1a1   :  { %v4600_v21 = vadd.f32 1e-05, %v758_v2  ;;  %v4607_v24 = vpop.eup %2720  ;;  %v1162_v42 = vmul.f32 %v4517_v25, %v1161_v47  ;;  %v1152_v10 = vmul.f32 %v4535_v45, %v1151_v17  ;;  %2724 = vrsqrt.f32 %v4583_v63 }
 0x1a2   :  { %v1149_v33 = vsel %vm4595_vm7, %v4386_v18, %v1145_v13  ;;  %v1105_v12 = vmul.f32 %v4373_v0, %v1104_v19  ;;  %v1095_v60 = vmul.f32 %v4415_v40, %v1094_v50  ;;  %v1202_v2 = vmul.f32 %v4546_v15, %v1201_v5  ;;  %v1514_v19 = vld [vmem:[%s6340_s2 + $0xc0] sm:$0xff]  ;;  %v1515_v50 = vld [vmem:[%s6340_s2 + $0xc8] sm:$0xff] }
 0x1a3   :  { %1789 = vperm.xlu2 %2647, %v1575_v52   ;;  %v4620_v23 = vadd.f32 1e-05, %v763_v38  ;;  %vm1137_vm8 = vweird.f32 %v4462_v3  ;;  %vm1127_vm9 = vweird.f32 %v4475_v30  ;;  %v1583_v47 = vmul.f32 %v1519_v1, %v1149_v33 }
 0x1a4   :  { %1794 = vperm.xlu1 %2649, %v1576_v8   ;;  %v762_v8 = vmul.f32 0.020408163, %v4277_v36  ;;  %v1134_v17 = vsub.f32 1.5, %v1133_v4  ;;  %vm1136_vm10 = vweird.f32 %v4378_v22  ;;  %v1174_v28 = vsub.f32 1.5, %v1173_v16  ;;  %v1518_v22 = vld [vmem:[%s6340_s2 + $0xe0] sm:$0xff] }
 0x1a5   :  { %2726 = vrsqrt.f32 %v4600_v21  ;;  %v761_v18 = vmul.f32 0.020408163, %v4293_v43  ;;  %v1124_v36 = vsub.f32 1.5, %v1123_v11  ;;  %vm1126_vm12 = vweird.f32 %v4390_v55  ;;  %vm4715_vm4 = vmor %vm1136_vm10, %vm1137_vm8 }
 0x1a6   :  { %v4533_v51 = vpop.xlane.xlu2 %687  ;;  %v4612_v27 = vpop.xlane.xlu1 %684  ;;  %v4640_v13 = vmul.f32 0.5, %v1162_v42  ;;  %v4642_v9 = vmul.f32 0.5, %v1152_v10  ;;  %v1191_v43 = vmul.f32 %v4593_v41, %v4509_v34  ;;  %v1181_v5 = vmul.f32 %v4607_v24, %v4513_v14  ;;  %vm1128_vm5 = vmor %vm1126_vm12, %vm1127_vm9 }
 0x1a7   :  { %v4574_v35 = vpop.xlane.xlu0 %681  ;;  %v4649_v26 = vpop.eup %2722  ;;  %v1203_v38 = vmul.f32 0.5, %v1202_v2  ;;  %2728 = vrsqrt.f32 %v4620_v23  ;;  %v1099_v49 = vsel %vm4635_vm11, %v4415_v40, %v1095_v60  ;;  %vm1177_vm14 = vweird.f32 %v4495_v46 }
 0x1a8   :  { %1829 = vperm.xlu0 %2648, %v1583_v47   ;;  %v4663_v52 = vpop.eup %2724  ;;  %v4666_v11 = vadd.f32 1e-05, %v762_v8  ;;  %v1578_v53 = vmul.f32 %v1514_v19, %v1099_v49  ;;  %v1109_v16 = vsel %vm1108_vm13, %v4373_v0, %v1105_v12  ;;  %v1175_v1 = vmul.f32 %v4495_v46, %v1174_v28  ;;  %v1517_v49 = vld [vmem:[%s6340_s2 + $0xd8] sm:$0xff] }
 0x1a9   :  { %v4670_v42 = vadd.f32 1e-05, %v761_v18  ;;  %v766_v10 = vmul.f32 0.020408163, %v4384_v29  ;;  %v1579_v33 = vmul.f32 %v1515_v50, %v1109_v16  ;;  %v1135_v40 = vmul.f32 %v4462_v3, %v1134_v17 }
 0x1aa   :  { %v1125_v60 = vmul.f32 %v4475_v30, %v1124_v36  ;;  %v1192_v47 = vmul.f32 %v4593_v41, %v1191_v43  ;;  %v1221_v8 = vmul.f32 %v4649_v26, %v4565_v44  ;;  %vm1176_vm15 = vweird.f32 %v4399_v57 }
 0x1ab   :  { %1804 = vperm.xlu2 %2647, %v1578_v53   ;;  %v4680_v0 = vpop.eup %2726  ;;  %v1204_v12 = vsub.f32 1.5, %v1203_v38  ;;  %v1231_v29 = vmul.f32 %v4663_v52, %v4583_v63  ;;  %v765_v28 = vmul.f32 0.020408163, %v4332_v31  ;;  %v1164_v17 = vsub.f32 1.5, %v4640_v13  ;;  %vm4691_vm2 = vmor %vm1176_vm15, %vm1177_vm14 }
 0x1ac   :  { %1809 = vperm.xlu1 %2649, %v1579_v33   ;;  %v1154_v18 = vsub.f32 1.5, %v4642_v9  ;;  %vm1157_vm1 = vweird.f32 %v4535_v45  ;;  %2730 = vrsqrt.f32 %v4666_v11  ;;  %vm1167_vm3 = vweird.f32 %v4517_v25  ;;  %v1522_v9 = vld [vmem:[%s6340_s2 + $0x100] sm:$0xff] }
 0x1ad   :  { %v4698_v32 = vpop.eup %2728  ;;  %v1182_v31 = vmul.f32 %v4607_v24, %v1181_v5  ;;  %2732 = vrsqrt.f32 %v4670_v42  ;;  %v4703_v36 = vadd.f32 1e-05, %v766_v10  ;;  %v1179_v13 = vsel %vm4691_vm2, %v4495_v46, %v1175_v1 }
 0x1ae   :  { %v4605_v7 = vpop.xlane.xlu2 %696  ;;  %v4696_v57 = vpop.xlane.xlu1 %693  ;;  %vm1156_vm6 = vweird.f32 %v4431_v59  ;;  %v4720_v50 = vmul.f32 0.5, %v1192_v47  ;;  %v1222_v5 = vmul.f32 %v4649_v26, %v1221_v8  ;;  %v1211_v46 = vmul.f32 %v4680_v0, %v4600_v21 }
 0x1af   :  { %v4661_v4 = vpop.xlane.xlu0 %690  ;;  %v764_v38 = vmul.f32 0.020408163, %v4346_v56  ;;  %vm1166_vm7 = vweird.f32 %v4429_v61  ;;  %v1205_v53 = vmul.f32 %v4546_v15, %v1204_v12  ;;  %vm1207_vm8 = vweird.f32 %v4546_v15  ;;  %vm1158_vm12 = vmor %vm1156_vm6, %vm1157_vm1 }
 0x1b0   :  { %v1232_v56 = vmul.f32 %v4663_v52, %v1231_v29  ;;  %v4740_v16 = vadd.f32 1e-05, %v765_v28  ;;  %v1261_v1 = vmul.f32 %v4698_v32, %v4620_v23  ;;  %v1586_v10 = vmul.f32 %v1522_v9, %v1179_v13  ;;  %vm1168_vm14 = vmor %vm1166_vm7, %vm1167_vm3 }
 0x1b1   :  { %v1129_v33 = vsel %vm1128_vm5, %v4475_v30, %v1125_v60  ;;  %v1139_v55 = vsel %vm4715_vm4, %v4462_v3, %v1135_v40  ;;  %2734 = vrsqrt.f32 %v4703_v36  ;;  %v769_v47 = vmul.f32 0.020408163, %v4460_v62 }
 0x1b2   :  { %v1581_v8 = vmul.f32 %v1517_v49, %v1129_v33  ;;  %v1582_v12 = vmul.f32 %v1518_v22, %v1139_v55  ;;  %v4754_v28 = vpop.eup %2730  ;;  %v1183_v58 = vmul.f32 0.5, %v1182_v31  ;;  %vm1206_vm9 = vweird.f32 %v4451_v37  ;;  %1844 = vperm.xlu0 %2648, %v1586_v10   ;;  %v1521_v33 = vld [vmem:[%s6340_s2 + $0xf8] sm:$0xff] }
 0x1b3   :  { %v4757_v30 = vadd.f32 1e-05, %v764_v38  ;;  %v768_v60 = vmul.f32 0.020408163, %v4371_v20  ;;  %v4760_v3 = vpop.eup %2732  ;;  %v1223_v40 = vmul.f32 0.5, %v1222_v5  ;;  %v1212_v62 = vmul.f32 %v4680_v0, %v1211_v46  ;;  %vm4769_vm10 = vmor %vm1206_vm9, %vm1207_vm8 }
 0x1b4   :  { %v1233_v13 = vmul.f32 0.5, %v1232_v56  ;;  %v767_v9 = vmul.f32 0.020408163, %v4424_v48  ;;  %1819 = vperm.xlu2 %2647, %v1581_v8   ;;  %1824 = vperm.xlu1 %2649, %v1582_v12   ;;  %v1165_v43 = vmul.f32 %v4517_v25, %v1164_v17  ;;  %v1155_v31 = vmul.f32 %v4535_v45, %v1154_v18  ;;  %v1520_v56 = vld [vmem:[%s6340_s2 + $0xf0] sm:$0xff] }
 0x1b5   :  { %v1194_v37 = vsub.f32 1.5, %v4720_v50  ;;  %v1262_v5 = vmul.f32 %v4698_v32, %v1261_v1  ;;  %vm1186_vm11 = vweird.f32 %v4513_v14  ;;  %v1251_v48 = vmul.f32 %v4754_v28, %v4666_v11  ;;  %v1525_v50 = vld [vmem:[%s6340_s2 + $0x118] sm:$0xff]  ;;  %v1523_v14 = vld [vmem:[%s6340_s2 + $0x108] sm:$0xff] }
 0x1b6   :  { %v4673_v2 = vpop.xlane.xlu2 %705  ;;  %2736 = vrsqrt.f32 %v4740_v16  ;;  %v4778_v17 = vadd.f32 1e-05, %v769_v47  ;;  %v1209_v18 = vsel %vm4769_vm10, %v4546_v15, %v1205_v53  ;;  %v1184_v46 = vsub.f32 1.5, %v1183_v58  ;;  %v4791_v22 = vpop.xlane.xlu1 %702 }
 0x1b7   :  { %v4750_v19 = vpop.xlane.xlu0 %699  ;;  %v1241_v38 = vmul.f32 %v4760_v3, %v4670_v42  ;;  %2738 = vrsqrt.f32 %v4757_v30  ;;  %v4789_v49 = vadd.f32 1e-05, %v768_v60  ;;  %v4796_v1 = vpop.eup %2734  ;;  %vm1196_vm13 = vweird.f32 %v4509_v34 }
 0x1b8   :  { %v1224_v15 = vsub.f32 1.5, %v1223_v40  ;;  %v4803_v58 = vmul.f32 0.5, %v1212_v62  ;;  %v1234_v53 = vsub.f32 1.5, %v1233_v13  ;;  %v4805_v10 = vadd.f32 1e-05, %v767_v9 }
 0x1b9   :  { %v1263_v55 = vmul.f32 0.5, %v1262_v5  ;;  %v772_v59 = vmul.f32 0.020408163, %v4574_v35  ;;  %v1589_v47 = vmul.f32 %v1525_v50, %v1209_v18  ;;  %v1159_v8 = vsel %vm1158_vm12, %v4535_v45, %v1155_v31 }
 0x1ba   :  { %v1252_v12 = vmul.f32 %v4754_v28, %v1251_v48  ;;  %2740 = vrsqrt.f32 %v4778_v17  ;;  %v1584_v60 = vmul.f32 %v1520_v56, %v1159_v8  ;;  %v1169_v40 = vsel %vm1168_vm14, %v4517_v25, %v1165_v43 }
 0x1bb   :  { %v1242_v13 = vmul.f32 %v4760_v3, %v1241_v38  ;;  %2742 = vrsqrt.f32 %v4789_v49  ;;  %v1291_v61 = vmul.f32 %v4796_v1, %v4703_v36  ;;  %1859 = vperm.xlu0 %2648, %v1589_v47   ;;  %v1585_v35 = vmul.f32 %v1521_v33, %v1169_v40 }
 0x1bc   :  { %v4825_v9 = vpop.eup %2736  ;;  %vm1197_vm15 = vweird.f32 %v4593_v41  ;;  %v1185_v45 = vmul.f32 %v4607_v24, %v1184_v46  ;;  %vm1187_vm1 = vweird.f32 %v4607_v24  ;;  %2744 = vrsqrt.f32 %v4805_v10  ;;  %1834 = vperm.xlu2 %2647, %v1584_v60  }
 0x1bd   :  { %v4833_v43 = vpop.eup %2738  ;;  %v1235_v31 = vmul.f32 %v4663_v52, %v1234_v53  ;;  %vm1237_vm2 = vweird.f32 %v4663_v52  ;;  %v1264_v20 = vsub.f32 1.5, %v1263_v55  ;;  %v4837_v5 = vadd.f32 1e-05, %v772_v59  ;;  %1839 = vperm.xlu1 %2649, %v1585_v35   ;;  %vm4847_vm4 = vmor %vm1186_vm11, %vm1187_vm1  ;;  %v1524_v59 = vld [vmem:[%s6340_s2 + $0x110] sm:$0xff] }
 0x1be   :  { %v4752_v29 = vpop.xlane.xlu2 %714  ;;  %v1195_v48 = vmul.f32 %v4593_v41, %v1194_v37  ;;  %v4841_v18 = vmul.f32 %v4649_v26, %v1224_v15  ;;  %v1214_v50 = vsub.f32 1.5, %v4803_v58  ;;  %vm1236_vm3 = vweird.f32 %v4583_v63  ;;  %v1528_v63 = vld [vmem:[%s6340_s2 + $0x130] sm:$0xff]  ;;  %vm4888_vm9 = vmor %vm1196_vm13, %vm1197_vm15  ;;  %v4894_v60 = vpop.xlane.xlu1 %711 }
 0x1bf   :  { %v4831_v25 = vpop.xlane.xlu0 %708  ;;  %vm1216_vm6 = vweird.f32 %v4600_v21  ;;  %v4852_v38 = vmul.f32 0.5, %v1252_v12  ;;  %v4854_v56 = vmul.f32 0.5, %v1242_v13  ;;  %v1292_v37 = vmul.f32 %v4796_v1, %v1291_v61  ;;  %vm4869_vm7 = vmor %vm1236_vm3, %vm1237_vm2 }
 0x1c0   :  { %v770_v15 = vmul.f32 0.020408163, %v4515_v6  ;;  %v4864_v58 = vpop.eup %2740  ;;  %vm1227_vm5 = vweird.f32 %v4649_v26  ;;  %v1281_v6 = vmul.f32 %v4825_v9, %v4740_v16  ;;  %v1271_v33 = vmul.f32 %v4833_v43, %v4757_v30 }
 0x1c1   :  { %vm1267_vm8 = vweird.f32 %v4698_v32  ;;  %v771_v55 = vmul.f32 0.020408163, %v4440_v54  ;;  %v4882_v47 = vpop.eup %2742  ;;  %v1265_v12 = vmul.f32 %v4698_v32, %v1264_v20  ;;  %2746 = vrsqrt.f32 %v4837_v5 }
 0x1c2   :  { %v1239_v54 = vsel %vm4869_vm7, %v4663_v52, %v1235_v31  ;;  %v1189_v40 = vsel %vm4847_vm4, %v4607_v24, %v1185_v45  ;;  %v4902_v13 = vpop.eup %2744  ;;  %vm1226_vm10 = vweird.f32 %v4565_v44  ;;  %v775_v34 = vmul.f32 0.020408163, %v4661_v4 }
 0x1c3   :  { %v1592_v61 = vmul.f32 %v1528_v63, %v1239_v54  ;;  %v1587_v35 = vmul.f32 %v1523_v14, %v1189_v40  ;;  %v1199_v20 = vsel %vm4888_vm9, %v4593_v41, %v1195_v48  ;;  %v1293_v53 = vmul.f32 0.5, %v1292_v37  ;;  %v1526_v40 = vld [vmem:[%s6340_s2 + $0x120] sm:$0xff] }
 0x1c4   :  { %v4911_v52 = vadd.f32 1e-05, %v770_v15  ;;  %v1321_v24 = vmul.f32 %v4864_v58, %v4778_v17  ;;  %v1588_v45 = vmul.f32 %v1524_v59, %v1199_v20  ;;  %vm1217_vm11 = vweird.f32 %v4680_v0  ;;  %v1527_v20 = vld [vmem:[%s6340_s2 + $0x128] sm:$0xff] }
 0x1c5   :  { %v1282_v31 = vmul.f32 %v4825_v9, %v1281_v6  ;;  %v1272_v4 = vmul.f32 %v4833_v43, %v1271_v33  ;;  %v1311_v46 = vmul.f32 %v4882_v47, %v4789_v49  ;;  %1874 = vperm.xlu0 %2648, %v1592_v61   ;;  %1849 = vperm.xlu2 %2647, %v1587_v35   ;;  %vm1266_vm12 = vweird.f32 %v4620_v23  ;;  %vm4955_vm2 = vmor %vm1216_vm6, %vm1217_vm11 }
 0x1c6   :  { %v4819_v62 = vpop.permute.xlu2 %1684  ;;  %v1215_v41 = vmul.f32 %v4680_v0, %v1214_v50  ;;  %v1301_v48 = vmul.f32 %v4902_v13, %v4805_v10  ;;  %v4924_v37 = vadd.f32 1e-05, %v771_v55  ;;  %1854 = vperm.xlu1 %2649, %v1588_v45   ;;  %v1254_v15 = vsub.f32 1.5, %v4852_v38  ;;  %vm4933_vm1 = vmor %vm1266_vm12, %vm1267_vm8  ;;  %v1531_v55 = vld [vmem:[%s6340_s2 + $0x148] sm:$0xff]  ;;  %v4994_v45 = vpop.xlane.xlu1 %720 }
 0x1c7   :  { %6606 = vst [vmem:[#allocation65_spill] sm:$0xff] %v4819_v62  ;;  %vm1257_vm13 = vweird.f32 %v4754_v28  ;;  %v1244_v63 = vsub.f32 1.5, %v4854_v56  ;;  %vm1246_vm14 = vweird.f32 %v4670_v42  ;;  %vm1247_vm15 = vweird.f32 %v4760_v3  ;;  %v4939_v14 = vpop.xlane.xlu0 %717  ;;  %v4941_v6 = vpop.eup %2746  ;;  %vm4987_vm6 = vmor %vm1226_vm10, %vm1227_vm5 }
 0x1c8   :  { %v4937_v50 = vadd.f32 1e-05, %v775_v34  ;;  %v1294_v38 = vsub.f32 1.5, %v1293_v53  ;;  %2748 = vrsqrt.f32 %v4911_v52  ;;  %v1322_v56 = vmul.f32 %v4864_v58, %v1321_v24  ;;  %vm5029_vm10 = vmor %vm1246_vm14, %vm1247_vm15 }
 0x1c9   :  { %v1269_v33 = vsel %vm4933_vm1, %v4698_v32, %v1265_v12  ;;  %vm1256_vm3 = vweird.f32 %v4666_v11  ;;  %v4960_v8 = vmul.f32 0.5, %v1282_v31  ;;  %v4962_v54 = vmul.f32 0.5, %v1272_v4 }
 0x1ca   :  { %v1312_v32 = vmul.f32 %v4882_v47, %v1311_v46  ;;  %v774_v12 = vmul.f32 0.020408163, %v4533_v51  ;;  %v1302_v21 = vmul.f32 %v4902_v13, %v1301_v48  ;;  %2750 = vrsqrt.f32 %v4924_v37  ;;  %vm5059_vm12 = vmor %vm1256_vm3, %vm1257_vm13 }
 0x1cb   :  { %v773_v34 = vmul.f32 0.020408163, %v4612_v27  ;;  %v1219_v61 = vsel %vm4955_vm2, %v4680_v0, %v1215_v41  ;;  %vm1297_vm4 = vweird.f32 %v4796_v1  ;;  %2752 = vrsqrt.f32 %v4937_v50 }
 0x1cc   :  { %v778_v51 = vmul.f32 0.020408163, %v4750_v19  ;;  %v1595_v35 = vmul.f32 %v1531_v55, %v1269_v33  ;;  %v1295_v0 = vmul.f32 %v4796_v1, %v1294_v38  ;;  %v1323_v24 = vmul.f32 0.5, %v1322_v56 }
 0x1cd   :  { %v1351_v19 = vmul.f32 %v4941_v6, %v4837_v5  ;;  %v1590_v31 = vmul.f32 %v1526_v40, %v1219_v61  ;;  %v1255_v4 = vmul.f32 %v4754_v28, %v1254_v15  ;;  %v1245_v46 = vmul.f32 %v4760_v3, %v1244_v63  ;;  %v1534_v40 = vld [vmem:[%s6340_s2 + $0x160] sm:$0xff] }
 0x1ce   :  { %v4909_v62 = vpop.permute.xlu2 %1699  ;;  %v4998_v41 = vadd.f32 1e-05, %v774_v12  ;;  %1889 = vperm.xlu0 %2648, %v1595_v35   ;;  %v1229_v44 = vsel %vm4987_vm6, %v4649_v26, %v4841_v18  ;;  %v5004_v48 = vpop.eup %2748  ;;  %v1303_v23 = vmul.f32 0.5, %v1302_v21  ;;  %vm1296_vm5 = vweird.f32 %v4703_v36 }
 0x1cf   :  { %v5007_v38 = vadd.f32 1e-05, %v773_v34  ;;  %1864 = vperm.xlu2 %2647, %v1590_v31   ;;  %v1591_v56 = vmul.f32 %v1527_v20, %v1229_v44  ;;  %v1284_v15 = vsub.f32 1.5, %v4960_v8  ;;  %v1274_v63 = vsub.f32 1.5, %v4962_v54  ;;  %vm5015_vm9 = vmor %vm1296_vm5, %vm1297_vm4  ;;  %v1530_v20 = vld [vmem:[%s6340_s2 + $0x140] sm:$0xff] }
 0x1d0   :  { %vm1276_vm7 = vweird.f32 %v4757_v30  ;;  %vm1277_vm8 = vweird.f32 %v4833_v43  ;;  %v5019_v18 = vadd.f32 1e-05, %v778_v51  ;;  %v5023_v33 = vpop.eup %2750  ;;  %v5033_v59 = vmul.f32 0.5, %v1312_v32 }
 0x1d1   :  { %v1324_v8 = vsub.f32 1.5, %v1323_v24  ;;  %v1352_v54 = vmul.f32 %v4941_v6, %v1351_v19  ;;  %1869 = vperm.xlu1 %2649, %v1591_v56   ;;  %v1299_v12 = vsel %vm5015_vm9, %v4796_v1, %v1295_v0  ;;  %v5042_v21 = vpop.eup %2752  ;;  %vm1286_vm11 = vweird.f32 %v4740_v16  ;;  %v1529_v1 = vld [vmem:[%s6340_s2 + $0x138] sm:$0xff]  ;;  %vm5110_vm3 = vmor %vm1276_vm7, %vm1277_vm8 }
 0x1d2   :  { %v1331_v42 = vmul.f32 %v5004_v48, %v4911_v52  ;;  %2754 = vrsqrt.f32 %v4998_v41  ;;  %v777_v32 = vmul.f32 0.020408163, %v4605_v7  ;;  %v1249_v34 = vsel %vm5029_vm10, %v4760_v3, %v1245_v46 }
 0x1d3   :  { %v1304_v51 = vsub.f32 1.5, %v1303_v23  ;;  %vm1327_vm14 = vweird.f32 %v4864_v58  ;;  %2756 = vrsqrt.f32 %v5007_v38  ;;  %v776_v7 = vmul.f32 0.020408163, %v4696_v57 }
 0x1d4   :  { %2758 = vrsqrt.f32 %v5019_v18  ;;  %v781_v3 = vmul.f32 0.020408163, %v4831_v25  ;;  %v1598_v35 = vmul.f32 %v1534_v40, %v1299_v12  ;;  %v1259_v11 = vsel %vm5059_vm12, %v4754_v28, %v1255_v4 }
 0x1d5   :  { %v1325_v0 = vmul.f32 %v4864_v58, %v1324_v8  ;;  %v1353_v24 = vmul.f32 0.5, %v1352_v54  ;;  %v1381_v57 = vmul.f32 %v5042_v21, %v4937_v50  ;;  %v1593_v19 = vmul.f32 %v1529_v1, %v1249_v34 }
 0x1d6   :  { %v4981_v53 = vpop.permute.xlu2 %1704  ;;  %v1275_v25 = vmul.f32 %v4833_v43, %v1274_v63  ;;  %v1341_v28 = vmul.f32 %v5023_v33, %v4924_v37  ;;  %v1332_v4 = vmul.f32 %v5004_v48, %v1331_v42  ;;  %v5085_v46 = vadd.f32 1e-05, %v777_v32  ;;  %1904 = vperm.xlu0 %2648, %v1598_v35   ;;  %v1537_v42 = vld [vmem:[%s6340_s2 + $0x178] sm:$0xff] }
 0x1d7   :  { %vm1287_vm13 = vweird.f32 %v4825_v9  ;;  %vm1326_vm15 = vweird.f32 %v4778_v17  ;;  %v5089_v44 = vadd.f32 1e-05, %v776_v7  ;;  %1879 = vperm.xlu2 %2647, %v1593_v19   ;;  %v1594_v23 = vmul.f32 %v1530_v20, %v1259_v11  ;;  %v1533_v11 = vld [vmem:[%s6340_s2 + $0x158] sm:$0xff] }
 0x1d8   :  { %v5091_v56 = vpop.eup %2754  ;;  %v1285_v63 = vmul.f32 %v4825_v9, %v1284_v15  ;;  %v1314_v26 = vsub.f32 1.5, %v5033_v59  ;;  %vm1307_vm1 = vweird.f32 %v4902_v13  ;;  %vm5098_vm2 = vmor %vm1326_vm15, %vm1327_vm14  ;;  %v5102_v8 = vadd.f32 1e-05, %v781_v3 }
 0x1d9   :  { %v5104_v17 = vpop.eup %2756  ;;  %v5115_v59 = vmul.f32 %v4902_v13, %v1304_v51  ;;  %v1354_v54 = vsub.f32 1.5, %v1353_v24  ;;  %v1382_v12 = vmul.f32 %v5042_v21, %v1381_v57  ;;  %1884 = vperm.xlu1 %2649, %v1594_v23   ;;  %v1329_v40 = vsel %vm5098_vm2, %v4864_v58, %v1325_v0  ;;  %v1532_v58 = vld [vmem:[%s6340_s2 + $0x150] sm:$0xff]  ;;  %vm5141_vm6 = vmor %vm1286_vm11, %vm1287_vm13 }
 0x1da   :  { %v5021_v36 = vpop.permute.xlu0 %1689  ;;  %v5126_v32 = vpop.eup %2758  ;;  %vm1316_vm4 = vweird.f32 %v4789_v49  ;;  %v1342_v34 = vmul.f32 %v5023_v33, %v1341_v28  ;;  %v1333_v1 = vmul.f32 0.5, %v1332_v4  ;;  %2760 = vrsqrt.f32 %v5085_v46 }
 0x1db   :  { %v1279_v61 = vsel %vm5110_vm3, %v4833_v43, %v1275_v25  ;;  %v1371_v7 = vmul.f32 %v5091_v56, %v4998_v41  ;;  %vm1357_vm5 = vweird.f32 %v4941_v6  ;;  %2762 = vrsqrt.f32 %v5089_v44 }
 0x1dc   :  { %v779_v43 = vmul.f32 0.020408163, %v4791_v22  ;;  %2764 = vrsqrt.f32 %v5102_v8  ;;  %v784_v3 = vmul.f32 0.020408163, %v4939_v14  ;;  %v1601_v35 = vmul.f32 %v1537_v42, %v1329_v40  ;;  %v1540_v42 = vld [vmem:[%s6340_s2 + $0x190] sm:$0xff] }
 0x1dd   :  { %v1289_v16 = vsel %vm5141_vm6, %v4825_v9, %v1285_v63  ;;  %v1355_v0 = vmul.f32 %v4941_v6, %v1354_v54  ;;  %v1383_v24 = vmul.f32 0.5, %v1382_v12  ;;  %v1411_v22 = vmul.f32 %v5126_v32, %v5019_v18  ;;  %v1543_v12 = vld [vmem:[%s6340_s2 + $0x1a8] sm:$0xff] }
 0x1de   :  { %v5074_v27 = vpop.permute.xlu2 %1714  ;;  %v5079_v31 = vpop.permute.xlu1 %1694  ;;  %v1596_v57 = vmul.f32 %v1532_v58, %v1279_v61  ;;  %v1343_v19 = vmul.f32 0.5, %v1342_v34  ;;  %v1334_v14 = vsub.f32 1.5, %v1333_v1  ;;  %v1361_v25 = vmul.f32 %v5104_v17, %v5007_v38  ;;  %1919 = vperm.xlu0 %2648, %v1601_v35  }
 0x1df   :  { %vm1356_vm7 = vweird.f32 %v4837_v5  ;;  %v1372_v9 = vmul.f32 %v5091_v56, %v1371_v7  ;;  %v780_v28 = vmul.f32 0.020408163, %v4673_v2  ;;  %v5168_v4 = vadd.f32 1e-05, %v779_v43 }
 0x1e0   :  { %1894 = vperm.xlu2 %2647, %v1596_v57   ;;  %v1597_v23 = vmul.f32 %v1533_v11, %v1289_v16  ;;  %v5172_v55 = vpop.eup %2760  ;;  %v1315_v15 = vmul.f32 %v4882_v47, %v1314_v26  ;;  %vm1317_vm8 = vweird.f32 %v4882_v47  ;;  %vm1306_vm9 = vweird.f32 %v4805_v10  ;;  %vm5179_vm10 = vmor %vm1356_vm7, %vm1357_vm5  ;;  %v1536_v16 = vld [vmem:[%s6340_s2 + $0x170] sm:$0xff] }
 0x1e1   :  { %v5183_v2 = vadd.f32 1e-05, %v784_v3  ;;  %v5185_v54 = vpop.eup %2762  ;;  %vm5189_vm11 = vmor %vm1306_vm9, %vm1307_vm1  ;;  %vm1337_vm12 = vweird.f32 %v5004_v48  ;;  %v1384_v26 = vsub.f32 1.5, %v1383_v24  ;;  %v1412_v10 = vmul.f32 %v5126_v32, %v1411_v22 }
 0x1e2   :  { %v5124_v30 = vpop.permute.xlu0 %1724  ;;  %1899 = vperm.xlu1 %2649, %v1597_v23   ;;  %v1359_v40 = vsel %vm5179_vm10, %v4941_v6, %v1355_v0  ;;  %v5201_v34 = vpop.eup %2764  ;;  %v1344_v1 = vsub.f32 1.5, %v1343_v19  ;;  %v5204_v61 = vmul.f32 %v5004_v48, %v1334_v14  ;;  %v1362_v58 = vmul.f32 %v5104_v17, %v1361_v25  ;;  %v1535_v6 = vld [vmem:[%s6340_s2 + $0x168] sm:$0xff]  ;;  %vm5218_vm14 = vmor %vm1316_vm4, %vm1317_vm8 }
 0x1e3   :  { %v1309_v51 = vsel %vm5189_vm11, %v4902_v13, %v5115_v59  ;;  %v5222_v43 = vmul.f32 0.5, %v1372_v9  ;;  %v5224_v3 = vadd.f32 1e-05, %v780_v28  ;;  %2766 = vrsqrt.f32 %v5168_v4 }
 0x1e4   :  { %v782_v13 = vmul.f32 0.020408163, %v4894_v60  ;;  %vm1387_vm13 = vweird.f32 %v5042_v21  ;;  %2768 = vrsqrt.f32 %v5183_v2  ;;  %v1604_v35 = vmul.f32 %v1540_v42, %v1359_v40 }
 0x1e5   :  { %v1319_v49 = vsel %vm5218_vm14, %v4882_v47, %v1315_v15  ;;  %v1385_v0 = vmul.f32 %v5042_v21, %v1384_v26  ;;  %v1413_v60 = vmul.f32 0.5, %v1412_v10  ;;  %v1441_v24 = vmul.f32 %v5201_v34, %v5102_v8 }
 0x1e6   :  { %v5158_v20 = vpop.permute.xlu2 %1729  ;;  %v5170_v63 = vpop.permute.xlu1 %1709  ;;  %v1599_v22 = vmul.f32 %v1535_v6, %v1309_v51  ;;  %v1363_v57 = vmul.f32 0.5, %v1362_v58  ;;  %v1401_v19 = vmul.f32 %v5172_v55, %v5085_v46  ;;  %v1391_v47 = vmul.f32 %v5185_v54, %v5089_v44  ;;  %1934 = vperm.xlu0 %2648, %v1604_v35  }
 0x1e7   :  { %vm1386_vm15 = vweird.f32 %v4937_v50  ;;  %2770 = vrsqrt.f32 %v5224_v3  ;;  %v783_v14 = vmul.f32 0.020408163, %v4752_v29  ;;  %v5250_v25 = vadd.f32 1e-05, %v782_v13  ;;  %v1539_v13 = vld [vmem:[%s6340_s2 + $0x188] sm:$0xff] }
 0x1e8   :  { %1909 = vperm.xlu2 %2647, %v1599_v22   ;;  %v1600_v9 = vmul.f32 %v1536_v16, %v1319_v49  ;;  %v1345_v28 = vmul.f32 %v5023_v33, %v1344_v1  ;;  %vm1347_vm1 = vweird.f32 %v5023_v33  ;;  %vm1336_vm2 = vweird.f32 %v4911_v52  ;;  %vm5257_vm3 = vmor %vm1386_vm15, %vm1387_vm13 }
 0x1e9   :  { %v5261_v50 = vpop.eup %2766  ;;  %vm1346_vm4 = vweird.f32 %v4924_v37  ;;  %vm5266_vm6 = vmor %vm1336_vm2, %vm1337_vm12  ;;  %v1414_v15 = vsub.f32 1.5, %v1413_v60  ;;  %v1442_v5 = vmul.f32 %v5201_v34, %v1441_v24  ;;  %v1389_v52 = vsel %vm5257_vm3, %v5042_v21, %v1385_v0  ;;  %v1538_v21 = vld [vmem:[%s6340_s2 + $0x180] sm:$0xff] }
 0x1ea   :  { %v5228_v59 = vpop.permute.xlu0 %1739  ;;  %1914 = vperm.xlu1 %2649, %v1600_v9   ;;  %v5279_v37 = vpop.eup %2768  ;;  %v1364_v10 = vsub.f32 1.5, %v1363_v57  ;;  %vm1366_vm5 = vweird.f32 %v5007_v38  ;;  %v1392_v40 = vmul.f32 %v5185_v54, %v1391_v47  ;;  %v1339_v42 = vsel %vm5266_vm6, %v5004_v48, %v5204_v61  ;;  %vm5292_vm7 = vmor %vm1346_vm4, %vm1347_vm1 }
 0x1eb   :  { %v1374_v58 = vsub.f32 1.5, %v5222_v43  ;;  %v1402_v51 = vmul.f32 %v5172_v55, %v1401_v19  ;;  %v5298_v6 = vadd.f32 1e-05, %v783_v14  ;;  %2772 = vrsqrt.f32 %v5250_v25 }
 0x1ec   :  { %vm1417_vm8 = vweird.f32 %v5126_v32  ;;  %v785_v48 = vmul.f32 0.020408163, %v4994_v45  ;;  %v1607_v61 = vmul.f32 %v1543_v12, %v1389_v52  ;;  %v1349_v7 = vsel %vm5292_vm7, %v5023_v33, %v1345_v28  ;;  %v1546_v52 = vld [vmem:[%s6340_s2 + $0x1c0] sm:$0xff] }
 0x1ed   :  { %v5309_v43 = vpop.eup %2770  ;;  %v1415_v35 = vmul.f32 %v5126_v32, %v1414_v15  ;;  %v1443_v49 = vmul.f32 0.5, %v1442_v5  ;;  %v1471_v16 = vmul.f32 %v5279_v37, %v5183_v2  ;;  %v1602_v0 = vmul.f32 %v1538_v21, %v1339_v42 }
 0x1ee   :  { %v5238_v11 = vpop.permute.xlu2 %1744  ;;  %v5277_v26 = vpop.permute.xlu1 %1719  ;;  %v1365_v24 = vmul.f32 %v5104_v17, %v1364_v10  ;;  %vm1367_vm9 = vweird.f32 %v5104_v17  ;;  %v1393_v33 = vmul.f32 0.5, %v1392_v40  ;;  %v1421_v22 = vmul.f32 %v5261_v50, %v5168_v4  ;;  %1949 = vperm.xlu0 %2648, %v1607_v61   ;;  %v1541_v40 = vld [vmem:[%s6340_s2 + $0x198] sm:$0xff] }
 0x1ef   :  { %v1403_v57 = vmul.f32 0.5, %v1402_v51  ;;  %vm1416_vm10 = vweird.f32 %v5019_v18  ;;  %2774 = vrsqrt.f32 %v5298_v6  ;;  %v1603_v19 = vmul.f32 %v1539_v13, %v1349_v7  ;;  %vm5342_vm14 = vmor %vm1366_vm5, %vm1367_vm9 }
 0x1f0   :  { %1924 = vperm.xlu2 %2647, %v1602_v0   ;;  %v1375_v47 = vmul.f32 %v5091_v56, %v1374_v58  ;;  %vm1377_vm11 = vweird.f32 %v5091_v56  ;;  %v1431_v14 = vmul.f32 %v5309_v43, %v5224_v3  ;;  %vm5330_vm12 = vmor %vm1416_vm10, %vm1417_vm8  ;;  %v5334_v28 = vadd.f32 1e-05, %v785_v48  ;;  %v1542_v58 = vld [vmem:[%s6340_s2 + $0x1a0] sm:$0xff] }
 0x1f1   :  { %v5336_v18 = vpop.eup %2772  ;;  %v1444_v29 = vsub.f32 1.5, %v1443_v49  ;;  %v1472_v15 = vmul.f32 %v5279_v37, %v1471_v16  ;;  %v1419_v5 = vsel %vm5330_vm12, %v5126_v32, %v1415_v35  ;;  %vm1376_vm13 = vweird.f32 %v4998_v41 }
 0x1f2   :  { %v5314_v60 = vpop.permute.xlu0 %1754  ;;  %1929 = vperm.xlu1 %2649, %v1603_v19   ;;  %v1394_v12 = vsub.f32 1.5, %v1393_v33  ;;  %v1422_v38 = vmul.f32 %v5261_v50, %v1421_v22  ;;  %v1369_v10 = vsel %vm5342_vm14, %v5104_v17, %v1365_v24  ;;  %vm5363_vm15 = vmor %vm1376_vm13, %vm1377_vm11  ;;  %v1404_v42 = vsub.f32 1.5, %v1403_v57  ;;  %v1549_v19 = vld [vmem:[%s6340_s2 + $0x1d8] sm:$0xff] }
 0x1f3   :  { %v1432_v41 = vmul.f32 %v5309_v43, %v1431_v14  ;;  %2776 = vrsqrt.f32 %v5334_v28  ;;  %v1610_v1 = vmul.f32 %v1546_v52, %v1419_v5  ;;  %v1379_v17 = vsel %vm5363_vm15, %v5091_v56, %v1375_v47 }
 0x1f4   :  { %v1445_v48 = vmul.f32 %v5201_v34, %v1444_v29  ;;  %vm1447_vm1 = vweird.f32 %v5201_v34  ;;  %v1473_v61 = vmul.f32 0.5, %v1472_v15  ;;  %v1605_v7 = vmul.f32 %v1541_v40, %v1369_v10  ;;  %v1544_v29 = vld [vmem:[%s6340_s2 + $0x1b0] sm:$0xff] }
 0x1f5   :  { %v5377_v51 = vpop.eup %2774  ;;  %v1395_v13 = vmul.f32 %v5185_v54, %v1394_v12  ;;  %vm1397_vm2 = vweird.f32 %v5185_v54  ;;  %v1423_v35 = vmul.f32 0.5, %v1422_v38  ;;  %v1451_v56 = vmul.f32 %v5336_v18, %v5250_v25 }
 0x1f6   :  { %v5316_v45 = vpop.permute.xlu2 %1759  ;;  %v5367_v21 = vpop.permute.xlu1 %1734  ;;  %1964 = vperm.xlu0 %2648, %v1610_v1   ;;  %vm1396_vm3 = vweird.f32 %v5089_v44  ;;  %vm1446_vm4 = vweird.f32 %v5102_v8  ;;  %v1606_v49 = vmul.f32 %v1542_v58, %v1379_v17  ;;  %v1405_v24 = vmul.f32 %v5172_v55, %v1404_v42 }
 0x1f7   :  { %vm1407_vm6 = vweird.f32 %v5172_v55  ;;  %v1433_v33 = vmul.f32 0.5, %v1432_v41  ;;  %v1461_v22 = vmul.f32 %v5377_v51, %v5298_v6  ;;  %vm1448_vm5 = vmor %vm1446_vm4, %vm1447_vm1  ;;  %v1474_v8 = vsub.f32 1.5, %v1473_v61 }
 0x1f8   :  { %1939 = vperm.xlu2 %2647, %v1605_v7   ;;  %vm5399_vm7 = vmor %vm1396_vm3, %vm1397_vm2  ;;  %v1449_v57 = vsel %vm1448_vm5, %v5201_v34, %v1445_v48  ;;  %vm1406_vm8 = vweird.f32 %v5085_v46  ;;  %v1424_v14 = vsub.f32 1.5, %v1423_v35  ;;  %v1452_v9 = vmul.f32 %v5336_v18, %v1451_v56 }
 0x1f9   :  { %v5407_v47 = vpop.eup %2776  ;;  %v1399_v23 = vsel %vm5399_vm7, %v5185_v54, %v1395_v13  ;;  %vm5419_vm9 = vmor %vm1406_vm8, %vm1407_vm6  ;;  %v1434_v15 = vsub.f32 1.5, %v1433_v33  ;;  %v1462_v46 = vmul.f32 %v5377_v51, %v1461_v22  ;;  %v1613_v5 = vmul.f32 %v1549_v19, %v1449_v57  ;;  %v1545_v54 = vld [vmem:[%s6340_s2 + $0x1b8] sm:$0xff]  ;;  %v1547_v13 = vld [vmem:[%s6340_s2 + $0x1c8] sm:$0xff] }
 0x1fa   :  { %v5387_v16 = vpop.permute.xlu0 %1769  ;;  %1944 = vperm.xlu1 %2649, %v1606_v49   ;;  %v1409_v52 = vsel %vm5419_vm9, %v5172_v55, %v1405_v24  ;;  %v1475_v12 = vmul.f32 %v5279_v37, %v1474_v8  ;;  %vm1477_vm10 = vweird.f32 %v5279_v37  ;;  %v1608_v38 = vmul.f32 %v1544_v29, %v1399_v23  ;;  %v1548_v49 = vld [vmem:[%s6340_s2 + $0x1d0] sm:$0xff]  ;;  %v1550_v19 = vld [vmem:[%s6340_s2 + $0x1e0] sm:$0xff] }
 0x1fb   :  { %v1425_v40 = vmul.f32 %v5261_v50, %v1424_v14  ;;  %vm1427_vm11 = vweird.f32 %v5261_v50  ;;  %v1453_v32 = vmul.f32 0.5, %v1452_v9  ;;  %v1481_v42 = vmul.f32 %v5407_v47, %v5334_v28  ;;  %v1619_v14 = vld [vmem:[%s6341_s3 + $0x8] sm:$0xff] }
 0x1fc   :  { %vm1476_vm12 = vweird.f32 %v5183_v2  ;;  %v1609_v55 = vmul.f32 %v1545_v54, %v1409_v52  ;;  %v1435_v1 = vmul.f32 %v5309_v43, %v1434_v15  ;;  %vm1437_vm14 = vweird.f32 %v5309_v43  ;;  %v1552_v2 = vld [vmem:[%s6340_s2 + $0x1f0] sm:$0xff] }
 0x1fd   :  { %vm1426_vm13 = vweird.f32 %v5168_v4  ;;  %v1463_v17 = vmul.f32 0.5, %v1462_v46  ;;  %vm1478_vm15 = vmor %vm1476_vm12, %vm1477_vm10  ;;  %vm1436_vm2 = vweird.f32 %v5224_v3  ;;  %v1454_v61 = vsub.f32 1.5, %v1453_v32  ;;  %v1553_v46 = vld [vmem:[%s6340_s2 + $0x1f8] sm:$0xff] }
 0x1fe   :  { %v5389_v0 = vpop.permute.xlu2 %1774  ;;  %v5432_v10 = vpop.permute.xlu1 %1749  ;;  %1979 = vperm.xlu0 %2648, %v1613_v5   ;;  %vm1428_vm1 = vmor %vm1426_vm13, %vm1427_vm11  ;;  %v1479_v58 = vsel %vm1478_vm15, %v5279_v37, %v1475_v12  ;;  %v1482_v7 = vmul.f32 %v5407_v47, %v1481_v42  ;;  %vm1457_vm4 = vweird.f32 %v5336_v18  ;;  %vm1467_vm6 = vweird.f32 %v5377_v51  ;;  %v1622_v5 = vld [vmem:[%s6341_s3 + $0x20] sm:$0xff]  ;;  %v1621_v42 = vld [vmem:[%s6341_s3 + $0x18] sm:$0xff] }
 0x1ff   :  { %v1429_v4 = vsel %vm1428_vm1, %v5261_v50, %v1425_v40  ;;  %vm1438_vm3 = vmor %vm1436_vm2, %vm1437_vm14  ;;  %v1464_v35 = vsub.f32 1.5, %v1463_v17  ;;  %v1616_v37 = vmul.f32 %v1552_v2, %v1479_v58  ;;  %v1455_v3 = vmul.f32 %v5336_v18, %v1454_v61  ;;  %v1620_v40 = vld [vmem:[%s6341_s3 + $0x10] sm:$0xff]  ;;  %v1623_v58 = vld [vmem:[%s6341_s3 + $0x28] sm:$0xff] }
 0x200   :  { %1954 = vperm.xlu2 %2647, %v1608_v38   ;;  %v1439_v56 = vsel %vm1438_vm3, %v5309_v43, %v1435_v1  ;;  %v1611_v24 = vmul.f32 %v1547_v13, %v1429_v4  ;;  %v1483_v33 = vmul.f32 0.5, %v1482_v7  ;;  %vm1456_vm5 = vweird.f32 %v5250_v25  ;;  %v1625_v38 = vld [vmem:[%s6341_s3 + $0x38] sm:$0xff]  ;;  %v1628_v17 = vld [vmem:[%s6341_s3 + $0x50] sm:$0xff]  ;;  %v1631_v13 = vld [vmem:[%s6341_s3 + $0x68] sm:$0xff] }
 0x201   :  { %v1612_v50 = vmul.f32 %v1548_v49, %v1439_v56  ;;  %v1465_v8 = vmul.f32 %v5377_v51, %v1464_v35  ;;  %vm1458_vm7 = vmor %vm1456_vm5, %vm1457_vm4  ;;  %vm1466_vm8 = vweird.f32 %v5298_v6  ;;  %v1551_v6 = vld [vmem:[%s6340_s2 + $0x1e8] sm:$0xff]  ;;  %vm1487_vm10 = vweird.f32 %v5407_v47  ;;  %v1624_v2 = vld [vmem:[%s6341_s3 + $0x30] sm:$0xff] }
 0x202   :  { %1959 = vperm.xlu1 %2649, %v1609_v55   ;;  %v5450_v48 = vpop.permute.xlu0 %1784  ;;  %v1484_v43 = vsub.f32 1.5, %v1483_v33  ;;  %v1459_v57 = vsel %vm1458_vm7, %v5336_v18, %v1455_v3  ;;  %vm1468_vm9 = vmor %vm1466_vm8, %vm1467_vm6  ;;  %vm1486_vm11 = vweird.f32 %v5334_v28  ;;  %v1618_v28 = vld [vmem:[%s6341_s3] sm:$0xff]  ;;  %v1629_v33 = vld [vmem:[%s6341_s3 + $0x58] sm:$0xff] }
 0x203   :  { %v1469_v25 = vsel %vm1468_vm9, %v5377_v51, %v1465_v8  ;;  %v1614_v23 = vmul.f32 %v1550_v19, %v1459_v57  ;;  %vm1488_vm12 = vmor %vm1486_vm11, %vm1487_vm10  ;;  %v1626_v35 = vld [vmem:[%s6341_s3 + $0x40] sm:$0xff]  ;;  %v1637_v19 = vld [vmem:[%s6341_s3 + $0x98] sm:$0xff] }
 0x204   :  { %v1485_v18 = vmul.f32 %v5407_v47, %v1484_v43  ;;  %v1615_v29 = vmul.f32 %v1551_v6, %v1469_v25  ;;  %v1634_v3 = vld [vmem:[%s6341_s3 + $0x80] sm:$0xff]  ;;  %v1633_v25 = vld [vmem:[%s6341_s3 + $0x78] sm:$0xff] }
 0x206   :  { %v5439_v41 = vpop.permute.xlu2 %1789  ;;  %1994 = vperm.xlu0 %2648, %v1616_v37   ;;  %v5464_v22 = vpop.permute.xlu1 %1764  ;;  %v1489_v51 = vsel %vm1488_vm12, %v5407_v47, %v1485_v18  ;;  %v1627_v37 = vld [vmem:[%s6341_s3 + $0x48] sm:$0xff] }
 0x207   :  { %v1617_v54 = vmul.f32 %v1553_v46, %v1489_v51  ;;  %v1635_v51 = vld [vmem:[%s6341_s3 + $0x88] sm:$0xff]  ;;  %v1636_v46 = vld [vmem:[%s6341_s3 + $0x90] sm:$0xff] }
 0x208   :  { %1969 = vperm.xlu2 %2647, %v1611_v24  }
 0x20a   :  { %1974 = vperm.xlu1 %2649, %v1612_v50   ;;  %v5479_v9 = vpop.permute.xlu0 %1799  ;;  %v1630_v50 = vld [vmem:[%s6341_s3 + $0x60] sm:$0xff] }
 0x20e   :  { %v5466_v44 = vpop.permute.xlu2 %1804  ;;  %2137 = vperm.xlu0 %2648, %v1619_v14   ;;  %v5487_v34 = vpop.permute.xlu1 %1779  ;;  %v1632_v14 = vld [vmem:[%s6341_s3 + $0x70] sm:$0xff] }
 0x210   :  { %1984 = vperm.xlu2 %2647, %v1614_v23  }
 0x212   :  { %1989 = vperm.xlu1 %2649, %v1615_v29   ;;  %v5499_v52 = vpop.permute.xlu0 %1814  ;;  %v1640_v29 = vld [vmem:[%s6341_s3 + $0xb0] sm:$0xff] }
 0x216   :  { %v5490_v15 = vpop.permute.xlu2 %1819  ;;  %2152 = vperm.xlu0 %2648, %v1622_v5   ;;  %v5504_v12 = vpop.permute.xlu1 %1794 }
 0x218   :  { %1999 = vperm.xlu2 %2647, %v1617_v54  }
 0x21a   :  { %2132 = vperm.xlu1 %2649, %v1618_v28   ;;  %v5514_v32 = vpop.permute.xlu0 %1829 }
 0x21e   :  { %v5506_v47 = vpop.permute.xlu2 %1834  ;;  %2167 = vperm.xlu0 %2648, %v1625_v38   ;;  %v5519_v55 = vpop.permute.xlu1 %1809  ;;  %v1643_v38 = vld [vmem:[%s6341_s3 + $0xc8] sm:$0xff] }
 0x220   :  { %2142 = vperm.xlu2 %2647, %v1620_v40   ;;  %v1638_v40 = vld [vmem:[%s6341_s3 + $0xa0] sm:$0xff] }
 0x222   :  { %2147 = vperm.xlu1 %2649, %v1621_v42   ;;  %v1639_v42 = vld [vmem:[%s6341_s3 + $0xa8] sm:$0xff] }
 0x224   :  { %v5532_v61 = vpop.permute.xlu0 %1844 }
 0x226   :  { %v5521_v1 = vpop.permute.xlu2 %1849  ;;  %2182 = vperm.xlu0 %2648, %v1628_v17   ;;  %v5534_v7 = vpop.permute.xlu1 %1824 }
 0x228   :  { %2157 = vperm.xlu2 %2647, %v1623_v58  }
 0x22a   :  { %2162 = vperm.xlu1 %2649, %v1624_v2  }
 0x22d   :  { %v5547_v56 = vpop.permute.xlu0 %1859 }
 0x22e   :  { %v5536_v4 = vpop.permute.xlu2 %1864  ;;  %2197 = vperm.xlu0 %2648, %v1631_v13   ;;  %v1646_v13 = vld [vmem:[%s6341_s3 + $0xe0] sm:$0xff] }
 0x22f   :  { %v5549_v49 = vpop.permute.xlu1 %1839 }
 0x230   :  { %2172 = vperm.xlu2 %2647, %v1626_v35   ;;  %v1641_v35 = vld [vmem:[%s6341_s3 + $0xb8] sm:$0xff] }
 0x232   :  { %2177 = vperm.xlu1 %2649, %v1627_v37   ;;  %v1642_v37 = vld [vmem:[%s6341_s3 + $0xc0] sm:$0xff] }
 0x236   :  { %v5551_v24 = vpop.permute.xlu2 %1879  ;;  %2212 = vperm.xlu0 %2648, %v1634_v3  }
 0x237   :  { %v5562_v8 = vpop.permute.xlu0 %1874 }
 0x238   :  { %2187 = vperm.xlu2 %2647, %v1629_v33   ;;  %v5564_v43 = vpop.permute.xlu1 %1854 }
 0x23a   :  { %2192 = vperm.xlu1 %2649, %v1630_v50  }
 0x23e   :  { %v5566_v57 = vpop.permute.xlu2 %1894  ;;  %2227 = vperm.xlu0 %2648, %v1637_v19   ;;  %v1649_v19 = vld [vmem:[%s6341_s3 + $0xf8] sm:$0xff] }
 0x240   :  { %2202 = vperm.xlu2 %2647, %v1632_v14   ;;  %v5577_v6 = vpop.permute.xlu0 %1889  ;;  %v1644_v14 = vld [vmem:[%s6341_s3 + $0xd0] sm:$0xff] }
 0x242   :  { %2207 = vperm.xlu1 %2649, %v1633_v25   ;;  %v1645_v25 = vld [vmem:[%s6341_s3 + $0xd8] sm:$0xff] }
 0x243   :  { %v5581_v18 = vpop.permute.xlu1 %1869 }
 0x246   :  { %v5579_v23 = vpop.permute.xlu2 %1909  ;;  %2242 = vperm.xlu0 %2648, %v1640_v29  }
 0x247   :  { %6653 = vst [vmem:[#allocation66_spill] sm:$0xff] %v5579_v23  ;;  %v1664_v23 = vld [vmem:[%s6341_s3 + $0x170] sm:$0xff] }
 0x248   :  { %2217 = vperm.xlu2 %2647, %v1635_v51   ;;  %v5592_v5 = vpop.permute.xlu0 %1904 }
 0x24a   :  { %2222 = vperm.xlu1 %2649, %v1636_v46  }
 0x24b   :  { %v5596_v28 = vpop.permute.xlu1 %1884 }
 0x24e   :  { %v5594_v54 = vpop.permute.xlu2 %1924  ;;  %2257 = vperm.xlu0 %2648, %v1643_v38   ;;  %v1652_v38 = vld [vmem:[%s6341_s3 + $0x110] sm:$0xff] }
 0x24f   :  { %6654 = vst [vmem:[#allocation67_spill] sm:$0xff] %v5594_v54  ;;  %v6668_v54 = vld [vmem:[#allocation36_spill] sm:$0xff] }
 0x250   :  { %2232 = vperm.xlu2 %2647, %v1638_v40   ;;  %v5607_v17 = vpop.permute.xlu0 %1919  ;;  %v1647_v40 = vld [vmem:[%s6341_s3 + $0xe8] sm:$0xff] }
 0x252   :  { %2237 = vperm.xlu1 %2649, %v1639_v42   ;;  %v1648_v42 = vld [vmem:[%s6341_s3 + $0xf0] sm:$0xff] }
 0x254   :  { %v5611_v2 = vpop.permute.xlu1 %1899 }
 0x256   :  { %v5609_v58 = vpop.permute.xlu2 %1939  ;;  %2272 = vperm.xlu0 %2648, %v1646_v13  }
 0x257   :  { %6655 = vst [vmem:[#allocation68_spill] sm:$0xff] %v5609_v58 }
 0x258   :  { %2247 = vperm.xlu2 %2647, %v1641_v35   ;;  %v5622_v3 = vpop.permute.xlu0 %1934 }
 0x25a   :  { %2252 = vperm.xlu1 %2649, %v1642_v37  }
 0x25c   :  { %v5626_v50 = vpop.permute.xlu1 %1914 }
 0x25e   :  { %v5624_v33 = vpop.permute.xlu2 %1954  ;;  %2287 = vperm.xlu0 %2648, %v1649_v19   ;;  %v1655_v19 = vld [vmem:[%s6341_s3 + $0x128] sm:$0xff] }
 0x25f   :  { %6656 = vst [vmem:[#allocation69_spill] sm:$0xff] %v5624_v33 }
 0x260   :  { %2262 = vperm.xlu2 %2647, %v1644_v14   ;;  %v5637_v29 = vpop.permute.xlu0 %1949  ;;  %v1650_v14 = vld [vmem:[%s6341_s3 + $0x100] sm:$0xff] }
 0x261   :  { %6657 = vst [vmem:[#allocation70_spill] sm:$0xff] %v5637_v29  ;;  %v6670_v29 = vld [vmem:[#allocation39_spill] sm:$0xff] }
 0x262   :  { %2267 = vperm.xlu1 %2649, %v1645_v25   ;;  %v1651_v25 = vld [vmem:[%s6341_s3 + $0x108] sm:$0xff] }
 0x264   :  { %v5641_v46 = vpop.permute.xlu1 %1929 }
 0x266   :  { %v5639_v51 = vpop.permute.xlu2 %1969  ;;  %2302 = vperm.xlu0 %2648, %v1652_v38  }
 0x267   :  { %6658 = vst [vmem:[#allocation71_spill] sm:$0xff] %v5639_v51  ;;  %v2004_v51 = vmul.f32 %v5079_v31, %v3309_v39  ;;  %v6666_v31 = vld [vmem:[#allocation30_spill] sm:$0xff] }
 0x268   :  { %2277 = vperm.xlu2 %2647, %v1647_v40   ;;  %v5652_v13 = vpop.permute.xlu0 %1964 }
 0x269   :  { %6659 = vst [vmem:[#allocation72_spill] sm:$0xff] %v5652_v13  ;;  %v2007_v13 = vmul.f32 %v5170_v63, %v6668_v54 }
 0x26a   :  { %2282 = vperm.xlu1 %2649, %v1648_v42  }
 0x26c   :  { %v5656_v37 = vpop.permute.xlu1 %1944 }
 0x26d   :  { %6661 = vst [vmem:[#allocation74_spill] sm:$0xff] %v5656_v37 }
 0x26e   :  { %v5654_v35 = vpop.permute.xlu2 %1984  ;;  %2317 = vperm.xlu0 %2648, %v1655_v19   ;;  %v1653_v19 = vld [vmem:[%s6341_s3 + $0x118] sm:$0xff] }
 0x26f   :  { %6660 = vst [vmem:[#allocation73_spill] sm:$0xff] %v5654_v35  ;;  %v1658_v35 = vld [vmem:[%s6341_s3 + $0x140] sm:$0xff] }
 0x270   :  { %2292 = vperm.xlu2 %2647, %v1650_v14   ;;  %v5667_v38 = vpop.permute.xlu0 %1979  ;;  %v83_v14 = vld [vmem:[%s6342_s1 + $0x10] sm:$0xff] }
 0x271   :  { %6662 = vst [vmem:[#allocation75_spill] sm:$0xff] %v5667_v38  ;;  %v2068_v33 = vadd.f32 %v2004_v51, %v83_v14  ;;  %v2003_v38 = vmul.f32 %v5021_v36, %v6666_v31  ;;  %v86_v36 = vld [vmem:[%s6342_s1 + $0x28] sm:$0xff]  ;;  %v1657_v51 = vld [vmem:[%s6341_s3 + $0x138] sm:$0xff] }
 0x272   :  { %2297 = vperm.xlu1 %2649, %v1651_v25   ;;  %v1654_v25 = vld [vmem:[%s6341_s3 + $0x120] sm:$0xff]  ;;  %v2071_v14 = vadd.f32 %v2007_v13, %v86_v36 }
 0x274   :  { %v5671_v42 = vpop.permute.xlu1 %1959 }
 0x275   :  { %6664 = vst [vmem:[#allocation77_spill] sm:$0xff] %v5671_v42 }
 0x276   :  { %v5669_v40 = vpop.permute.xlu2 %1999  ;;  %2332 = vperm.xlu0 %2648, %v1658_v35   ;;  %v1661_v35 = vld [vmem:[%s6341_s3 + $0x158] sm:$0xff] }
 0x277   :  { %6663 = vst [vmem:[#allocation76_spill] sm:$0xff] %v5669_v40 }
 0x278   :  { %2307 = vperm.xlu2 %2647, %v1653_v19   ;;  %v5687_v40 = vpop.permute.xlu0 %1994  ;;  %v82_v19 = vld [vmem:[%s6342_s1 + $0x8] sm:$0xff] }
 0x279   :  { %6665 = vst [vmem:[#allocation78_spill] sm:$0xff] %v5687_v40  ;;  %v2067_v63 = vadd.f32 %v2003_v38, %v82_v19  ;;  %v6669_v40 = vld [vmem:[#allocation32_spill] sm:$0xff]  ;;  %v2010_v38 = vmul.f32 %v5124_v30, %v6670_v29  ;;  %v1659_v19 = vld [vmem:[%s6341_s3 + $0x148] sm:$0xff]  ;;  %v6672_v30 = vld [vmem:[#allocation65_spill] sm:$0xff] }
 0x27a   :  { %2312 = vperm.xlu1 %2649, %v1654_v25  }
 0x27c   :  { %v5691_v42 = vpop.permute.xlu1 %1974 }
 0x27d   :  { %6667 = vst [vmem:[#allocation30_spill] sm:$0xff] %v5691_v42 }
 0x27e   :  { %v2143_v58 = vpop.permute.xlu2 %2142  ;;  %2347 = vperm.xlu0 %2648, %v1661_v35   ;;  %v2006_v35 = vmul.f32 %v4981_v53, %v6669_v40  ;;  %v6671_v40 = vld [vmem:[#allocation29_spill] sm:$0xff] }
 0x27f   :  { %v2452_v39 = vadd.f32 %v2143_v58, %v2068_v33  ;;  %v1656_v58 = vld [vmem:[%s6341_s3 + $0x130] sm:$0xff]  ;;  %v2002_v29 = vmul.f32 %v6672_v30, %v6671_v40 }
 0x280   :  { %2322 = vperm.xlu2 %2647, %v1656_v58   ;;  %v2138_v54 = vpop.permute.xlu0 %2137 }
 0x281   :  { %v2516_v33 = vmax.f32 %v2452_v39, 0.0  ;;  %v2451_v25 = vadd.f32 %v2138_v54, %v2067_v63 }
 0x282   :  { %2327 = vperm.xlu1 %2649, %v1657_v51  }
 0x283   :  { %2580 = vst.msk [vmem:[%s6343_s4 + $0x10] sm:$0xff] %vm145_vm0, %v2516_v33  ;;  %v2515_v42 = vmax.f32 %v2451_v25, 0.0  ;;  %v1660_v33 = vld [vmem:[%s6341_s3 + $0x150] sm:$0xff] }
 0x284   :  { %v5716_v37 = vpop.permute.xlu1 %1989 }
 0x286   :  { %v2158_v39 = vpop.permute.xlu2 %2157  ;;  %2362 = vperm.xlu0 %2648, %v1664_v23  }
 0x287   :  { %v2455_v31 = vadd.f32 %v2158_v39, %v2071_v14  ;;  %v6673_v39 = vld [vmem:[#allocation34_spill] sm:$0xff] }
 0x288   :  { %2337 = vperm.xlu2 %2647, %v1659_v19   ;;  %v2153_v51 = vpop.permute.xlu0 %2152 }
 0x289   :  { %v2519_v58 = vmax.f32 %v2455_v31, 0.0  ;;  %v2009_v31 = vmul.f32 %v5277_v26, %v6673_v39 }
 0x28a   :  { %v85_v13 = vld [vmem:[%s6342_s1 + $0x20] sm:$0xff]  ;;  %2342 = vperm.xlu1 %2649, %v1660_v33  }
 0x28b   :  { %2579 = vst.msk [vmem:[%s6343_s4 + $0x8] sm:$0xff] %vm145_vm0, %v2515_v42  ;;  %v2070_v36 = vadd.f32 %v2006_v35, %v85_v13  ;;  %v1667_v35 = vld [vmem:[%s6341_s3 + $0x188] sm:$0xff]  ;;  %v6674_v13 = vld [vmem:[#allocation42_spill] sm:$0xff] }
 0x28c   :  { %v2133_v30 = vpop.permute.xlu1 %2132  ;;  %v2013_v19 = vmul.f32 %v5228_v59, %v6674_v13  ;;  %v6675_v59 = vld [vmem:[#allocation33_spill] sm:$0xff]  ;;  %v1670_v13 = vld [vmem:[%s6341_s3 + $0x1a0] sm:$0xff] }
 0x28d   :  { %v2454_v54 = vadd.f32 %v2153_v51, %v2070_v36  ;;  %v2005_v33 = vmul.f32 %v4909_v62, %v6675_v59 }
 0x28e   :  { %v2173_v23 = vpop.permute.xlu2 %2172  ;;  %2377 = vperm.xlu0 %2648, %v1667_v35  }
 0x28f   :  { %v2518_v40 = vmax.f32 %v2454_v54, 0.0 }
 0x290   :  { %v2168_v62 = vpop.permute.xlu0 %2167 }
 0x292   :  { %v89_v53 = vld [vmem:[%s6342_s1 + $0x40] sm:$0xff] }
 0x293   :  { %2583 = vst.msk [vmem:[%s6343_s4 + $0x28] sm:$0xff] %vm145_vm0, %v2519_v58  ;;  %v2074_v63 = vadd.f32 %v2010_v38, %v89_v53  ;;  %v1662_v53 = vld [vmem:[%s6341_s3 + $0x160] sm:$0xff] }
 0x294   :  { %2352 = vperm.xlu2 %2647, %v1662_v53   ;;  %v2148_v35 = vpop.permute.xlu1 %2147 }
 0x295   :  { %v2458_v25 = vadd.f32 %v2173_v23, %v2074_v63 }
 0x296   :  { %2392 = vperm.xlu0 %2648, %v1670_v13  }
 0x29a   :  { %v81_v42 = vld [vmem:[%s6342_s1] sm:$0xff]  ;;  %v88_v38 = vld [vmem:[%s6342_s1 + $0x38] sm:$0xff] }
 0x29b   :  { %v2066_v14 = vadd.f32 %v2002_v29, %v81_v42  ;;  %v2522_v29 = vmax.f32 %v2458_v25, 0.0  ;;  %2582 = vst.msk [vmem:[%s6343_s4 + $0x20] sm:$0xff] %vm145_vm0, %v2518_v40  ;;  %v1663_v42 = vld [vmem:[%s6341_s3 + $0x168] sm:$0xff]  ;;  %v2073_v51 = vadd.f32 %v2009_v31, %v88_v38  ;;  %v6676_v40 = vld [vmem:[#allocation37_spill] sm:$0xff] }
 0x29c   :  { %2357 = vperm.xlu1 %2649, %v1663_v42   ;;  %v2012_v31 = vmul.f32 %v5367_v21, %v6676_v40 }
 0x29d   :  { %v2450_v58 = vadd.f32 %v2133_v30, %v2066_v14  ;;  %v2457_v23 = vadd.f32 %v2168_v62, %v2073_v51  ;;  %v2188_v14 = vpop.permute.xlu2 %2187 }
 0x29f   :  { %v2514_v36 = vmax.f32 %v2450_v58, 0.0  ;;  %v2521_v30 = vmax.f32 %v2457_v23, 0.0  ;;  %v6677_v58 = vld [vmem:[#allocation45_spill] sm:$0xff] }
 0x2a0   :  { %v2016_v38 = vmul.f32 %v5314_v60, %v6677_v58  ;;  %v6678_v60 = vld [vmem:[#allocation35_spill] sm:$0xff] }
 0x2a1   :  { %v2008_v59 = vmul.f32 %v5074_v27, %v6678_v60  ;;  %v2183_v27 = vpop.permute.xlu0 %2182 }
 0x2a2   :  { %v92_v26 = vld [vmem:[%s6342_s1 + $0x58] sm:$0xff] }
 0x2a3   :  { %2586 = vst.msk [vmem:[%s6343_s4 + $0x40] sm:$0xff] %vm145_vm0, %v2522_v29  ;;  %v2077_v54 = vadd.f32 %v2013_v19, %v92_v26  ;;  %v1665_v29 = vld [vmem:[%s6341_s3 + $0x178] sm:$0xff] }
 0x2a4   :  { %2367 = vperm.xlu2 %2647, %v1665_v29  }
 0x2a5   :  { %v2461_v39 = vadd.f32 %v2188_v14, %v2077_v54  ;;  %v2203_v54 = vpop.permute.xlu2 %2202 }
 0x2a7   :  { %v2525_v26 = vmax.f32 %v2461_v39, 0.0 }
 0x2aa   :  { %v84_v63 = vld [vmem:[%s6342_s1 + $0x18] sm:$0xff] }
 0x2ab   :  { %2578 = vst.msk [vmem:[%s6343_s4] sm:$0xff] %vm145_vm0, %v2514_v36  ;;  %v2069_v25 = vadd.f32 %v2005_v33, %v84_v63  ;;  %v1666_v36 = vld [vmem:[%s6341_s3 + $0x180] sm:$0xff] }
 0x2ac   :  { %2372 = vperm.xlu1 %2649, %v1666_v36  }
 0x2ad   :  { %v2453_v53 = vadd.f32 %v2148_v35, %v2069_v25  ;;  %v6679_v25 = vld [vmem:[#allocation40_spill] sm:$0xff] }
 0x2ae   :  { %v2015_v39 = vmul.f32 %v5432_v10, %v6679_v25  ;;  %v6680_v35 = vld [vmem:[#allocation48_spill] sm:$0xff]  ;;  %v6683_v25 = vld [vmem:[#allocation51_spill] sm:$0xff] }
 0x2af   :  { %v2517_v33 = vmax.f32 %v2453_v53, 0.0  ;;  %v2019_v13 = vmul.f32 %v5387_v16, %v6680_v35  ;;  %v1668_v53 = vld [vmem:[%s6341_s3 + $0x190] sm:$0xff]  ;;  %v6681_v16 = vld [vmem:[#allocation38_spill] sm:$0xff] }
 0x2b0   :  { %v2011_v29 = vmul.f32 %v5158_v20, %v6681_v16  ;;  %2382 = vperm.xlu2 %2647, %v1668_v53   ;;  %v2198_v20 = vpop.permute.xlu0 %2197 }
 0x2b2   :  { %v91_v19 = vld [vmem:[%s6342_s1 + $0x50] sm:$0xff] }
 0x2b3   :  { %2585 = vst.msk [vmem:[%s6343_s4 + $0x38] sm:$0xff] %vm145_vm0, %v2521_v30  ;;  %v2076_v42 = vadd.f32 %v2012_v31, %v91_v19  ;;  %v2163_v31 = vpop.permute.xlu1 %2162  ;;  %v1673_v30 = vld [vmem:[%s6341_s3 + $0x1b8] sm:$0xff] }
 0x2b4   :  { %2407 = vperm.xlu0 %2648, %v1673_v30   ;;  %v1671_v30 = vld [vmem:[%s6341_s3 + $0x1a8] sm:$0xff] }
 0x2b5   :  { %v2460_v62 = vadd.f32 %v2183_v27, %v2076_v42  ;;  %v2218_v42 = vpop.permute.xlu2 %2217 }
 0x2b7   :  { %v2524_v40 = vmax.f32 %v2460_v62, 0.0 }
 0x2b8   :  { %2397 = vperm.xlu2 %2647, %v1671_v30  }
 0x2ba   :  { %v95_v21 = vld [vmem:[%s6342_s1 + $0x70] sm:$0xff] }
 0x2bb   :  { %2589 = vst.msk [vmem:[%s6343_s4 + $0x58] sm:$0xff] %vm145_vm0, %v2525_v26  ;;  %v2080_v63 = vadd.f32 %v2016_v38, %v95_v21  ;;  %v1669_v21 = vld [vmem:[%s6341_s3 + $0x198] sm:$0xff] }
 0x2bc   :  { %2387 = vperm.xlu1 %2649, %v1669_v21  }
 0x2bd   :  { %v2464_v14 = vadd.f32 %v2203_v54, %v2080_v63  ;;  %v6682_v63 = vld [vmem:[#allocation43_spill] sm:$0xff] }
 0x2be   :  { %v2018_v62 = vmul.f32 %v5464_v22, %v6682_v63 }
 0x2bf   :  { %v2528_v19 = vmax.f32 %v2464_v14, 0.0  ;;  %v1676_v14 = vld [vmem:[%s6341_s3 + $0x1d0] sm:$0xff] }
 0x2c0   :  { %2422 = vperm.xlu0 %2648, %v1676_v14  }
 0x2c2   :  { %v87_v51 = vld [vmem:[%s6342_s1 + $0x30] sm:$0xff] }
 0x2c3   :  { %2581 = vst.msk [vmem:[%s6343_s4 + $0x18] sm:$0xff] %vm145_vm0, %v2517_v33  ;;  %v2072_v23 = vadd.f32 %v2008_v59, %v87_v51 }
 0x2c5   :  { %v2456_v58 = vadd.f32 %v2163_v31, %v2072_v23  ;;  %v2178_v23 = vpop.permute.xlu1 %2177 }
 0x2c7   :  { %v2520_v26 = vmax.f32 %v2456_v58, 0.0 }
 0x2ca   :  { %v94_v38 = vld [vmem:[%s6342_s1 + $0x68] sm:$0xff] }
 0x2cb   :  { %2588 = vst.msk [vmem:[%s6343_s4 + $0x50] sm:$0xff] %vm145_vm0, %v2524_v40  ;;  %v2079_v60 = vadd.f32 %v2015_v39, %v94_v38  ;;  %v2022_v39 = vmul.f32 %v5450_v48, %v6683_v25  ;;  %v6684_v48 = vld [vmem:[#allocation41_spill] sm:$0xff]  ;;  %v1672_v38 = vld [vmem:[%s6341_s3 + $0x1b0] sm:$0xff]  ;;  %v1675_v25 = vld [vmem:[%s6341_s3 + $0x1c8] sm:$0xff] }
 0x2cc   :  { %2402 = vperm.xlu1 %2649, %v1672_v38  }
 0x2cd   :  { %v2463_v36 = vadd.f32 %v2198_v20, %v2079_v60  ;;  %v6685_v60 = vld [vmem:[#allocation46_spill] sm:$0xff] }
 0x2cf   :  { %v2527_v54 = vmax.f32 %v2463_v36, 0.0  ;;  %v1679_v36 = vld [vmem:[%s6341_s3 + $0x1e8] sm:$0xff] }
 0x2d0   :  { %2437 = vperm.xlu0 %2648, %v1679_v36  }
 0x2d2   :  { %v98_v10 = vld [vmem:[%s6342_s1 + $0x88] sm:$0xff] }
 0x2d3   :  { %2592 = vst.msk [vmem:[%s6343_s4 + $0x70] sm:$0xff] %vm145_vm0, %v2528_v19  ;;  %v2083_v33 = vadd.f32 %v2019_v13, %v98_v10  ;;  %v2014_v13 = vmul.f32 %v5238_v11, %v6684_v48  ;;  %v2213_v11 = vpop.permute.xlu0 %2212 }
 0x2d4   :  { %2417 = vperm.xlu1 %2649, %v1675_v25  }
 0x2d5   :  { %v2467_v27 = vadd.f32 %v2218_v42, %v2083_v33  ;;  %v2193_v33 = vpop.permute.xlu1 %2192  ;;  %v6686_v42 = vld [vmem:[#allocation54_spill] sm:$0xff] }
 0x2d7   :  { %v2531_v35 = vmax.f32 %v2467_v27, 0.0 }
 0x2da   :  { %v90_v59 = vld [vmem:[%s6342_s1 + $0x48] sm:$0xff] }
 0x2db   :  { %2584 = vst.msk [vmem:[%s6343_s4 + $0x30] sm:$0xff] %vm145_vm0, %v2520_v26  ;;  %v2075_v51 = vadd.f32 %v2011_v29, %v90_v59  ;;  %v2233_v29 = vpop.permute.xlu2 %2232  ;;  %v2021_v59 = vmul.f32 %v5487_v34, %v6685_v60 }
 0x2dd   :  { %v2459_v40 = vadd.f32 %v2178_v23, %v2075_v51  ;;  %v2025_v51 = vmul.f32 %v5479_v9, %v6686_v42  ;;  %v6687_v9 = vld [vmem:[#allocation44_spill] sm:$0xff] }
 0x2de   :  { %v2017_v23 = vmul.f32 %v5316_v45, %v6687_v9  ;;  %v2228_v45 = vpop.permute.xlu0 %2227 }
 0x2df   :  { %v2523_v58 = vmax.f32 %v2459_v40, 0.0 }
 0x2e2   :  { %v97_v31 = vld [vmem:[%s6342_s1 + $0x80] sm:$0xff] }
 0x2e3   :  { %2591 = vst.msk [vmem:[%s6343_s4 + $0x68] sm:$0xff] %vm145_vm0, %v2527_v54  ;;  %v2082_v53 = vadd.f32 %v2018_v62, %v97_v31  ;;  %v1674_v62 = vld [vmem:[%s6341_s3 + $0x1c0] sm:$0xff] }
 0x2e4   :  { %2412 = vperm.xlu2 %2647, %v1674_v62   ;;  %v6691_v62 = vld [vmem:[#allocation52_spill] sm:$0xff] }
 0x2e5   :  { %v2466_v16 = vadd.f32 %v2213_v11, %v2082_v53  ;;  %v2208_v53 = vpop.permute.xlu1 %2207 }
 0x2e7   :  { %v2530_v20 = vmax.f32 %v2466_v16, 0.0 }
 0x2ea   :  { %v101_v22 = vld [vmem:[%s6342_s1 + $0xa0] sm:$0xff] }
 0x2eb   :  { %2595 = vst.msk [vmem:[%s6343_s4 + $0x88] sm:$0xff] %vm145_vm0, %v2531_v35  ;;  %v2086_v10 = vadd.f32 %v2022_v39, %v101_v22  ;;  %v2248_v35 = vpop.permute.xlu2 %2247 }
 0x2ed   :  { %v2470_v21 = vadd.f32 %v2233_v29, %v2086_v10  ;;  %v1677_v29 = vld [vmem:[%s6341_s3 + $0x1d8] sm:$0xff]  ;;  %v2223_v9 = vpop.permute.xlu1 %2222 }
 0x2ee   :  { %2427 = vperm.xlu2 %2647, %v1677_v29  }
 0x2ef   :  { %v2534_v54 = vmax.f32 %v2470_v21, 0.0 }
 0x2f2   :  { %v93_v19 = vld [vmem:[%s6342_s1 + $0x60] sm:$0xff] }
 0x2f3   :  { %2587 = vst.msk [vmem:[%s6343_s4 + $0x48] sm:$0xff] %vm145_vm0, %v2523_v58  ;;  %v2078_v26 = vadd.f32 %v2014_v13, %v93_v19  ;;  %v6688_v13 = vld [vmem:[#allocation49_spill] sm:$0xff] }
 0x2f4   :  { %v2024_v58 = vmul.f32 %v5504_v12, %v6688_v13  ;;  %v6689_v19 = vld [vmem:[#allocation57_spill] sm:$0xff] }
 0x2f5   :  { %v2462_v27 = vadd.f32 %v2193_v33, %v2078_v26  ;;  %v2028_v11 = vmul.f32 %v5499_v52, %v6689_v19  ;;  %v6690_v52 = vld [vmem:[#allocation47_spill] sm:$0xff]  ;;  %v2238_v29 = vpop.permute.xlu1 %2237 }
 0x2f6   :  { %v2020_v21 = vmul.f32 %v5389_v0, %v6690_v52  ;;  %v2243_v0 = vpop.permute.xlu0 %2242 }
 0x2f7   :  { %v2526_v14 = vmax.f32 %v2462_v27, 0.0 }
 0x2fa   :  { %v100_v63 = vld [vmem:[%s6342_s1 + $0x98] sm:$0xff] }
 0x2fb   :  { %2594 = vst.msk [vmem:[%s6343_s4 + $0x80] sm:$0xff] %vm145_vm0, %v2530_v20  ;;  %v2085_v39 = vadd.f32 %v2021_v59, %v100_v63  ;;  %v1678_v59 = vld [vmem:[%s6341_s3 + $0x1e0] sm:$0xff] }
 0x2fc   :  { %2432 = vperm.xlu1 %2649, %v1678_v59   ;;  %v6696_v59 = vld [vmem:[#allocation53_spill] sm:$0xff] }
 0x2fd   :  { %v2469_v30 = vadd.f32 %v2228_v45, %v2085_v39 }
 0x2ff   :  { %v2533_v38 = vmax.f32 %v2469_v30, 0.0 }
 0x302   :  { %v104_v34 = vld [vmem:[%s6342_s1 + $0xb8] sm:$0xff] }
 0x303   :  { %2598 = vst.msk [vmem:[%s6343_s4 + $0xa0] sm:$0xff] %vm145_vm0, %v2534_v54  ;;  %v2089_v31 = vadd.f32 %v2025_v51, %v104_v34  ;;  %v2263_v51 = vpop.permute.xlu2 %2262  ;;  %v2027_v54 = vmul.f32 %v5519_v55, %v6691_v62  ;;  %v6697_v62 = vld [vmem:[#allocation58_spill] sm:$0xff] }
 0x305   :  { %v2473_v48 = vadd.f32 %v2248_v35, %v2089_v31  ;;  %v1681_v35 = vld [vmem:[%s6341_s3 + $0x1f8] sm:$0xff] }
 0x306   :  { %2447 = vperm.xlu1 %2649, %v1681_v35  }
 0x307   :  { %v2537_v26 = vmax.f32 %v2473_v48, 0.0 }
 0x30a   :  { %v96_v40 = vld [vmem:[%s6342_s1 + $0x78] sm:$0xff] }
 0x30b   :  { %2590 = vst.msk [vmem:[%s6343_s4 + $0x60] sm:$0xff] %vm145_vm0, %v2526_v14  ;;  %v2081_v22 = vadd.f32 %v2017_v23, %v96_v40  ;;  %v6692_v23 = vld [vmem:[#allocation60_spill] sm:$0xff] }
 0x30c   :  { %v2031_v14 = vmul.f32 %v5514_v32, %v6692_v23  ;;  %v1680_v40 = vld [vmem:[%s6341_s3 + $0x1f0] sm:$0xff]  ;;  %v6693_v32 = vld [vmem:[#allocation50_spill] sm:$0xff] }
 0x30d   :  { %v2465_v10 = vadd.f32 %v2208_v53, %v2081_v22  ;;  %v2023_v31 = vmul.f32 %v5439_v41, %v6693_v32  ;;  %2442 = vperm.xlu2 %2647, %v1680_v40   ;;  %v2258_v41 = vpop.permute.xlu0 %2257  ;;  %v6698_v23 = vld [vmem:[#allocation2_spill] sm:$0xff] }
 0x30f   :  { %v2529_v60 = vmax.f32 %v2465_v10, 0.0 }
 0x312   :  { %v103_v16 = vld [vmem:[%s6342_s1 + $0xb0] sm:$0xff] }
 0x313   :  { %2597 = vst.msk [vmem:[%s6343_s4 + $0x98] sm:$0xff] %vm145_vm0, %v2533_v38  ;;  %v2088_v20 = vadd.f32 %v2024_v58, %v103_v16  ;;  %v2278_v38 = vpop.permute.xlu2 %2277 }
 0x315   :  { %v2472_v42 = vadd.f32 %v2243_v0, %v2088_v20  ;;  %v2026_v20 = vmul.f32 %v5466_v44, %v6696_v59 }
 0x317   :  { %v2536_v34 = vmax.f32 %v2472_v42, 0.0 }
 0x31a   :  { %v107_v12 = vld [vmem:[%s6342_s1 + $0xd0] sm:$0xff] }
 0x31b   :  { %2601 = vst.msk [vmem:[%s6343_s4 + $0xb8] sm:$0xff] %vm145_vm0, %v2537_v26  ;;  %v2092_v36 = vadd.f32 %v2028_v11, %v107_v12  ;;  %v6694_v11 = vld [vmem:[#allocation55_spill] sm:$0xff]  ;;  %v2293_v44 = vpop.permute.xlu2 %2292 }
 0x31c   :  { %v2030_v10 = vmul.f32 %v5534_v7, %v6694_v11  ;;  %v6695_v26 = vld [vmem:[#allocation63_spill] sm:$0xff] }
 0x31d   :  { %v2476_v63 = vadd.f32 %v2263_v51, %v2092_v36  ;;  %v2034_v12 = vmul.f32 %v5532_v61, %v6695_v26  ;;  %v2273_v36 = vpop.permute.xlu0 %2272  ;;  %v6702_v26 = vld [vmem:[#allocation59_spill] sm:$0xff] }
 0x31f   :  { %v2540_v45 = vmax.f32 %v2476_v63, 0.0 }
 0x322   :  { %v99_v33 = vld [vmem:[%s6342_s1 + $0x90] sm:$0xff] }
 0x323   :  { %2593 = vst.msk [vmem:[%s6343_s4 + $0x78] sm:$0xff] %vm145_vm0, %v2529_v60  ;;  %v2084_v27 = vadd.f32 %v2020_v21, %v99_v33 }
 0x325   :  { %v2468_v25 = vadd.f32 %v2223_v9, %v2084_v27  ;;  %v2253_v9 = vpop.permute.xlu1 %2252 }
 0x327   :  { %v2532_v30 = vmax.f32 %v2468_v25, 0.0 }
 0x32a   :  { %v106_v39 = vld [vmem:[%s6342_s1 + $0xc8] sm:$0xff] }
 0x32b   :  { %2600 = vst.msk [vmem:[%s6343_s4 + $0xb0] sm:$0xff] %vm145_vm0, %v2536_v34  ;;  %v2091_v22 = vadd.f32 %v2027_v54, %v106_v39  ;;  %v2033_v54 = vmul.f32 %v5549_v49, %v6697_v62 }
 0x32d   :  { %v2475_v58 = vadd.f32 %v2258_v41, %v2091_v22 }
 0x32f   :  { %v2539_v16 = vmax.f32 %v2475_v58, 0.0 }
 0x332   :  { %v110_v55 = vld [vmem:[%s6342_s1 + $0xe8] sm:$0xff] }
 0x333   :  { %2604 = vst.msk [vmem:[%s6343_s4 + $0xd0] sm:$0xff] %vm145_vm0, %v2540_v45  ;;  %v2095_v13 = vadd.f32 %v2031_v14, %v110_v55  ;;  %v2037_v14 = vmul.f32 %v5547_v56, %v6698_v23  ;;  %v6699_v45 = vld [vmem:[#allocation56_spill] sm:$0xff] }
 0x334   :  { %v2029_v55 = vmul.f32 %v5490_v15, %v6699_v45  ;;  %v2308_v15 = vpop.permute.xlu2 %2307  ;;  %v6706_v45 = vld [vmem:[#allocation7_spill] sm:$0xff] }
 0x335   :  { %v2479_v19 = vadd.f32 %v2278_v38, %v2095_v13  ;;  %v6700_v13 = vld [vmem:[#allocation61_spill] sm:$0xff] }
 0x336   :  { %v2036_v58 = vmul.f32 %v5564_v43, %v6700_v13 }
 0x337   :  { %v2543_v60 = vmax.f32 %v2479_v19, 0.0  ;;  %v6701_v19 = vld [vmem:[#allocation3_spill] sm:$0xff] }
 0x338   :  { %v2040_v11 = vmul.f32 %v5562_v8, %v6701_v19 }
 0x33a   :  { %v102_v48 = vld [vmem:[%s6342_s1 + $0xa8] sm:$0xff] }
 0x33b   :  { %2596 = vst.msk [vmem:[%s6343_s4 + $0x90] sm:$0xff] %vm145_vm0, %v2532_v30  ;;  %v2087_v53 = vadd.f32 %v2023_v31, %v102_v48  ;;  %v2288_v30 = vpop.permute.xlu0 %2287 }
 0x33d   :  { %v2471_v52 = vadd.f32 %v2238_v29, %v2087_v53  ;;  %v2268_v53 = vpop.permute.xlu1 %2267 }
 0x33f   :  { %v2535_v33 = vmax.f32 %v2471_v52, 0.0 }
 0x342   :  { %v109_v21 = vld [vmem:[%s6342_s1 + $0xe0] sm:$0xff] }
 0x343   :  { %2603 = vst.msk [vmem:[%s6343_s4 + $0xc8] sm:$0xff] %vm145_vm0, %v2539_v16  ;;  %v2094_v61 = vadd.f32 %v2030_v10, %v109_v21 }
 0x345   :  { %v2478_v51 = vadd.f32 %v2273_v36, %v2094_v61  ;;  %v6703_v61 = vld [vmem:[#allocation4_spill] sm:$0xff] }
 0x347   :  { %v2542_v34 = vmax.f32 %v2478_v51, 0.0  ;;  %v6704_v51 = vld [vmem:[#allocation6_spill] sm:$0xff] }
 0x34a   :  { %v113_v7 = vld [vmem:[%s6342_s1 + $0x100] sm:$0xff] }
 0x34b   :  { %2607 = vst.msk [vmem:[%s6343_s4 + $0xe8] sm:$0xff] %vm145_vm0, %v2543_v60  ;;  %v2098_v42 = vadd.f32 %v2034_v12, %v113_v7  ;;  %v2032_v12 = vmul.f32 %v5506_v47, %v6702_v26  ;;  %v2303_v60 = vpop.permute.xlu0 %2302  ;;  %v2323_v47 = vpop.permute.xlu2 %2322 }
 0x34d   :  { %v2482_v63 = vadd.f32 %v2293_v44, %v2098_v42  ;;  %v2283_v42 = vpop.permute.xlu1 %2282  ;;  %v2043_v44 = vmul.f32 %v5577_v6, %v6704_v51  ;;  %v6712_v51 = vld [vmem:[#allocation13_spill] sm:$0xff] }
 0x34f   :  { %v2546_v40 = vmax.f32 %v2482_v63, 0.0 }
 0x352   :  { %v105_v0 = vld [vmem:[%s6342_s1 + $0xc0] sm:$0xff] }
 0x353   :  { %2599 = vst.msk [vmem:[%s6343_s4 + $0xa8] sm:$0xff] %vm145_vm0, %v2535_v33  ;;  %v2090_v27 = vadd.f32 %v2026_v20, %v105_v0  ;;  %v2039_v0 = vmul.f32 %v5581_v18, %v6703_v61 }
 0x355   :  { %v2474_v25 = vadd.f32 %v2253_v9, %v2090_v27 }
 0x357   :  { %v2538_v32 = vmax.f32 %v2474_v25, 0.0 }
 0x35a   :  { %v112_v39 = vld [vmem:[%s6342_s1 + $0xf8] sm:$0xff] }
 0x35b   :  { %2606 = vst.msk [vmem:[%s6343_s4 + $0xe0] sm:$0xff] %vm145_vm0, %v2542_v34  ;;  %v2097_v56 = vadd.f32 %v2033_v54, %v112_v39  ;;  %v6705_v54 = vld [vmem:[#allocation62_spill] sm:$0xff] }
 0x35c   :  { %v2035_v34 = vmul.f32 %v5521_v1, %v6705_v54  ;;  %v2338_v1 = vpop.permute.xlu2 %2337 }
 0x35d   :  { %v2481_v22 = vadd.f32 %v2288_v30, %v2097_v56  ;;  %v2298_v56 = vpop.permute.xlu1 %2297 }
 0x35f   :  { %v2545_v38 = vmax.f32 %v2481_v22, 0.0 }
 0x362   :  { %v116_v49 = vld [vmem:[%s6342_s1 + $0x118] sm:$0xff] }
 0x363   :  { %2610 = vst.msk [vmem:[%s6343_s4 + $0x100] sm:$0xff] %vm145_vm0, %v2546_v40  ;;  %v2101_v35 = vadd.f32 %v2037_v14, %v116_v49  ;;  %v2318_v14 = vpop.permute.xlu0 %2317 }
 0x365   :  { %v2485_v41 = vadd.f32 %v2308_v15, %v2101_v35  ;;  %v2313_v26 = vpop.permute.xlu1 %2312 }
 0x367   :  { %v2549_v29 = vmax.f32 %v2485_v41, 0.0 }
 0x36a   :  { %v108_v31 = vld [vmem:[%s6342_s1 + $0xd8] sm:$0xff] }
 0x36b   :  { %2602 = vst.msk [vmem:[%s6343_s4 + $0xc0] sm:$0xff] %vm145_vm0, %v2538_v32  ;;  %v2093_v48 = vadd.f32 %v2029_v55, %v108_v31  ;;  %v2042_v55 = vmul.f32 %v5596_v28, %v6706_v45  ;;  %v6707_v31 = vld [vmem:[#allocation9_spill] sm:$0xff] }
 0x36c   :  { %v2046_v30 = vmul.f32 %v5592_v5, %v6707_v31 }
 0x36d   :  { %v2477_v10 = vadd.f32 %v2268_v53, %v2093_v48  ;;  %v6708_v48 = vld [vmem:[#allocation5_spill] sm:$0xff] }
 0x36e   :  { %v2038_v41 = vmul.f32 %v5536_v4, %v6708_v48  ;;  %v2353_v4 = vpop.permute.xlu2 %2352 }
 0x36f   :  { %v2541_v52 = vmax.f32 %v2477_v10, 0.0 }
 0x372   :  { %v115_v16 = vld [vmem:[%s6342_s1 + $0x110] sm:$0xff] }
 0x373   :  { %2609 = vst.msk [vmem:[%s6343_s4 + $0xf8] sm:$0xff] %vm145_vm0, %v2545_v38  ;;  %v2100_v8 = vadd.f32 %v2036_v58, %v115_v16  ;;  %v2333_v38 = vpop.permute.xlu0 %2332  ;;  %v6709_v16 = vld [vmem:[#allocation10_spill] sm:$0xff] }
 0x375   :  { %v2484_v59 = vadd.f32 %v2303_v60, %v2100_v8 }
 0x377   :  { %v2548_v36 = vmax.f32 %v2484_v59, 0.0 }
 0x37a   :  { %v119_v43 = vld [vmem:[%s6342_s1 + $0x130] sm:$0xff] }
 0x37b   :  { %2613 = vst.msk [vmem:[%s6343_s4 + $0x118] sm:$0xff] %vm145_vm0, %v2549_v29  ;;  %v2104_v7 = vadd.f32 %v2040_v11, %v119_v43  ;;  %v2045_v29 = vmul.f32 %v5611_v2, %v6709_v16 }
 0x37d   :  { %v2488_v33 = vadd.f32 %v2323_v47, %v2104_v7  ;;  %v6711_v7 = vld [vmem:[#allocation8_spill] sm:$0xff] }
 0x37e   :  { %v2041_v59 = vmul.f32 %v5551_v24, %v6711_v7  ;;  %v2368_v24 = vpop.permute.xlu2 %2367 }
 0x37f   :  { %v2552_v62 = vmax.f32 %v2488_v33, 0.0  ;;  %v2348_v33 = vpop.permute.xlu0 %2347 }
 0x382   :  { %v111_v21 = vld [vmem:[%s6342_s1 + $0xf0] sm:$0xff] }
 0x383   :  { %2605 = vst.msk [vmem:[%s6343_s4 + $0xd8] sm:$0xff] %vm145_vm0, %v2541_v52  ;;  %v2096_v20 = vadd.f32 %v2032_v12, %v111_v21  ;;  %v6710_v12 = vld [vmem:[#allocation12_spill] sm:$0xff] }
 0x384   :  { %v2049_v52 = vmul.f32 %v5607_v17, %v6710_v12 }
 0x385   :  { %v2480_v27 = vadd.f32 %v2283_v42, %v2096_v20 }
 0x387   :  { %v2544_v9 = vmax.f32 %v2480_v27, 0.0 }
 0x38a   :  { %v118_v63 = vld [vmem:[%s6342_s1 + $0x128] sm:$0xff] }
 0x38b   :  { %2612 = vst.msk [vmem:[%s6343_s4 + $0x110] sm:$0xff] %vm145_vm0, %v2548_v36  ;;  %v2103_v6 = vadd.f32 %v2039_v0, %v118_v63  ;;  %v2328_v63 = vpop.permute.xlu1 %2327 }
 0x38d   :  { %v2487_v39 = vadd.f32 %v2318_v14, %v2103_v6  ;;  %v6714_v6 = vld [vmem:[#allocation11_spill] sm:$0xff] }
 0x38f   :  { %v2551_v32 = vmax.f32 %v2487_v39, 0.0  ;;  %v2363_v39 = vpop.permute.xlu0 %2362 }
 0x392   :  { %v122_v18 = vld [vmem:[%s6342_s1 + $0x148] sm:$0xff] }
 0x393   :  { %2616 = vst.msk [vmem:[%s6343_s4 + $0x130] sm:$0xff] %vm145_vm0, %v2552_v62  ;;  %v2107_v25 = vadd.f32 %v2043_v44, %v122_v18  ;;  %v2048_v44 = vmul.f32 %v5626_v50, %v6712_v51  ;;  %v6713_v62 = vld [vmem:[#allocation15_spill] sm:$0xff]  ;;  %v2343_v31 = vpop.permute.xlu1 %2342 }
 0x394   :  { %v2052_v18 = vmul.f32 %v5622_v3, %v6713_v62 }
 0x395   :  { %v2491_v49 = vadd.f32 %v2338_v1, %v2107_v25 }
 0x397   :  { %v2555_v15 = vmax.f32 %v2491_v49, 0.0 }
 0x39a   :  { %v114_v23 = vld [vmem:[%s6342_s1 + $0x108] sm:$0xff] }
 0x39b   :  { %2608 = vst.msk [vmem:[%s6343_s4 + $0xf0] sm:$0xff] %vm145_vm0, %v2544_v9  ;;  %v2099_v40 = vadd.f32 %v2035_v34, %v114_v23  ;;  %v2044_v23 = vmul.f32 %v5566_v57, %v6714_v6  ;;  %v2383_v57 = vpop.permute.xlu2 %2382  ;;  %v6728_v6 = vld [vmem:[#allocation24_spill] sm:$0xff] }
 0x39d   :  { %v2483_v35 = vadd.f32 %v2298_v56, %v2099_v40 }
 0x39f   :  { %v2547_v13 = vmax.f32 %v2483_v35, 0.0  ;;  %v6717_v35 = vld [vmem:[#allocation70_spill] sm:$0xff] }
 0x3a2   :  { %v121_v22 = vld [vmem:[%s6342_s1 + $0x140] sm:$0xff] }
 0x3a3   :  { %2615 = vst.msk [vmem:[%s6343_s4 + $0x128] sm:$0xff] %vm145_vm0, %v2551_v32  ;;  %v2106_v5 = vadd.f32 %v2042_v55, %v121_v22  ;;  %v6715_v55 = vld [vmem:[#allocation16_spill] sm:$0xff] }
 0x3a4   :  { %v2051_v32 = vmul.f32 %v5641_v46, %v6715_v55 }
 0x3a5   :  { %v2490_v19 = vadd.f32 %v2333_v38, %v2106_v5 }
 0x3a7   :  { %v2554_v43 = vmax.f32 %v2490_v19, 0.0  ;;  %v2378_v19 = vpop.permute.xlu0 %2377 }
 0x3aa   :  { %v125_v28 = vld [vmem:[%s6342_s1 + $0x160] sm:$0xff] }
 0x3ab   :  { %2619 = vst.msk [vmem:[%s6343_s4 + $0x148] sm:$0xff] %vm145_vm0, %v2555_v15  ;;  %v2110_v53 = vadd.f32 %v2046_v30, %v125_v28  ;;  %v6716_v30 = vld [vmem:[#allocation18_spill] sm:$0xff] }
 0x3ac   :  { %v2055_v22 = vmul.f32 %v6717_v35, %v6716_v30 }
 0x3ad   :  { %v2494_v10 = vadd.f32 %v2353_v4, %v2110_v53 }
 0x3af   :  { %v2558_v60 = vmax.f32 %v2494_v10, 0.0  ;;  %v2398_v10 = vpop.permute.xlu2 %2397 }
 0x3b2   :  { %v117_v58 = vld [vmem:[%s6342_s1 + $0x120] sm:$0xff] }
 0x3b3   :  { %2611 = vst.msk [vmem:[%s6343_s4 + $0x108] sm:$0xff] %vm145_vm0, %v2547_v13  ;;  %v2102_v11 = vadd.f32 %v2038_v41, %v117_v58  ;;  %v6718_v41 = vld [vmem:[#allocation14_spill] sm:$0xff] }
 0x3b4   :  { %v6719_v13 = vld [vmem:[#allocation66_spill] sm:$0xff] }
 0x3b5   :  { %v2486_v8 = vadd.f32 %v2313_v26, %v2102_v11  ;;  %v2047_v5 = vmul.f32 %v6719_v13, %v6718_v41  ;;  %v6721_v26 = vld [vmem:[#allocation74_spill] sm:$0xff] }
 0x3b7   :  { %v2550_v47 = vmax.f32 %v2486_v8, 0.0  ;;  %v2358_v8 = vpop.permute.xlu1 %2357 }
 0x3ba   :  { %v124_v21 = vld [vmem:[%s6342_s1 + $0x158] sm:$0xff] }
 0x3bb   :  { %2618 = vst.msk [vmem:[%s6343_s4 + $0x140] sm:$0xff] %vm145_vm0, %v2554_v43  ;;  %v2109_v17 = vadd.f32 %v2045_v29, %v124_v21  ;;  %v6720_v43 = vld [vmem:[#allocation19_spill] sm:$0xff]  ;;  %v6722_v21 = vld [vmem:[#allocation21_spill] sm:$0xff] }
 0x3bc   :  { %v2054_v12 = vmul.f32 %v6721_v26, %v6720_v43 }
 0x3bd   :  { %v2493_v0 = vadd.f32 %v2348_v33, %v2109_v17  ;;  %v6725_v33 = vld [vmem:[#allocation67_spill] sm:$0xff] }
 0x3bf   :  { %v2557_v27 = vmax.f32 %v2493_v0, 0.0 }
 0x3c2   :  { %v128_v2 = vld [vmem:[%s6342_s1 + $0x178] sm:$0xff] }
 0x3c3   :  { %2622 = vst.msk [vmem:[%s6343_s4 + $0x160] sm:$0xff] %vm145_vm0, %v2558_v60  ;;  %v2113_v61 = vadd.f32 %v2049_v52, %v128_v2  ;;  %v6723_v60 = vld [vmem:[#allocation72_spill] sm:$0xff] }
 0x3c4   :  { %v2058_v2 = vmul.f32 %v6723_v60, %v6722_v21 }
 0x3c5   :  { %v2497_v42 = vadd.f32 %v2368_v24, %v2113_v61 }
 0x3c7   :  { %v2561_v9 = vmax.f32 %v2497_v42, 0.0  ;;  %v2393_v42 = vpop.permute.xlu0 %2392 }
 0x3ca   :  { %v120_v20 = vld [vmem:[%s6342_s1 + $0x138] sm:$0xff] }
 0x3cb   :  { %2614 = vst.msk [vmem:[%s6343_s4 + $0x120] sm:$0xff] %vm145_vm0, %v2550_v47  ;;  %v2105_v36 = vadd.f32 %v2041_v59, %v120_v20  ;;  %v6724_v20 = vld [vmem:[#allocation17_spill] sm:$0xff] }
 0x3cc   :  { %v2050_v61 = vmul.f32 %v6725_v33, %v6724_v20 }
 0x3cd   :  { %v2489_v54 = vadd.f32 %v2328_v63, %v2105_v36 }
 0x3cf   :  { %v2553_v14 = vmax.f32 %v2489_v54, 0.0  ;;  %v6727_v54 = vld [vmem:[#allocation77_spill] sm:$0xff] }
 0x3d2   :  { %v127_v34 = vld [vmem:[%s6342_s1 + $0x170] sm:$0xff] }
 0x3d3   :  { %2621 = vst.msk [vmem:[%s6343_s4 + $0x158] sm:$0xff] %vm145_vm0, %v2557_v27  ;;  %v2112_v3 = vadd.f32 %v2048_v44, %v127_v34  ;;  %v2413_v27 = vpop.permute.xlu2 %2412 }
 0x3d5   :  { %v2496_v40 = vadd.f32 %v2363_v39, %v2112_v3 }
 0x3d7   :  { %v2560_v56 = vmax.f32 %v2496_v40, 0.0  ;;  %v6730_v40 = vld [vmem:[#allocation20_spill] sm:$0xff] }
 0x3da   :  { %v131_v50 = vld [vmem:[%s6342_s1 + $0x190] sm:$0xff] }
 0x3db   :  { %2625 = vst.msk [vmem:[%s6343_s4 + $0x178] sm:$0xff] %vm145_vm0, %v2561_v9  ;;  %v2116_v1 = vadd.f32 %v2052_v18, %v131_v50  ;;  %v6726_v18 = vld [vmem:[#allocation22_spill] sm:$0xff]  ;;  %v2373_v50 = vpop.permute.xlu1 %2372  ;;  %v2428_v35 = vpop.permute.xlu2 %2427 }
 0x3dc   :  { %v2057_v34 = vmul.f32 %v6727_v54, %v6726_v18 }
 0x3dd   :  { %v2500_v45 = vadd.f32 %v2383_v57, %v2116_v1  ;;  %v6731_v57 = vld [vmem:[#allocation68_spill] sm:$0xff] }
 0x3df   :  { %v2564_v48 = vmax.f32 %v2500_v45, 0.0 }
 0x3e2   :  { %v123_v25 = vld [vmem:[%s6342_s1 + $0x150] sm:$0xff] }
 0x3e3   :  { %2617 = vst.msk [vmem:[%s6343_s4 + $0x138] sm:$0xff] %vm145_vm0, %v2553_v14  ;;  %v2108_v49 = vadd.f32 %v2044_v23, %v123_v25  ;;  %v6729_v23 = vld [vmem:[#allocation75_spill] sm:$0xff]  ;;  %v2388_v13 = vpop.permute.xlu1 %2387  ;;  %v2443_v60 = vpop.permute.xlu2 %2442 }
 0x3e4   :  { %v2061_v14 = vmul.f32 %v6729_v23, %v6728_v6 }
 0x3e5   :  { %v2492_v15 = vadd.f32 %v2343_v31, %v2108_v49  ;;  %v2053_v49 = vmul.f32 %v6731_v57, %v6730_v40  ;;  %v6744_v40 = vld [vmem:[#allocation76_spill] sm:$0xff] }
 0x3e7   :  { %v2556_v58 = vmax.f32 %v2492_v15, 0.0 }
 0x3ea   :  { %v130_v28 = vld [vmem:[%s6342_s1 + $0x188] sm:$0xff] }
 0x3eb   :  { %2624 = vst.msk [vmem:[%s6343_s4 + $0x170] sm:$0xff] %vm145_vm0, %v2560_v56  ;;  %v2115_v38 = vadd.f32 %v2051_v32, %v130_v28  ;;  %v2408_v56 = vpop.permute.xlu0 %2407  ;;  %v6732_v28 = vld [vmem:[#allocation25_spill] sm:$0xff]  ;;  %v2403_v20 = vpop.permute.xlu1 %2402 }
 0x3ed   :  { %v2499_v11 = vadd.f32 %v2378_v19, %v2115_v38 }
 0x3ef   :  { %v2563_v52 = vmax.f32 %v2499_v11, 0.0 }
 0x3f2   :  { %v134_v46 = vld [vmem:[%s6342_s1 + $0x1a8] sm:$0xff] }
 0x3f3   :  { %2628 = vst.msk [vmem:[%s6343_s4 + $0x190] sm:$0xff] %vm145_vm0, %v2564_v48  ;;  %v2119_v4 = vadd.f32 %v2055_v22, %v134_v46  ;;  %v6733_v48 = vld [vmem:[#allocation30_spill] sm:$0xff]  ;;  %v2418_v54 = vpop.permute.xlu1 %2417 }
 0x3f4   :  { %v2060_v46 = vmul.f32 %v6733_v48, %v6732_v28 }
 0x3f5   :  { %v2503_v29 = vadd.f32 %v2398_v10, %v2119_v4  ;;  %v6736_v10 = vld [vmem:[#allocation23_spill] sm:$0xff] }
 0x3f7   :  { %v2567_v47 = vmax.f32 %v2503_v29, 0.0 }
 0x3fa   :  { %v126_v53 = vld [vmem:[%s6342_s1 + $0x168] sm:$0xff] }
 0x3fb   :  { %2620 = vst.msk [vmem:[%s6343_s4 + $0x150] sm:$0xff] %vm145_vm0, %v2556_v58  ;;  %v2111_v16 = vadd.f32 %v2047_v5, %v126_v53  ;;  %v6734_v5 = vld [vmem:[#allocation27_spill] sm:$0xff]  ;;  %v6735_v58 = vld [vmem:[#allocation78_spill] sm:$0xff] }
 0x3fc   :  { %v2064_v38 = vmul.f32 %v6735_v58, %v6734_v5 }
 0x3fd   :  { %v2495_v7 = vadd.f32 %v2358_v8, %v2111_v16  ;;  %v6737_v16 = vld [vmem:[#allocation69_spill] sm:$0xff] }
 0x3fe   :  { %v2056_v29 = vmul.f32 %v6737_v16, %v6736_v10 }
 0x3ff   :  { %v2559_v0 = vmax.f32 %v2495_v7, 0.0 }
 0x402   :  { %v133_v59 = vld [vmem:[%s6342_s1 + $0x1a0] sm:$0xff] }
 0x403   :  { %2627 = vst.msk [vmem:[%s6343_s4 + $0x188] sm:$0xff] %vm145_vm0, %v2563_v52  ;;  %v2118_v24 = vadd.f32 %v2054_v12, %v133_v59  ;;  %v2423_v52 = vpop.permute.xlu0 %2422  ;;  %v6738_v59 = vld [vmem:[#allocation64_spill] sm:$0xff] }
 0x405   :  { %v2502_v44 = vadd.f32 %v2393_v42, %v2118_v24  ;;  %v6739_v24 = vld [vmem:[#allocation26_spill] sm:$0xff] }
 0x407   :  { %v2566_v9 = vmax.f32 %v2502_v44, 0.0 }
 0x40a   :  { %v137_v17 = vld [vmem:[%s6342_s1 + $0x1c0] sm:$0xff] }
 0x40b   :  { %2631 = vst.msk [vmem:[%s6343_s4 + $0x1a8] sm:$0xff] %vm145_vm0, %v2567_v47  ;;  %v2122_v51 = vadd.f32 %v2058_v2, %v137_v17  ;;  %v2063_v47 = vmul.f32 %v5716_v37, %v6738_v59 }
 0x40d   :  { %v2506_v62 = vadd.f32 %v2413_v27, %v2122_v51  ;;  %v2438_v27 = vpop.permute.xlu0 %2437 }
 0x40f   :  { %v2570_v39 = vmax.f32 %v2506_v62, 0.0 }
 0x412   :  { %v129_v36 = vld [vmem:[%s6342_s1 + $0x180] sm:$0xff] }
 0x413   :  { %2623 = vst.msk [vmem:[%s6343_s4 + $0x168] sm:$0xff] %vm145_vm0, %v2559_v0  ;;  %v2114_v63 = vadd.f32 %v2050_v61, %v129_v36  ;;  %v6740_v36 = vld [vmem:[#allocation71_spill] sm:$0xff] }
 0x414   :  { %v2059_v42 = vmul.f32 %v6740_v36, %v6739_v24 }
 0x415   :  { %v2498_v3 = vadd.f32 %v2373_v50, %v2114_v63  ;;  %v6742_v50 = vld [vmem:[#allocation73_spill] sm:$0xff] }
 0x417   :  { %v2562_v45 = vmax.f32 %v2498_v3, 0.0 }
 0x41a   :  { %v136_v25 = vld [vmem:[%s6342_s1 + $0x1b8] sm:$0xff] }
 0x41b   :  { %2630 = vst.msk [vmem:[%s6343_s4 + $0x1a0] sm:$0xff] %vm145_vm0, %v2566_v9  ;;  %v2121_v55 = vadd.f32 %v2057_v34, %v136_v25  ;;  %v6741_v9 = vld [vmem:[#allocation28_spill] sm:$0xff]  ;;  %v2433_v25 = vpop.permute.xlu1 %2432 }
 0x41c   :  { %v2062_v6 = vmul.f32 %v6742_v50, %v6741_v9 }
 0x41d   :  { %v2505_v30 = vadd.f32 %v2408_v56, %v2121_v55 }
 0x41f   :  { %v2569_v41 = vmax.f32 %v2505_v30, 0.0 }
 0x422   :  { %v140_v1 = vld [vmem:[%s6342_s1 + $0x1d8] sm:$0xff] }
 0x423   :  { %2634 = vst.msk [vmem:[%s6343_s4 + $0x1c0] sm:$0xff] %vm145_vm0, %v2570_v39  ;;  %v2125_v31 = vadd.f32 %v2061_v14, %v140_v1  ;;  %v6743_v1 = vld [vmem:[#allocation31_spill] sm:$0xff] }
 0x424   :  { %v2065_v57 = vmul.f32 %v6744_v40, %v6743_v1 }
 0x425   :  { %v2509_v15 = vadd.f32 %v2428_v35, %v2125_v31 }
 0x427   :  { %v2573_v4 = vmax.f32 %v2509_v15, 0.0 }
 0x42a   :  { %v132_v32 = vld [vmem:[%s6342_s1 + $0x198] sm:$0xff] }
 0x42b   :  { %2626 = vst.msk [vmem:[%s6343_s4 + $0x180] sm:$0xff] %vm145_vm0, %v2562_v45  ;;  %v2117_v22 = vadd.f32 %v2053_v49, %v132_v32  ;;  %v2448_v32 = vpop.permute.xlu1 %2447 }
 0x42d   :  { %v2501_v53 = vadd.f32 %v2388_v13, %v2117_v22 }
 0x42f   :  { %v2565_v43 = vmax.f32 %v2501_v53, 0.0 }
 0x432   :  { %v139_v19 = vld [vmem:[%s6342_s1 + $0x1d0] sm:$0xff] }
 0x433   :  { %2633 = vst.msk [vmem:[%s6343_s4 + $0x1b8] sm:$0xff] %vm145_vm0, %v2569_v41  ;;  %v2124_v26 = vadd.f32 %v2060_v46, %v139_v19 }
 0x435   :  { %v2508_v21 = vadd.f32 %v2423_v52, %v2124_v26 }
 0x437   :  { %v2572_v17 = vmax.f32 %v2508_v21, 0.0 }
 0x43a   :  { %v143_v11 = vld [vmem:[%s6342_s1 + $0x1f0] sm:$0xff] }
 0x43b   :  { %2637 = vst.msk [vmem:[%s6343_s4 + $0x1d8] sm:$0xff] %vm145_vm0, %v2573_v4  ;;  %v2128_v8 = vadd.f32 %v2064_v38, %v143_v11 }
 0x43d   :  { %v2512_v7 = vadd.f32 %v2443_v60, %v2128_v8 }
 0x43f   :  { %v2576_v0 = vmax.f32 %v2512_v7, 0.0 }
 0x442   :  { %v135_v12 = vld [vmem:[%s6342_s1 + $0x1b0] sm:$0xff] }
 0x443   :  { %2629 = vst.msk [vmem:[%s6343_s4 + $0x198] sm:$0xff] %vm145_vm0, %v2565_v43  ;;  %v2120_v2 = vadd.f32 %v2056_v29, %v135_v12 }
 0x445   :  { %v2504_v33 = vadd.f32 %v2403_v20, %v2120_v2 }
 0x447   :  { %v2568_v51 = vmax.f32 %v2504_v33, 0.0 }
 0x44a   :  { %v142_v61 = vld [vmem:[%s6342_s1 + $0x1e8] sm:$0xff] }
 0x44b   :  { %2636 = vst.msk [vmem:[%s6343_s4 + $0x1d0] sm:$0xff] %vm145_vm0, %v2572_v17  ;;  %v2127_v37 = vadd.f32 %v2063_v47, %v142_v61 }
 0x44c   :  { %2640 = vst.msk [vmem:[%s6343_s4 + $0x1f0] sm:$0xff] %vm145_vm0, %v2576_v0 }
 0x44d   :  { %v2511_v63 = vadd.f32 %v2438_v27, %v2127_v37 }
 0x44f   :  { %v2575_v18 = vmax.f32 %v2511_v63, 0.0 }
 0x453   :  { %v138_v44 = vld [vmem:[%s6342_s1 + $0x1c8] sm:$0xff] }
 0x454   :  { %2632 = vst.msk [vmem:[%s6343_s4 + $0x1b0] sm:$0xff] %vm145_vm0, %v2568_v51  ;;  %v2123_v62 = vadd.f32 %v2059_v42, %v138_v44 }
 0x455   :  { %2639 = vst.msk [vmem:[%s6343_s4 + $0x1e8] sm:$0xff] %vm145_vm0, %v2575_v18 }
 0x456   :  { %v2507_v34 = vadd.f32 %v2418_v54, %v2123_v62 }
 0x458   :  { %v2571_v23 = vmax.f32 %v2507_v34, 0.0 }
 0x45c   :  { %v141_v14 = vld [vmem:[%s6342_s1 + $0x1e0] sm:$0xff] }
 0x45d   :  { %2635 = vst.msk [vmem:[%s6343_s4 + $0x1c8] sm:$0xff] %vm145_vm0, %v2571_v23  ;;  %v2126_v3 = vadd.f32 %v2062_v6, %v141_v14 }
 0x45f   :  { %v2510_v39 = vadd.f32 %v2433_v25, %v2126_v3 }
 0x461   :  { %v2574_v49 = vmax.f32 %v2510_v39, 0.0 }
 0x464   :  { %v144_v45 = vld [vmem:[%s6342_s1 + $0x1f8] sm:$0xff] }
 0x465   :  { %2638 = vst.msk [vmem:[%s6343_s4 + $0x1e0] sm:$0xff] %vm145_vm0, %v2574_v49  ;;  %v2129_v55 = vadd.f32 %v2065_v57, %v144_v45 }
 0x467   :  { %v2513_v56 = vadd.f32 %v2448_v32, %v2129_v55 }
 0x469   :  { %v2577_v31 = vmax.f32 %v2513_v56, 0.0 }
 0x46b   :  { %2641 = vst.msk [vmem:[%s6343_s4 + $0x1f8] sm:$0xff] %vm145_vm0, %v2577_v31 }

</bundles_post_ra>
